<compile_context>
chip_gen: v7x
topology: tpu7x:2x2x1
jax: 0.10.0
libtpu: 0.0.40
codegen_flags: <defaults>
</compile_context>

<pallas_src>
import functools

import jax
import jax.numpy as jnp
from jax.experimental import pallas as pl
from jax.experimental.pallas import tpu as pltpu

LN_EPS = 1e-5
BN_EPS = 1e-5
_NEG_INF = -1e30  # additive key-padding mask value (kept in f32 only)


# ------------------------------- fused kernel --------------------------------
def _bi_decoder_kernel(
    # activations (query / pos as 2-D slabs, memories + masks batched 3-D)
    q_ref, vis_ref, lang_ref, qpos_ref, qmask_ref, tmask_ref,
    # position embedding MLP: Conv1d(k=1) -> BN(eval, folded) -> ReLU -> Conv1d(k=1)
    pw1_ref, pb1_ref, pbs_ref, pbt_ref, pw2_ref, pb2_ref,
    # self-attention (q/k projections fused; q-input == k-input)
    sa_wqk_ref, sa_bqk_ref, sa_wv_ref, sa_bv_ref, sa_wo_ref, sa_bo_ref,
    # cross-attention to language (k/v projections fused; k-input == v-input)
    cl_wq_ref, cl_bq_ref, cl_wkv_ref, cl_bkv_ref, cl_wo_ref, cl_bo_ref,
    # cross-attention to vision
    cv_wq_ref, cv_bq_ref, cv_wkv_ref, cv_bkv_ref, cv_wo_ref, cv_bo_ref,
    # layer norms, each (2, F): row 0 = gamma, row 1 = beta
    n1_ref, nl_ref, nv_ref, n2_ref,
    # FFN
    fw1_ref, fb1_ref, fw2_ref, fb2_ref,
    # output
    o_ref,
    # VMEM scratch for per-head attention writeback
    attn_sc,
    *, n_heads):
  f32 = jnp.float32
  bf16 = jnp.bfloat16

  M, F = q_ref.shape                       # M = Bt * N (folded batch)
  Bt, V, _ = vis_ref.shape
  L = lang_ref.shape[1]
  N = M // Bt
  dh = F // n_heads
  scale = 1.0 / float(dh ** 0.5)

  def mm(x, w_ref, b_ref):
    # bf16 MXU operands, f32 accumulation, f32 bias add.
    y = jnp.dot(x.astype(bf16), w_ref[...], preferred_element_type=f32)
    return y + b_ref[...]

  def layer_norm(x, p_ref):
    g = p_ref[0:1, :]
    b = p_ref[1:2, :]
    mu = jnp.mean(x, axis=-1, keepdims=True)
    xc = x - mu
    var = jnp.mean(xc * xc, axis=-1, keepdims=True)
    return xc * jax.lax.rsqrt(var + LN_EPS) * g + b

  def mha(q2d, k2d, v2d, Lk, mask_add):
    # q2d: (M, F), k2d/v2d: (Bt*Lk, F); heads packed along F.
    # Scores/softmax in f32, matmul operands in bf16, per-head output written
    # straight into VMEM scratch (no lane-axis concatenate).
    q3 = q2d.reshape(Bt, N, F)
    k3 = k2d.reshape(Bt, Lk, F)
    v3 = v2d.reshape(Bt, Lk, F)
    for hh in range(n_heads):                                  # static unroll
      sl = slice(hh * dh, (hh + 1) * dh)
      s = jnp.einsum('bqd,bkd->bqk',
                     q3[:, :, sl].astype(bf16), k3[:, :, sl].astype(bf16),
                     preferred_element_type=f32) * scale
      if mask_add is not None:                  # vision attn: no key mask at all
        s = s + mask_add
      # NOTE: fully-masked rows get uniform attention here (PyTorch would NaN);
      # only affects padded queries.
      mx = jnp.max(s, axis=-1, keepdims=True)
      p = jnp.exp(s - mx)
      denom = jnp.maximum(jnp.sum(p, axis=-1, keepdims=True), 1e-20)
      o = jnp.einsum('bqk,bkd->bqd', p.astype(bf16), v3[:, :, sl].astype(bf16),
                     preferred_element_type=f32)
      attn_sc[:, sl] = (o * pl.reciprocal(denom, approx=True)).reshape(M, dh)
    return attn_sc[...]                                        # (M, F)

  query = q_ref[...].astype(f32)                               # (M, F)

  # ---- positional embedding (channels-last equivalent of NCL Conv1d k=1) ----
  h = mm(qpos_ref[...], pw1_ref, pb1_ref)
  h = jnp.maximum(h * pbs_ref[...] + pbt_ref[...], 0.0)
  qp = mm(h, pw2_ref, pb2_ref)                                 # (M, F)

  # additive key-padding masks built in-kernel from 0/1 floats (f32 only)
  qmask_add = qmask_ref[...] * _NEG_INF                        # (Bt, 1, N)
  tmask_add = tmask_ref[...] * _NEG_INF                        # (Bt, 1, L)

  # ---- self-attention: q = k = query + qp, v = query ----
  q_in = query + qp
  qk = mm(q_in, sa_wqk_ref, sa_bqk_ref)                        # (M, 2F) fused q/k
  v = mm(query, sa_wv_ref, sa_bv_ref)
  attn = mha(qk[:, :F], qk[:, F:], v, N, qmask_add)
  q2 = mm(attn, sa_wo_ref, sa_bo_ref)
  query = layer_norm(query + q2, n1_ref)                       # dropout1 = identity

  # ---- cross-attention to language features ----
  qproj = mm(query + qp, cl_wq_ref, cl_bq_ref)
  lang = lang_ref[...].reshape(Bt * L, F)
  kv = mm(lang, cl_wkv_ref, cl_bkv_ref)                        # (Bt*L, 2F) fused k/v
  attn = mha(qproj, kv[:, :F], kv[:, F:], L, tmask_add)
  q2 = mm(attn, cl_wo_ref, cl_bo_ref)
  query = layer_norm(query + q2, nl_ref)

  # TODO(synk): butd=False in this build, so the cross_d (detected_feats) branch is omitted.

  # ---- cross-attention to visual features (no key padding mask) ----
  qproj = mm(query + qp, cv_wq_ref, cv_bq_ref)
  vis = vis_ref[...].reshape(Bt * V, F)
  kv = mm(vis, cv_wkv_ref, cv_bkv_ref)
  attn = mha(qproj, kv[:, :F], kv[:, F:], V, None)
  q2 = mm(attn, cv_wo_ref, cv_bo_ref)
  query = layer_norm(query + q2, nv_ref)

  # ---- FFN + norm2 ----
  hff = jnp.maximum(mm(query, fw1_ref, fb1_ref), 0.0)
  q2 = mm(hff, fw2_ref, fb2_ref)
  o_ref[...] = layer_norm(query + q2, n2_ref).astype(o_ref.dtype)


# -------------------------------- wrapper -------------------------------------
def bi_decoder_layer(params, query, vis_feats, lang_feats, query_pos,
                     padding_mask, text_key_padding_mask, n_heads,
                     grid_steps=None):
  """Eval-mode forward of BiDecoderLayer (butd=False, detected_feats=None)."""
  B, N, F = query.shape
  V = vis_feats.shape[1]
  L = lang_feats.shape[1]
  C = query_pos.shape[2]
  p = params

  # Batch folding: default 2 grid steps so v7x's two TensorCores both get work;
  # use grid_steps=1 on single-TC chips (v5e/v6e) to fold the whole batch.
  if grid_steps is None:
    if B == 1:
      grid_steps = 1
    elif B % 2 == 0:
      grid_steps = 2
    else:
      grid_steps = B
  assert B % grid_steps == 0, "grid_steps must divide batch"
  Bt = B // grid_steps

  # Lane-dense 2-D slabs for query / query_pos / output (free reshapes outside).
  query2d = query.reshape(B * N, F)
  qpos2d = query_pos.reshape(B * N, C)
  qmask = padding_mask.astype(jnp.float32).reshape(B, 1, N)
  tmask = text_key_padding_mask.astype(jnp.float32).reshape(B, 1, L)

  inputs = [
      query2d, vis_feats, lang_feats, qpos2d, qmask, tmask,
      p['pos']['w1'], p['pos']['b1'], p['pos']['bn_scale'], p['pos']['bn_shift'],
      p['pos']['w2'], p['pos']['b2'],
      p['self_attn']['w_qk'], p['self_attn']['b_qk'], p['self_attn']['w_v'],
      p['self_attn']['b_v'], p['self_attn']['w_o'], p['self_attn']['b_o'],
      p['cross_l']['w_q'], p['cross_l']['b_q'], p['cross_l']['w_kv'],
      p['cross_l']['b_kv'], p['cross_l']['w_o'], p['cross_l']['b_o'],
      p['cross_v']['w_q'], p['cross_v']['b_q'], p['cross_v']['w_kv'],
      p['cross_v']['b_kv'], p['cross_v']['w_o'], p['cross_v']['b_o'],
      p['norm1'], p['norm_l'], p['norm_v'], p['norm2'],
      p['ffn']['w1'], p['ffn']['b1'], p['ffn']['w2'], p['ffn']['b2'],
  ]

  def slab(rows, cols):            # 2-D activation slab, blocked along rows
    return pl.BlockSpec((rows, cols), lambda i: (i, 0))

  def bspec(*tail):                # 3-D activation, blocked along batch
    zeros = (0,) * len(tail)
    return pl.BlockSpec((Bt,) + tail, lambda i, _z=zeros: (i,) + _z)

  def wspec(shape):                # whole-array weight block (grid-invariant)
    zeros = (0,) * len(shape)
    return pl.BlockSpec(shape, lambda i, _z=zeros: _z)

  in_specs = [slab(Bt * N, F), bspec(V, F), bspec(L, F),
              slab(Bt * N, C), bspec(1, N), bspec(1, L)]
  in_specs += [wspec(a.shape) for a in inputs[6:]]

  # TODO(synk): at production sizes (d_model~256-288, dim_ff~2048) set
  #   pipeline_mode=pl.Buffered(1) on the weight specs and/or
  #   pltpu.CompilerParams(vmem_limit_bytes=...) so the single-buffered weight
  #   working set fits v7x's 64 MiB VMEM; irrelevant at these test shapes.
  out = pl.pallas_call(
      functools.partial(_bi_decoder_kernel, n_heads=n_heads),
      out_shape=jax.ShapeDtypeStruct((B * N, F), jnp.float32),
      grid=(grid_steps,),
      in_specs=in_specs,
      out_specs=pl.BlockSpec((Bt * N, F), lambda i: (i, 0)),
      scratch_shapes=[pltpu.VMEM((Bt * N, F), jnp.float32)],
      compiler_params=pltpu.CompilerParams(
          dimension_semantics=("parallel",)),   # v7x: split grid over its 2 TCs
  )(*inputs)
  return out.reshape(B, N, F)


# ------------------------------- parameters -----------------------------------
def init_params(key, d_model, dim_ff, pos_in=6):
  keys = iter(jax.random.split(key, 24))
  F = d_model

  def w(shape):
    # matmul weights live in bf16 (MXU-native, half the DMA/VMEM bytes)
    x = 0.02 * jax.random.normal(next(keys), shape, dtype=jnp.float32)
    return x.astype(jnp.bfloat16)

  def zeros(shape):
    return jnp.zeros(shape, jnp.float32)

  def ln():
    # row 0 = gamma, row 1 = beta (f32)
    return jnp.concatenate([jnp.ones((1, F), jnp.float32),
                            jnp.zeros((1, F), jnp.float32)], axis=0)

  def mha_self():
    # q and k share the same input (query + pos) -> fuse their projections.
    return dict(w_qk=jnp.concatenate([w((F, F)), w((F, F))], axis=1),
                b_qk=zeros((1, 2 * F)),
                w_v=w((F, F)), b_v=zeros((1, F)),
                w_o=w((F, F)), b_o=zeros((1, F)))

  def mha_cross():
    # k and v share the same (memory) input -> fuse their projections.
    return dict(w_q=w((F, F)), b_q=zeros((1, F)),
                w_kv=jnp.concatenate([w((F, F)), w((F, F))], axis=1),
                b_kv=zeros((1, 2 * F)),
                w_o=w((F, F)), b_o=zeros((1, F)))

  # BatchNorm1d eval fold: gamma=1, beta=0, running_mean=0, running_var=1.
  # (If trained running stats are loaded, recompute bn_scale/bn_shift from them.)
  bn_scale = jnp.full((1, F), 1.0 / float(jnp.sqrt(1.0 + BN_EPS)), jnp.float32)
  bn_shift = jnp.zeros((1, F), jnp.float32)

  return dict(
      pos=dict(w1=w((pos_in, F)), b1=zeros((1, F)),
               bn_scale=bn_scale, bn_shift=bn_shift,
               w2=w((F, F)), b2=zeros((1, F))),
      self_attn=mha_self(), cross_l=mha_cross(), cross_v=mha_cross(),
      norm1=ln(), norm_l=ln(), norm_v=ln(), norm2=ln(),
      ffn=dict(w1=w((F, dim_ff)), b1=zeros((1, dim_ff)),
               w2=w((dim_ff, F)), b2=zeros((1, F))),
  )


# ---------------------------------- main --------------------------------------
if __name__ == "__main__":
  B, N, V, L = 2, 8, 16, 8
  d_model, n_heads, dim_ff = 32, 4, 64

  key = jax.random.PRNGKey(0)
  k1, k2, k3, k4, kp = jax.random.split(key, 5)
  query = jax.random.normal(k1, (B, N, d_model), jnp.float32)
  vis_feats = jax.random.normal(k2, (B, V, d_model), jnp.float32)
  lang_feats = jax.random.normal(k3, (B, L, d_model), jnp.float32)
  query_pos = jax.random.normal(k4, (B, N, 6), jnp.float32)   # loc_learned -> 6 ch
  padding_mask = jnp.zeros((B, N), dtype=bool).at[1, -2:].set(True)
  text_key_padding_mask = jnp.zeros((B, L), dtype=bool).at[0, -3:].set(True)

  params = init_params(kp, d_model, dim_ff)

  out = bi_decoder_layer(params, query, vis_feats, lang_feats, query_pos,
                         padding_mask, text_key_padding_mask, n_heads)
  out = jax.block_until_ready(out)
  assert out.shape == (B, N, d_model)
  assert bool(jnp.all(jnp.isfinite(out)))
  print("KERNEL_OK")
</pallas_src>

<mosaic_0001>
module attributes {stable_mosaic.version = 11 : i64} {
  func.func @_bi_decoder_kernel(%arg0: i32, %arg1: memref<8x32xf32, #tpu.memory_space<vmem>>, %arg2: memref<1x16x32xf32, #tpu.memory_space<vmem>>, %arg3: memref<1x8x32xf32, #tpu.memory_space<vmem>>, %arg4: memref<8x6xf32, #tpu.memory_space<vmem>>, %arg5: memref<1x1x8xf32, #tpu.memory_space<vmem>>, %arg6: memref<1x1x8xf32, #tpu.memory_space<vmem>>, %arg7: memref<6x32xbf16, #tpu.memory_space<vmem>>, %arg8: memref<1x32xf32, #tpu.memory_space<vmem>>, %arg9: memref<1x32xf32, #tpu.memory_space<vmem>>, %arg10: memref<1x32xf32, #tpu.memory_space<vmem>>, %arg11: memref<32x32xbf16, #tpu.memory_space<vmem>>, %arg12: memref<1x32xf32, #tpu.memory_space<vmem>>, %arg13: memref<32x64xbf16, #tpu.memory_space<vmem>>, %arg14: memref<1x64xf32, #tpu.memory_space<vmem>>, %arg15: memref<32x32xbf16, #tpu.memory_space<vmem>>, %arg16: memref<1x32xf32, #tpu.memory_space<vmem>>, %arg17: memref<32x32xbf16, #tpu.memory_space<vmem>>, %arg18: memref<1x32xf32, #tpu.memory_space<vmem>>, %arg19: memref<32x32xbf16, #tpu.memory_space<vmem>>, %arg20: memref<1x32xf32, #tpu.memory_space<vmem>>, %arg21: memref<32x64xbf16, #tpu.memory_space<vmem>>, %arg22: memref<1x64xf32, #tpu.memory_space<vmem>>, %arg23: memref<32x32xbf16, #tpu.memory_space<vmem>>, %arg24: memref<1x32xf32, #tpu.memory_space<vmem>>, %arg25: memref<32x32xbf16, #tpu.memory_space<vmem>>, %arg26: memref<1x32xf32, #tpu.memory_space<vmem>>, %arg27: memref<32x64xbf16, #tpu.memory_space<vmem>>, %arg28: memref<1x64xf32, #tpu.memory_space<vmem>>, %arg29: memref<32x32xbf16, #tpu.memory_space<vmem>>, %arg30: memref<1x32xf32, #tpu.memory_space<vmem>>, %arg31: memref<2x32xf32, #tpu.memory_space<vmem>>, %arg32: memref<2x32xf32, #tpu.memory_space<vmem>>, %arg33: memref<2x32xf32, #tpu.memory_space<vmem>>, %arg34: memref<2x32xf32, #tpu.memory_space<vmem>>, %arg35: memref<32x64xbf16, #tpu.memory_space<vmem>>, %arg36: memref<1x64xf32, #tpu.memory_space<vmem>>, %arg37: memref<64x32xbf16, #tpu.memory_space<vmem>>, %arg38: memref<1x32xf32, #tpu.memory_space<vmem>>, %arg39: memref<8x32xf32, #tpu.memory_space<vmem>>, %arg40: memref<8x32xf32, #tpu.memory_space<vmem>>) attributes {dimension_semantics = [#tpu.dimension_semantics<parallel>], iteration_bounds = array<i64: 2>, scalar_prefetch = 0 : i64, scratch_operands = 1 : i64, tpu.core_type = #tpu.core_type<tc>, window_params = [{transform_indices = @transform_0, window_bounds = array<i64: 8, 32>}, {transform_indices = @transform_1, window_bounds = array<i64: 1, 16, 32>}, {transform_indices = @transform_2, window_bounds = array<i64: 1, 8, 32>}, {transform_indices = @transform_3, window_bounds = array<i64: 8, 6>}, {transform_indices = @transform_4, window_bounds = array<i64: 1, 1, 8>}, {transform_indices = @transform_5, window_bounds = array<i64: 1, 1, 8>}, {pipeline_mode = #tpu.pipeline_mode<synchronous>, transform_indices = @transform_6, window_bounds = array<i64: 6, 32>}, {pipeline_mode = #tpu.pipeline_mode<synchronous>, transform_indices = @transform_7, window_bounds = array<i64: 1, 32>}, {pipeline_mode = #tpu.pipeline_mode<synchronous>, transform_indices = @transform_8, window_bounds = array<i64: 1, 32>}, {pipeline_mode = #tpu.pipeline_mode<synchronous>, transform_indices = @transform_9, window_bounds = array<i64: 1, 32>}, {pipeline_mode = #tpu.pipeline_mode<synchronous>, transform_indices = @transform_10, window_bounds = array<i64: 32, 32>}, {pipeline_mode = #tpu.pipeline_mode<synchronous>, transform_indices = @transform_11, window_bounds = array<i64: 1, 32>}, {pipeline_mode = #tpu.pipeline_mode<synchronous>, transform_indices = @transform_12, window_bounds = array<i64: 32, 64>}, {pipeline_mode = #tpu.pipeline_mode<synchronous>, transform_indices = @transform_13, window_bounds = array<i64: 1, 64>}, {pipeline_mode = #tpu.pipeline_mode<synchronous>, transform_indices = @transform_14, window_bounds = array<i64: 32, 32>}, {pipeline_mode = #tpu.pipeline_mode<synchronous>, transform_indices = @transform_15, window_bounds = array<i64: 1, 32>}, {pipeline_mode = #tpu.pipeline_mode<synchronous>, transform_indices = @transform_16, window_bounds = array<i64: 32, 32>}, {pipeline_mode = #tpu.pipeline_mode<synchronous>, transform_indices = @transform_17, window_bounds = array<i64: 1, 32>}, {pipeline_mode = #tpu.pipeline_mode<synchronous>, transform_indices = @transform_18, window_bounds = array<i64: 32, 32>}, {pipeline_mode = #tpu.pipeline_mode<synchronous>, transform_indices = @transform_19, window_bounds = array<i64: 1, 32>}, {pipeline_mode = #tpu.pipeline_mode<synchronous>, transform_indices = @transform_20, window_bounds = array<i64: 32, 64>}, {pipeline_mode = #tpu.pipeline_mode<synchronous>, transform_indices = @transform_21, window_bounds = array<i64: 1, 64>}, {pipeline_mode = #tpu.pipeline_mode<synchronous>, transform_indices = @transform_22, window_bounds = array<i64: 32, 32>}, {pipeline_mode = #tpu.pipeline_mode<synchronous>, transform_indices = @transform_23, window_bounds = array<i64: 1, 32>}, {pipeline_mode = #tpu.pipeline_mode<synchronous>, transform_indices = @transform_24, window_bounds = array<i64: 32, 32>}, {pipeline_mode = #tpu.pipeline_mode<synchronous>, transform_indices = @transform_25, window_bounds = array<i64: 1, 32>}, {pipeline_mode = #tpu.pipeline_mode<synchronous>, transform_indices = @transform_26, window_bounds = array<i64: 32, 64>}, {pipeline_mode = #tpu.pipeline_mode<synchronous>, transform_indices = @transform_27, window_bounds = array<i64: 1, 64>}, {pipeline_mode = #tpu.pipeline_mode<synchronous>, transform_indices = @transform_28, window_bounds = array<i64: 32, 32>}, {pipeline_mode = #tpu.pipeline_mode<synchronous>, transform_indices = @transform_29, window_bounds = array<i64: 1, 32>}, {pipeline_mode = #tpu.pipeline_mode<synchronous>, transform_indices = @transform_30, window_bounds = array<i64: 2, 32>}, {pipeline_mode = #tpu.pipeline_mode<synchronous>, transform_indices = @transform_31, window_bounds = array<i64: 2, 32>}, {pipeline_mode = #tpu.pipeline_mode<synchronous>, transform_indices = @transform_32, window_bounds = array<i64: 2, 32>}, {pipeline_mode = #tpu.pipeline_mode<synchronous>, transform_indices = @transform_33, window_bounds = array<i64: 2, 32>}, {pipeline_mode = #tpu.pipeline_mode<synchronous>, transform_indices = @transform_34, window_bounds = array<i64: 32, 64>}, {pipeline_mode = #tpu.pipeline_mode<synchronous>, transform_indices = @transform_35, window_bounds = array<i64: 1, 64>}, {pipeline_mode = #tpu.pipeline_mode<synchronous>, transform_indices = @transform_36, window_bounds = array<i64: 64, 32>}, {pipeline_mode = #tpu.pipeline_mode<synchronous>, transform_indices = @transform_37, window_bounds = array<i64: 1, 32>}, {transform_indices = @transform_38, window_bounds = array<i64: 8, 32>}]} {
    %c0 = arith.constant 0 : index
    %c0_0 = arith.constant 0 : index
    %0 = vector.load %arg1[%c0, %c0_0] : memref<8x32xf32, #tpu.memory_space<vmem>>, vector<8x32xf32>
    %c0_1 = arith.constant 0 : index
    %c0_2 = arith.constant 0 : index
    %1 = vector.load %arg4[%c0_1, %c0_2] : memref<8x6xf32, #tpu.memory_space<vmem>>, vector<8x6xf32>
    %2 = arith.truncf %1 : vector<8x6xf32> to vector<8x6xbf16>
    %c0_3 = arith.constant 0 : index
    %c0_4 = arith.constant 0 : index
    %3 = vector.load %arg7[%c0_3, %c0_4] : memref<6x32xbf16, #tpu.memory_space<vmem>>, vector<6x32xbf16>
    %cst = arith.constant dense<0.000000e+00> : vector<8x32xf32>
    %4 = tpu.matmul %2, %3, %cst {dimension_numbers = #tpu.dot_dimension_numbers<[1], [0], [0], [1], [0, 0, 1, 1], [], []>} : vector<8x6xbf16>, vector<6x32xbf16>, vector<8x32xf32> -> vector<8x32xf32>
    %c0_5 = arith.constant 0 : index
    %c0_6 = arith.constant 0 : index
    %5 = vector.load %arg8[%c0_5, %c0_6] : memref<1x32xf32, #tpu.memory_space<vmem>>, vector<1x32xf32>
    %6 = vector.broadcast %5 : vector<1x32xf32> to vector<8x32xf32>
    %7 = arith.addf %4, %6 : vector<8x32xf32>
    %c0_7 = arith.constant 0 : index
    %c0_8 = arith.constant 0 : index
    %8 = vector.load %arg9[%c0_7, %c0_8] : memref<1x32xf32, #tpu.memory_space<vmem>>, vector<1x32xf32>
    %9 = vector.broadcast %8 : vector<1x32xf32> to vector<8x32xf32>
    %10 = arith.mulf %7, %9 : vector<8x32xf32>
    %c0_9 = arith.constant 0 : index
    %c0_10 = arith.constant 0 : index
    %11 = vector.load %arg10[%c0_9, %c0_10] : memref<1x32xf32, #tpu.memory_space<vmem>>, vector<1x32xf32>
    %12 = vector.broadcast %11 : vector<1x32xf32> to vector<8x32xf32>
    %13 = arith.addf %10, %12 : vector<8x32xf32>
    %cst_11 = arith.constant 0.000000e+00 : f32
    %14 = vector.broadcast %cst_11 : f32 to vector<8x32xf32>
    %15 = arith.maximumf %13, %14 : vector<8x32xf32>
    %16 = arith.truncf %15 : vector<8x32xf32> to vector<8x32xbf16>
    %c0_12 = arith.constant 0 : index
    %c0_13 = arith.constant 0 : index
    %17 = vector.load %arg11[%c0_12, %c0_13] : memref<32x32xbf16, #tpu.memory_space<vmem>>, vector<32x32xbf16>
    %cst_14 = arith.constant dense<0.000000e+00> : vector<8x32xf32>
    %18 = tpu.matmul %16, %17, %cst_14 {dimension_numbers = #tpu.dot_dimension_numbers<[1], [0], [0], [1], [0, 0, 1, 1], [], []>} : vector<8x32xbf16>, vector<32x32xbf16>, vector<8x32xf32> -> vector<8x32xf32>
    %c0_15 = arith.constant 0 : index
    %c0_16 = arith.constant 0 : index
    %19 = vector.load %arg12[%c0_15, %c0_16] : memref<1x32xf32, #tpu.memory_space<vmem>>, vector<1x32xf32>
    %20 = vector.broadcast %19 : vector<1x32xf32> to vector<8x32xf32>
    %21 = arith.addf %18, %20 : vector<8x32xf32>
    %c0_17 = arith.constant 0 : index
    %c0_18 = arith.constant 0 : index
    %c0_19 = arith.constant 0 : index
    %22 = vector.load %arg5[%c0_17, %c0_18, %c0_19] : memref<1x1x8xf32, #tpu.memory_space<vmem>>, vector<1x1x8xf32>
    %cst_20 = arith.constant -1.000000e+30 : f32
    %23 = vector.broadcast %cst_20 : f32 to vector<1x1x8xf32>
    %24 = arith.mulf %22, %23 : vector<1x1x8xf32>
    %c0_21 = arith.constant 0 : index
    %c0_22 = arith.constant 0 : index
    %c0_23 = arith.constant 0 : index
    %25 = vector.load %arg6[%c0_21, %c0_22, %c0_23] : memref<1x1x8xf32, #tpu.memory_space<vmem>>, vector<1x1x8xf32>
    %cst_24 = arith.constant -1.000000e+30 : f32
    %26 = vector.broadcast %cst_24 : f32 to vector<1x1x8xf32>
    %27 = arith.mulf %25, %26 : vector<1x1x8xf32>
    %28 = arith.addf %0, %21 : vector<8x32xf32>
    %29 = arith.truncf %28 : vector<8x32xf32> to vector<8x32xbf16>
    %c0_25 = arith.constant 0 : index
    %c0_26 = arith.constant 0 : index
    %30 = vector.load %arg13[%c0_25, %c0_26] : memref<32x64xbf16, #tpu.memory_space<vmem>>, vector<32x64xbf16>
    %cst_27 = arith.constant dense<0.000000e+00> : vector<8x64xf32>
    %31 = tpu.matmul %29, %30, %cst_27 {dimension_numbers = #tpu.dot_dimension_numbers<[1], [0], [0], [1], [0, 0, 1, 1], [], []>} : vector<8x32xbf16>, vector<32x64xbf16>, vector<8x64xf32> -> vector<8x64xf32>
    %c0_28 = arith.constant 0 : index
    %c0_29 = arith.constant 0 : index
    %32 = vector.load %arg14[%c0_28, %c0_29] : memref<1x64xf32, #tpu.memory_space<vmem>>, vector<1x64xf32>
    %33 = vector.broadcast %32 : vector<1x64xf32> to vector<8x64xf32>
    %34 = arith.addf %31, %33 : vector<8x64xf32>
    %35 = arith.truncf %0 : vector<8x32xf32> to vector<8x32xbf16>
    %c0_30 = arith.constant 0 : index
    %c0_31 = arith.constant 0 : index
    %36 = vector.load %arg15[%c0_30, %c0_31] : memref<32x32xbf16, #tpu.memory_space<vmem>>, vector<32x32xbf16>
    %cst_32 = arith.constant dense<0.000000e+00> : vector<8x32xf32>
    %37 = tpu.matmul %35, %36, %cst_32 {dimension_numbers = #tpu.dot_dimension_numbers<[1], [0], [0], [1], [0, 0, 1, 1], [], []>} : vector<8x32xbf16>, vector<32x32xbf16>, vector<8x32xf32> -> vector<8x32xf32>
    %c0_33 = arith.constant 0 : index
    %c0_34 = arith.constant 0 : index
    %38 = vector.load %arg16[%c0_33, %c0_34] : memref<1x32xf32, #tpu.memory_space<vmem>>, vector<1x32xf32>
    %39 = vector.broadcast %38 : vector<1x32xf32> to vector<8x32xf32>
    %40 = arith.addf %37, %39 : vector<8x32xf32>
    %41 = vector.extract_strided_slice %34 {offsets = [0, 0], sizes = [8, 32], strides = [1, 1]} : vector<8x64xf32> to vector<8x32xf32>
    %42 = vector.extract_strided_slice %34 {offsets = [0, 32], sizes = [8, 32], strides = [1, 1]} : vector<8x64xf32> to vector<8x32xf32>
    %43 = vector.shape_cast %41 : vector<8x32xf32> to vector<1x8x32xf32>
    %44 = vector.shape_cast %42 : vector<8x32xf32> to vector<1x8x32xf32>
    %45 = vector.shape_cast %40 : vector<8x32xf32> to vector<1x8x32xf32>
    %46 = vector.extract_strided_slice %43 {offsets = [0, 0, 0], sizes = [1, 8, 8], strides = [1, 1, 1]} : vector<1x8x32xf32> to vector<1x8x8xf32>
    %47 = arith.truncf %46 : vector<1x8x8xf32> to vector<1x8x8xbf16>
    %48 = vector.extract_strided_slice %44 {offsets = [0, 0, 0], sizes = [1, 8, 8], strides = [1, 1, 1]} : vector<1x8x32xf32> to vector<1x8x8xf32>
    %49 = arith.truncf %48 : vector<1x8x8xf32> to vector<1x8x8xbf16>
    "tpu.trace_start"() <{level = 10 : i32, message = "bqd,bkd->bqk"}> : () -> ()
    %cst_35 = arith.constant dense<0.000000e+00> : vector<1x8x8xf32>
    %50 = tpu.matmul %47, %49, %cst_35 {dimension_numbers = #tpu.dot_dimension_numbers<[2], [2], [1], [1], [0, 0, 0, 1, 1, 1], [0], [0]>} : vector<1x8x8xbf16>, vector<1x8x8xbf16>, vector<1x8x8xf32> -> vector<1x8x8xf32>
    "tpu.trace_stop"() : () -> ()
    %cst_36 = arith.constant 0.353553385 : f32
    %51 = vector.broadcast %cst_36 : f32 to vector<1x8x8xf32>
    %52 = arith.mulf %50, %51 : vector<1x8x8xf32>
    %53 = vector.broadcast %24 : vector<1x1x8xf32> to vector<1x8x8xf32>
    %54 = arith.addf %52, %53 : vector<1x8x8xf32>
    %cst_37 = arith.constant dense<0xFF800000> : vector<1x8xf32>
    %55 = vector.multi_reduction <maximumf>, %54, %cst_37 [2] : vector<1x8x8xf32> to vector<1x8xf32>
    %56 = vector.shape_cast %55 : vector<1x8xf32> to vector<1x8x1xf32>
    %57 = vector.broadcast %56 : vector<1x8x1xf32> to vector<1x8x8xf32>
    %58 = arith.subf %54, %57 : vector<1x8x8xf32>
    %59 = math.exp %58 : vector<1x8x8xf32>
    %cst_38 = arith.constant dense<0.000000e+00> : vector<1x8xf32>
    %60 = vector.multi_reduction <add>, %59, %cst_38 [2] : vector<1x8x8xf32> to vector<1x8xf32>
    %61 = vector.shape_cast %60 : vector<1x8xf32> to vector<1x8x1xf32>
    %cst_39 = arith.constant 9.99999968E-21 : f32
    %62 = vector.broadcast %cst_39 : f32 to vector<1x8x1xf32>
    %63 = arith.maximumf %61, %62 : vector<1x8x1xf32>
    %64 = arith.truncf %59 : vector<1x8x8xf32> to vector<1x8x8xbf16>
    %65 = vector.extract_strided_slice %45 {offsets = [0, 0, 0], sizes = [1, 8, 8], strides = [1, 1, 1]} : vector<1x8x32xf32> to vector<1x8x8xf32>
    %66 = arith.truncf %65 : vector<1x8x8xf32> to vector<1x8x8xbf16>
    "tpu.trace_start"() <{level = 10 : i32, message = "bqk,bkd->bqd"}> : () -> ()
    %cst_40 = arith.constant dense<0.000000e+00> : vector<1x8x8xf32>
    %67 = tpu.matmul %64, %66, %cst_40 {dimension_numbers = #tpu.dot_dimension_numbers<[2], [1], [1], [2], [0, 0, 0, 1, 1, 2], [0], [0]>} : vector<1x8x8xbf16>, vector<1x8x8xbf16>, vector<1x8x8xf32> -> vector<1x8x8xf32>
    "tpu.trace_stop"() : () -> ()
    %68 = tpu.reciprocal %63 {approx = true} : vector<1x8x1xf32> -> vector<1x8x1xf32>
    %69 = vector.broadcast %68 : vector<1x8x1xf32> to vector<1x8x8xf32>
    %70 = arith.mulf %67, %69 : vector<1x8x8xf32>
    %71 = vector.shape_cast %70 : vector<1x8x8xf32> to vector<8x8xf32>
    %c0_41 = arith.constant 0 : index
    %c0_42 = arith.constant 0 : index
    %72 = vector.load %arg40[%c0_41, %c0_42] : memref<8x32xf32, #tpu.memory_space<vmem>>, vector<8x8xf32>
    tpu.vector_store %arg40[%c0_41, %c0_42], %71 {strides = array<i32>} : memref<8x32xf32, #tpu.memory_space<vmem>>, vector<8x8xf32>,
    %73 = vector.extract_strided_slice %43 {offsets = [0, 0, 8], sizes = [1, 8, 8], strides = [1, 1, 1]} : vector<1x8x32xf32> to vector<1x8x8xf32>
    %74 = arith.truncf %73 : vector<1x8x8xf32> to vector<1x8x8xbf16>
    %75 = vector.extract_strided_slice %44 {offsets = [0, 0, 8], sizes = [1, 8, 8], strides = [1, 1, 1]} : vector<1x8x32xf32> to vector<1x8x8xf32>
    %76 = arith.truncf %75 : vector<1x8x8xf32> to vector<1x8x8xbf16>
    "tpu.trace_start"() <{level = 10 : i32, message = "bqd,bkd->bqk"}> : () -> ()
    %cst_43 = arith.constant dense<0.000000e+00> : vector<1x8x8xf32>
    %77 = tpu.matmul %74, %76, %cst_43 {dimension_numbers = #tpu.dot_dimension_numbers<[2], [2], [1], [1], [0, 0, 0, 1, 1, 1], [0], [0]>} : vector<1x8x8xbf16>, vector<1x8x8xbf16>, vector<1x8x8xf32> -> vector<1x8x8xf32>
    "tpu.trace_stop"() : () -> ()
    %cst_44 = arith.constant 0.353553385 : f32
    %78 = vector.broadcast %cst_44 : f32 to vector<1x8x8xf32>
    %79 = arith.mulf %77, %78 : vector<1x8x8xf32>
    %80 = vector.broadcast %24 : vector<1x1x8xf32> to vector<1x8x8xf32>
    %81 = arith.addf %79, %80 : vector<1x8x8xf32>
    %cst_45 = arith.constant dense<0xFF800000> : vector<1x8xf32>
    %82 = vector.multi_reduction <maximumf>, %81, %cst_45 [2] : vector<1x8x8xf32> to vector<1x8xf32>
    %83 = vector.shape_cast %82 : vector<1x8xf32> to vector<1x8x1xf32>
    %84 = vector.broadcast %83 : vector<1x8x1xf32> to vector<1x8x8xf32>
    %85 = arith.subf %81, %84 : vector<1x8x8xf32>
    %86 = math.exp %85 : vector<1x8x8xf32>
    %cst_46 = arith.constant dense<0.000000e+00> : vector<1x8xf32>
    %87 = vector.multi_reduction <add>, %86, %cst_46 [2] : vector<1x8x8xf32> to vector<1x8xf32>
    %88 = vector.shape_cast %87 : vector<1x8xf32> to vector<1x8x1xf32>
    %cst_47 = arith.constant 9.99999968E-21 : f32
    %89 = vector.broadcast %cst_47 : f32 to vector<1x8x1xf32>
    %90 = arith.maximumf %88, %89 : vector<1x8x1xf32>
    %91 = arith.truncf %86 : vector<1x8x8xf32> to vector<1x8x8xbf16>
    %92 = vector.extract_strided_slice %45 {offsets = [0, 0, 8], sizes = [1, 8, 8], strides = [1, 1, 1]} : vector<1x8x32xf32> to vector<1x8x8xf32>
    %93 = arith.truncf %92 : vector<1x8x8xf32> to vector<1x8x8xbf16>
    "tpu.trace_start"() <{level = 10 : i32, message = "bqk,bkd->bqd"}> : () -> ()
    %cst_48 = arith.constant dense<0.000000e+00> : vector<1x8x8xf32>
    %94 = tpu.matmul %91, %93, %cst_48 {dimension_numbers = #tpu.dot_dimension_numbers<[2], [1], [1], [2], [0, 0, 0, 1, 1, 2], [0], [0]>} : vector<1x8x8xbf16>, vector<1x8x8xbf16>, vector<1x8x8xf32> -> vector<1x8x8xf32>
    "tpu.trace_stop"() : () -> ()
    %95 = tpu.reciprocal %90 {approx = true} : vector<1x8x1xf32> -> vector<1x8x1xf32>
    %96 = vector.broadcast %95 : vector<1x8x1xf32> to vector<1x8x8xf32>
    %97 = arith.mulf %94, %96 : vector<1x8x8xf32>
    %98 = vector.shape_cast %97 : vector<1x8x8xf32> to vector<8x8xf32>
    %c0_49 = arith.constant 0 : index
    %c8 = arith.constant 8 : index
    %99 = vector.load %arg40[%c0_49, %c8] : memref<8x32xf32, #tpu.memory_space<vmem>>, vector<8x8xf32>
    tpu.vector_store %arg40[%c0_49, %c8], %98 {strides = array<i32>} : memref<8x32xf32, #tpu.memory_space<vmem>>, vector<8x8xf32>,
    %100 = vector.extract_strided_slice %43 {offsets = [0, 0, 16], sizes = [1, 8, 8], strides = [1, 1, 1]} : vector<1x8x32xf32> to vector<1x8x8xf32>
    %101 = arith.truncf %100 : vector<1x8x8xf32> to vector<1x8x8xbf16>
    %102 = vector.extract_strided_slice %44 {offsets = [0, 0, 16], sizes = [1, 8, 8], strides = [1, 1, 1]} : vector<1x8x32xf32> to vector<1x8x8xf32>
    %103 = arith.truncf %102 : vector<1x8x8xf32> to vector<1x8x8xbf16>
    "tpu.trace_start"() <{level = 10 : i32, message = "bqd,bkd->bqk"}> : () -> ()
    %cst_50 = arith.constant dense<0.000000e+00> : vector<1x8x8xf32>
    %104 = tpu.matmul %101, %103, %cst_50 {dimension_numbers = #tpu.dot_dimension_numbers<[2], [2], [1], [1], [0, 0, 0, 1, 1, 1], [0], [0]>} : vector<1x8x8xbf16>, vector<1x8x8xbf16>, vector<1x8x8xf32> -> vector<1x8x8xf32>
    "tpu.trace_stop"() : () -> ()
    %cst_51 = arith.constant 0.353553385 : f32
    %105 = vector.broadcast %cst_51 : f32 to vector<1x8x8xf32>
    %106 = arith.mulf %104, %105 : vector<1x8x8xf32>
    %107 = vector.broadcast %24 : vector<1x1x8xf32> to vector<1x8x8xf32>
    %108 = arith.addf %106, %107 : vector<1x8x8xf32>
    %cst_52 = arith.constant dense<0xFF800000> : vector<1x8xf32>
    %109 = vector.multi_reduction <maximumf>, %108, %cst_52 [2] : vector<1x8x8xf32> to vector<1x8xf32>
    %110 = vector.shape_cast %109 : vector<1x8xf32> to vector<1x8x1xf32>
    %111 = vector.broadcast %110 : vector<1x8x1xf32> to vector<1x8x8xf32>
    %112 = arith.subf %108, %111 : vector<1x8x8xf32>
    %113 = math.exp %112 : vector<1x8x8xf32>
    %cst_53 = arith.constant dense<0.000000e+00> : vector<1x8xf32>
    %114 = vector.multi_reduction <add>, %113, %cst_53 [2] : vector<1x8x8xf32> to vector<1x8xf32>
    %115 = vector.shape_cast %114 : vector<1x8xf32> to vector<1x8x1xf32>
    %cst_54 = arith.constant 9.99999968E-21 : f32
    %116 = vector.broadcast %cst_54 : f32 to vector<1x8x1xf32>
    %117 = arith.maximumf %115, %116 : vector<1x8x1xf32>
    %118 = arith.truncf %113 : vector<1x8x8xf32> to vector<1x8x8xbf16>
    %119 = vector.extract_strided_slice %45 {offsets = [0, 0, 16], sizes = [1, 8, 8], strides = [1, 1, 1]} : vector<1x8x32xf32> to vector<1x8x8xf32>
    %120 = arith.truncf %119 : vector<1x8x8xf32> to vector<1x8x8xbf16>
    "tpu.trace_start"() <{level = 10 : i32, message = "bqk,bkd->bqd"}> : () -> ()
    %cst_55 = arith.constant dense<0.000000e+00> : vector<1x8x8xf32>
    %121 = tpu.matmul %118, %120, %cst_55 {dimension_numbers = #tpu.dot_dimension_numbers<[2], [1], [1], [2], [0, 0, 0, 1, 1, 2], [0], [0]>} : vector<1x8x8xbf16>, vector<1x8x8xbf16>, vector<1x8x8xf32> -> vector<1x8x8xf32>
    "tpu.trace_stop"() : () -> ()
    %122 = tpu.reciprocal %117 {approx = true} : vector<1x8x1xf32> -> vector<1x8x1xf32>
    %123 = vector.broadcast %122 : vector<1x8x1xf32> to vector<1x8x8xf32>
    %124 = arith.mulf %121, %123 : vector<1x8x8xf32>
    %125 = vector.shape_cast %124 : vector<1x8x8xf32> to vector<8x8xf32>
    %c0_56 = arith.constant 0 : index
    %c16 = arith.constant 16 : index
    %126 = vector.load %arg40[%c0_56, %c16] : memref<8x32xf32, #tpu.memory_space<vmem>>, vector<8x8xf32>
    tpu.vector_store %arg40[%c0_56, %c16], %125 {strides = array<i32>} : memref<8x32xf32, #tpu.memory_space<vmem>>, vector<8x8xf32>,
    %127 = vector.extract_strided_slice %43 {offsets = [0, 0, 24], sizes = [1, 8, 8], strides = [1, 1, 1]} : vector<1x8x32xf32> to vector<1x8x8xf32>
    %128 = arith.truncf %127 : vector<1x8x8xf32> to vector<1x8x8xbf16>
    %129 = vector.extract_strided_slice %44 {offsets = [0, 0, 24], sizes = [1, 8, 8], strides = [1, 1, 1]} : vector<1x8x32xf32> to vector<1x8x8xf32>
    %130 = arith.truncf %129 : vector<1x8x8xf32> to vector<1x8x8xbf16>
    "tpu.trace_start"() <{level = 10 : i32, message = "bqd,bkd->bqk"}> : () -> ()
    %cst_57 = arith.constant dense<0.000000e+00> : vector<1x8x8xf32>
    %131 = tpu.matmul %128, %130, %cst_57 {dimension_numbers = #tpu.dot_dimension_numbers<[2], [2], [1], [1], [0, 0, 0, 1, 1, 1], [0], [0]>} : vector<1x8x8xbf16>, vector<1x8x8xbf16>, vector<1x8x8xf32> -> vector<1x8x8xf32>
    "tpu.trace_stop"() : () -> ()
    %cst_58 = arith.constant 0.353553385 : f32
    %132 = vector.broadcast %cst_58 : f32 to vector<1x8x8xf32>
    %133 = arith.mulf %131, %132 : vector<1x8x8xf32>
    %134 = vector.broadcast %24 : vector<1x1x8xf32> to vector<1x8x8xf32>
    %135 = arith.addf %133, %134 : vector<1x8x8xf32>
    %cst_59 = arith.constant dense<0xFF800000> : vector<1x8xf32>
    %136 = vector.multi_reduction <maximumf>, %135, %cst_59 [2] : vector<1x8x8xf32> to vector<1x8xf32>
    %137 = vector.shape_cast %136 : vector<1x8xf32> to vector<1x8x1xf32>
    %138 = vector.broadcast %137 : vector<1x8x1xf32> to vector<1x8x8xf32>
    %139 = arith.subf %135, %138 : vector<1x8x8xf32>
    %140 = math.exp %139 : vector<1x8x8xf32>
    %cst_60 = arith.constant dense<0.000000e+00> : vector<1x8xf32>
    %141 = vector.multi_reduction <add>, %140, %cst_60 [2] : vector<1x8x8xf32> to vector<1x8xf32>
    %142 = vector.shape_cast %141 : vector<1x8xf32> to vector<1x8x1xf32>
    %cst_61 = arith.constant 9.99999968E-21 : f32
    %143 = vector.broadcast %cst_61 : f32 to vector<1x8x1xf32>
    %144 = arith.maximumf %142, %143 : vector<1x8x1xf32>
    %145 = arith.truncf %140 : vector<1x8x8xf32> to vector<1x8x8xbf16>
    %146 = vector.extract_strided_slice %45 {offsets = [0, 0, 24], sizes = [1, 8, 8], strides = [1, 1, 1]} : vector<1x8x32xf32> to vector<1x8x8xf32>
    %147 = arith.truncf %146 : vector<1x8x8xf32> to vector<1x8x8xbf16>
    "tpu.trace_start"() <{level = 10 : i32, message = "bqk,bkd->bqd"}> : () -> ()
    %cst_62 = arith.constant dense<0.000000e+00> : vector<1x8x8xf32>
    %148 = tpu.matmul %145, %147, %cst_62 {dimension_numbers = #tpu.dot_dimension_numbers<[2], [1], [1], [2], [0, 0, 0, 1, 1, 2], [0], [0]>} : vector<1x8x8xbf16>, vector<1x8x8xbf16>, vector<1x8x8xf32> -> vector<1x8x8xf32>
    "tpu.trace_stop"() : () -> ()
    %149 = tpu.reciprocal %144 {approx = true} : vector<1x8x1xf32> -> vector<1x8x1xf32>
    %150 = vector.broadcast %149 : vector<1x8x1xf32> to vector<1x8x8xf32>
    %151 = arith.mulf %148, %150 : vector<1x8x8xf32>
    %152 = vector.shape_cast %151 : vector<1x8x8xf32> to vector<8x8xf32>
    %c0_63 = arith.constant 0 : index
    %c24 = arith.constant 24 : index
    %153 = vector.load %arg40[%c0_63, %c24] : memref<8x32xf32, #tpu.memory_space<vmem>>, vector<8x8xf32>
    tpu.vector_store %arg40[%c0_63, %c24], %152 {strides = array<i32>} : memref<8x32xf32, #tpu.memory_space<vmem>>, vector<8x8xf32>,
    %c0_64 = arith.constant 0 : index
    %c0_65 = arith.constant 0 : index
    %154 = vector.load %arg40[%c0_64, %c0_65] : memref<8x32xf32, #tpu.memory_space<vmem>>, vector<8x32xf32>
    %155 = arith.truncf %154 : vector<8x32xf32> to vector<8x32xbf16>
    %c0_66 = arith.constant 0 : index
    %c0_67 = arith.constant 0 : index
    %156 = vector.load %arg17[%c0_66, %c0_67] : memref<32x32xbf16, #tpu.memory_space<vmem>>, vector<32x32xbf16>
    %cst_68 = arith.constant dense<0.000000e+00> : vector<8x32xf32>
    %157 = tpu.matmul %155, %156, %cst_68 {dimension_numbers = #tpu.dot_dimension_numbers<[1], [0], [0], [1], [0, 0, 1, 1], [], []>} : vector<8x32xbf16>, vector<32x32xbf16>, vector<8x32xf32> -> vector<8x32xf32>
    %c0_69 = arith.constant 0 : index
    %c0_70 = arith.constant 0 : index
    %158 = vector.load %arg18[%c0_69, %c0_70] : memref<1x32xf32, #tpu.memory_space<vmem>>, vector<1x32xf32>
    %159 = vector.broadcast %158 : vector<1x32xf32> to vector<8x32xf32>
    %160 = arith.addf %157, %159 : vector<8x32xf32>
    %161 = arith.addf %0, %160 : vector<8x32xf32>
    %c0_71 = arith.constant 0 : index
    %c0_72 = arith.constant 0 : index
    %162 = vector.load %arg31[%c0_71, %c0_72] : memref<2x32xf32, #tpu.memory_space<vmem>>, vector<1x32xf32>
    %c1 = arith.constant 1 : index
    %c0_73 = arith.constant 0 : index
    %163 = vector.load %arg31[%c1, %c0_73] : memref<2x32xf32, #tpu.memory_space<vmem>>, vector<1x32xf32>
    %cst_74 = arith.constant dense<0.000000e+00> : vector<8xf32>
    %164 = vector.multi_reduction <add>, %161, %cst_74 [1] : vector<8x32xf32> to vector<8xf32>
    %165 = vector.shape_cast %164 : vector<8xf32> to vector<8x1xf32>
    %cst_75 = arith.constant 3.200000e+01 : f32
    %166 = vector.broadcast %cst_75 : f32 to vector<8x1xf32>
    %167 = arith.divf %165, %166 : vector<8x1xf32>
    %168 = vector.broadcast %167 : vector<8x1xf32> to vector<8x32xf32>
    %169 = arith.subf %161, %168 : vector<8x32xf32>
    %170 = arith.mulf %169, %169 : vector<8x32xf32>
    %cst_76 = arith.constant dense<0.000000e+00> : vector<8xf32>
    %171 = vector.multi_reduction <add>, %170, %cst_76 [1] : vector<8x32xf32> to vector<8xf32>
    %172 = vector.shape_cast %171 : vector<8xf32> to vector<8x1xf32>
    %cst_77 = arith.constant 3.200000e+01 : f32
    %173 = vector.broadcast %cst_77 : f32 to vector<8x1xf32>
    %174 = arith.divf %172, %173 : vector<8x1xf32>
    %cst_78 = arith.constant 9.99999974E-6 : f32
    %175 = vector.broadcast %cst_78 : f32 to vector<8x1xf32>
    %176 = arith.addf %174, %175 : vector<8x1xf32>
    %177 = math.rsqrt %176 : vector<8x1xf32>
    %178 = vector.broadcast %177 : vector<8x1xf32> to vector<8x32xf32>
    %179 = arith.mulf %169, %178 : vector<8x32xf32>
    %180 = vector.broadcast %162 : vector<1x32xf32> to vector<8x32xf32>
    %181 = arith.mulf %179, %180 : vector<8x32xf32>
    %182 = vector.broadcast %163 : vector<1x32xf32> to vector<8x32xf32>
    %183 = arith.addf %181, %182 : vector<8x32xf32>
    %184 = arith.addf %183, %21 : vector<8x32xf32>
    %185 = arith.truncf %184 : vector<8x32xf32> to vector<8x32xbf16>
    %c0_79 = arith.constant 0 : index
    %c0_80 = arith.constant 0 : index
    %186 = vector.load %arg19[%c0_79, %c0_80] : memref<32x32xbf16, #tpu.memory_space<vmem>>, vector<32x32xbf16>
    %cst_81 = arith.constant dense<0.000000e+00> : vector<8x32xf32>
    %187 = tpu.matmul %185, %186, %cst_81 {dimension_numbers = #tpu.dot_dimension_numbers<[1], [0], [0], [1], [0, 0, 1, 1], [], []>} : vector<8x32xbf16>, vector<32x32xbf16>, vector<8x32xf32> -> vector<8x32xf32>
    %c0_82 = arith.constant 0 : index
    %c0_83 = arith.constant 0 : index
    %188 = vector.load %arg20[%c0_82, %c0_83] : memref<1x32xf32, #tpu.memory_space<vmem>>, vector<1x32xf32>
    %189 = vector.broadcast %188 : vector<1x32xf32> to vector<8x32xf32>
    %190 = arith.addf %187, %189 : vector<8x32xf32>
    %c0_84 = arith.constant 0 : index
    %c0_85 = arith.constant 0 : index
    %c0_86 = arith.constant 0 : index
    %191 = vector.load %arg3[%c0_84, %c0_85, %c0_86] : memref<1x8x32xf32, #tpu.memory_space<vmem>>, vector<1x8x32xf32>
    %192 = vector.shape_cast %191 : vector<1x8x32xf32> to vector<8x32xf32>
    %193 = arith.truncf %192 : vector<8x32xf32> to vector<8x32xbf16>
    %c0_87 = arith.constant 0 : index
    %c0_88 = arith.constant 0 : index
    %194 = vector.load %arg21[%c0_87, %c0_88] : memref<32x64xbf16, #tpu.memory_space<vmem>>, vector<32x64xbf16>
    %cst_89 = arith.constant dense<0.000000e+00> : vector<8x64xf32>
    %195 = tpu.matmul %193, %194, %cst_89 {dimension_numbers = #tpu.dot_dimension_numbers<[1], [0], [0], [1], [0, 0, 1, 1], [], []>} : vector<8x32xbf16>, vector<32x64xbf16>, vector<8x64xf32> -> vector<8x64xf32>
    %c0_90 = arith.constant 0 : index
    %c0_91 = arith.constant 0 : index
    %196 = vector.load %arg22[%c0_90, %c0_91] : memref<1x64xf32, #tpu.memory_space<vmem>>, vector<1x64xf32>
    %197 = vector.broadcast %196 : vector<1x64xf32> to vector<8x64xf32>
    %198 = arith.addf %195, %197 : vector<8x64xf32>
    %199 = vector.extract_strided_slice %198 {offsets = [0, 0], sizes = [8, 32], strides = [1, 1]} : vector<8x64xf32> to vector<8x32xf32>
    %200 = vector.extract_strided_slice %198 {offsets = [0, 32], sizes = [8, 32], strides = [1, 1]} : vector<8x64xf32> to vector<8x32xf32>
    %201 = vector.shape_cast %190 : vector<8x32xf32> to vector<1x8x32xf32>
    %202 = vector.shape_cast %199 : vector<8x32xf32> to vector<1x8x32xf32>
    %203 = vector.shape_cast %200 : vector<8x32xf32> to vector<1x8x32xf32>
    %204 = vector.extract_strided_slice %201 {offsets = [0, 0, 0], sizes = [1, 8, 8], strides = [1, 1, 1]} : vector<1x8x32xf32> to vector<1x8x8xf32>
    %205 = arith.truncf %204 : vector<1x8x8xf32> to vector<1x8x8xbf16>
    %206 = vector.extract_strided_slice %202 {offsets = [0, 0, 0], sizes = [1, 8, 8], strides = [1, 1, 1]} : vector<1x8x32xf32> to vector<1x8x8xf32>
    %207 = arith.truncf %206 : vector<1x8x8xf32> to vector<1x8x8xbf16>
    "tpu.trace_start"() <{level = 10 : i32, message = "bqd,bkd->bqk"}> : () -> ()
    %cst_92 = arith.constant dense<0.000000e+00> : vector<1x8x8xf32>
    %208 = tpu.matmul %205, %207, %cst_92 {dimension_numbers = #tpu.dot_dimension_numbers<[2], [2], [1], [1], [0, 0, 0, 1, 1, 1], [0], [0]>} : vector<1x8x8xbf16>, vector<1x8x8xbf16>, vector<1x8x8xf32> -> vector<1x8x8xf32>
    "tpu.trace_stop"() : () -> ()
    %cst_93 = arith.constant 0.353553385 : f32
    %209 = vector.broadcast %cst_93 : f32 to vector<1x8x8xf32>
    %210 = arith.mulf %208, %209 : vector<1x8x8xf32>
    %211 = vector.broadcast %27 : vector<1x1x8xf32> to vector<1x8x8xf32>
    %212 = arith.addf %210, %211 : vector<1x8x8xf32>
    %cst_94 = arith.constant dense<0xFF800000> : vector<1x8xf32>
    %213 = vector.multi_reduction <maximumf>, %212, %cst_94 [2] : vector<1x8x8xf32> to vector<1x8xf32>
    %214 = vector.shape_cast %213 : vector<1x8xf32> to vector<1x8x1xf32>
    %215 = vector.broadcast %214 : vector<1x8x1xf32> to vector<1x8x8xf32>
    %216 = arith.subf %212, %215 : vector<1x8x8xf32>
    %217 = math.exp %216 : vector<1x8x8xf32>
    %cst_95 = arith.constant dense<0.000000e+00> : vector<1x8xf32>
    %218 = vector.multi_reduction <add>, %217, %cst_95 [2] : vector<1x8x8xf32> to vector<1x8xf32>
    %219 = vector.shape_cast %218 : vector<1x8xf32> to vector<1x8x1xf32>
    %cst_96 = arith.constant 9.99999968E-21 : f32
    %220 = vector.broadcast %cst_96 : f32 to vector<1x8x1xf32>
    %221 = arith.maximumf %219, %220 : vector<1x8x1xf32>
    %222 = arith.truncf %217 : vector<1x8x8xf32> to vector<1x8x8xbf16>
    %223 = vector.extract_strided_slice %203 {offsets = [0, 0, 0], sizes = [1, 8, 8], strides = [1, 1, 1]} : vector<1x8x32xf32> to vector<1x8x8xf32>
    %224 = arith.truncf %223 : vector<1x8x8xf32> to vector<1x8x8xbf16>
    "tpu.trace_start"() <{level = 10 : i32, message = "bqk,bkd->bqd"}> : () -> ()
    %cst_97 = arith.constant dense<0.000000e+00> : vector<1x8x8xf32>
    %225 = tpu.matmul %222, %224, %cst_97 {dimension_numbers = #tpu.dot_dimension_numbers<[2], [1], [1], [2], [0, 0, 0, 1, 1, 2], [0], [0]>} : vector<1x8x8xbf16>, vector<1x8x8xbf16>, vector<1x8x8xf32> -> vector<1x8x8xf32>
    "tpu.trace_stop"() : () -> ()
    %226 = tpu.reciprocal %221 {approx = true} : vector<1x8x1xf32> -> vector<1x8x1xf32>
    %227 = vector.broadcast %226 : vector<1x8x1xf32> to vector<1x8x8xf32>
    %228 = arith.mulf %225, %227 : vector<1x8x8xf32>
    %229 = vector.shape_cast %228 : vector<1x8x8xf32> to vector<8x8xf32>
    %c0_98 = arith.constant 0 : index
    %c0_99 = arith.constant 0 : index
    %230 = vector.load %arg40[%c0_98, %c0_99] : memref<8x32xf32, #tpu.memory_space<vmem>>, vector<8x8xf32>
    tpu.vector_store %arg40[%c0_98, %c0_99], %229 {strides = array<i32>} : memref<8x32xf32, #tpu.memory_space<vmem>>, vector<8x8xf32>,
    %231 = vector.extract_strided_slice %201 {offsets = [0, 0, 8], sizes = [1, 8, 8], strides = [1, 1, 1]} : vector<1x8x32xf32> to vector<1x8x8xf32>
    %232 = arith.truncf %231 : vector<1x8x8xf32> to vector<1x8x8xbf16>
    %233 = vector.extract_strided_slice %202 {offsets = [0, 0, 8], sizes = [1, 8, 8], strides = [1, 1, 1]} : vector<1x8x32xf32> to vector<1x8x8xf32>
    %234 = arith.truncf %233 : vector<1x8x8xf32> to vector<1x8x8xbf16>
    "tpu.trace_start"() <{level = 10 : i32, message = "bqd,bkd->bqk"}> : () -> ()
    %cst_100 = arith.constant dense<0.000000e+00> : vector<1x8x8xf32>
    %235 = tpu.matmul %232, %234, %cst_100 {dimension_numbers = #tpu.dot_dimension_numbers<[2], [2], [1], [1], [0, 0, 0, 1, 1, 1], [0], [0]>} : vector<1x8x8xbf16>, vector<1x8x8xbf16>, vector<1x8x8xf32> -> vector<1x8x8xf32>
    "tpu.trace_stop"() : () -> ()
    %cst_101 = arith.constant 0.353553385 : f32
    %236 = vector.broadcast %cst_101 : f32 to vector<1x8x8xf32>
    %237 = arith.mulf %235, %236 : vector<1x8x8xf32>
    %238 = vector.broadcast %27 : vector<1x1x8xf32> to vector<1x8x8xf32>
    %239 = arith.addf %237, %238 : vector<1x8x8xf32>
    %cst_102 = arith.constant dense<0xFF800000> : vector<1x8xf32>
    %240 = vector.multi_reduction <maximumf>, %239, %cst_102 [2] : vector<1x8x8xf32> to vector<1x8xf32>
    %241 = vector.shape_cast %240 : vector<1x8xf32> to vector<1x8x1xf32>
    %242 = vector.broadcast %241 : vector<1x8x1xf32> to vector<1x8x8xf32>
    %243 = arith.subf %239, %242 : vector<1x8x8xf32>
    %244 = math.exp %243 : vector<1x8x8xf32>
    %cst_103 = arith.constant dense<0.000000e+00> : vector<1x8xf32>
    %245 = vector.multi_reduction <add>, %244, %cst_103 [2] : vector<1x8x8xf32> to vector<1x8xf32>
    %246 = vector.shape_cast %245 : vector<1x8xf32> to vector<1x8x1xf32>
    %cst_104 = arith.constant 9.99999968E-21 : f32
    %247 = vector.broadcast %cst_104 : f32 to vector<1x8x1xf32>
    %248 = arith.maximumf %246, %247 : vector<1x8x1xf32>
    %249 = arith.truncf %244 : vector<1x8x8xf32> to vector<1x8x8xbf16>
    %250 = vector.extract_strided_slice %203 {offsets = [0, 0, 8], sizes = [1, 8, 8], strides = [1, 1, 1]} : vector<1x8x32xf32> to vector<1x8x8xf32>
    %251 = arith.truncf %250 : vector<1x8x8xf32> to vector<1x8x8xbf16>
    "tpu.trace_start"() <{level = 10 : i32, message = "bqk,bkd->bqd"}> : () -> ()
    %cst_105 = arith.constant dense<0.000000e+00> : vector<1x8x8xf32>
    %252 = tpu.matmul %249, %251, %cst_105 {dimension_numbers = #tpu.dot_dimension_numbers<[2], [1], [1], [2], [0, 0, 0, 1, 1, 2], [0], [0]>} : vector<1x8x8xbf16>, vector<1x8x8xbf16>, vector<1x8x8xf32> -> vector<1x8x8xf32>
    "tpu.trace_stop"() : () -> ()
    %253 = tpu.reciprocal %248 {approx = true} : vector<1x8x1xf32> -> vector<1x8x1xf32>
    %254 = vector.broadcast %253 : vector<1x8x1xf32> to vector<1x8x8xf32>
    %255 = arith.mulf %252, %254 : vector<1x8x8xf32>
    %256 = vector.shape_cast %255 : vector<1x8x8xf32> to vector<8x8xf32>
    %c0_106 = arith.constant 0 : index
    %c8_107 = arith.constant 8 : index
    %257 = vector.load %arg40[%c0_106, %c8_107] : memref<8x32xf32, #tpu.memory_space<vmem>>, vector<8x8xf32>
    tpu.vector_store %arg40[%c0_106, %c8_107], %256 {strides = array<i32>} : memref<8x32xf32, #tpu.memory_space<vmem>>, vector<8x8xf32>,
    %258 = vector.extract_strided_slice %201 {offsets = [0, 0, 16], sizes = [1, 8, 8], strides = [1, 1, 1]} : vector<1x8x32xf32> to vector<1x8x8xf32>
    %259 = arith.truncf %258 : vector<1x8x8xf32> to vector<1x8x8xbf16>
    %260 = vector.extract_strided_slice %202 {offsets = [0, 0, 16], sizes = [1, 8, 8], strides = [1, 1, 1]} : vector<1x8x32xf32> to vector<1x8x8xf32>
    %261 = arith.truncf %260 : vector<1x8x8xf32> to vector<1x8x8xbf16>
    "tpu.trace_start"() <{level = 10 : i32, message = "bqd,bkd->bqk"}> : () -> ()
    %cst_108 = arith.constant dense<0.000000e+00> : vector<1x8x8xf32>
    %262 = tpu.matmul %259, %261, %cst_108 {dimension_numbers = #tpu.dot_dimension_numbers<[2], [2], [1], [1], [0, 0, 0, 1, 1, 1], [0], [0]>} : vector<1x8x8xbf16>, vector<1x8x8xbf16>, vector<1x8x8xf32> -> vector<1x8x8xf32>
    "tpu.trace_stop"() : () -> ()
    %cst_109 = arith.constant 0.353553385 : f32
    %263 = vector.broadcast %cst_109 : f32 to vector<1x8x8xf32>
    %264 = arith.mulf %262, %263 : vector<1x8x8xf32>
    %265 = vector.broadcast %27 : vector<1x1x8xf32> to vector<1x8x8xf32>
    %266 = arith.addf %264, %265 : vector<1x8x8xf32>
    %cst_110 = arith.constant dense<0xFF800000> : vector<1x8xf32>
    %267 = vector.multi_reduction <maximumf>, %266, %cst_110 [2] : vector<1x8x8xf32> to vector<1x8xf32>
    %268 = vector.shape_cast %267 : vector<1x8xf32> to vector<1x8x1xf32>
    %269 = vector.broadcast %268 : vector<1x8x1xf32> to vector<1x8x8xf32>
    %270 = arith.subf %266, %269 : vector<1x8x8xf32>
    %271 = math.exp %270 : vector<1x8x8xf32>
    %cst_111 = arith.constant dense<0.000000e+00> : vector<1x8xf32>
    %272 = vector.multi_reduction <add>, %271, %cst_111 [2] : vector<1x8x8xf32> to vector<1x8xf32>
    %273 = vector.shape_cast %272 : vector<1x8xf32> to vector<1x8x1xf32>
    %cst_112 = arith.constant 9.99999968E-21 : f32
    %274 = vector.broadcast %cst_112 : f32 to vector<1x8x1xf32>
    %275 = arith.maximumf %273, %274 : vector<1x8x1xf32>
    %276 = arith.truncf %271 : vector<1x8x8xf32> to vector<1x8x8xbf16>
    %277 = vector.extract_strided_slice %203 {offsets = [0, 0, 16], sizes = [1, 8, 8], strides = [1, 1, 1]} : vector<1x8x32xf32> to vector<1x8x8xf32>
    %278 = arith.truncf %277 : vector<1x8x8xf32> to vector<1x8x8xbf16>
    "tpu.trace_start"() <{level = 10 : i32, message = "bqk,bkd->bqd"}> : () -> ()
    %cst_113 = arith.constant dense<0.000000e+00> : vector<1x8x8xf32>
    %279 = tpu.matmul %276, %278, %cst_113 {dimension_numbers = #tpu.dot_dimension_numbers<[2], [1], [1], [2], [0, 0, 0, 1, 1, 2], [0], [0]>} : vector<1x8x8xbf16>, vector<1x8x8xbf16>, vector<1x8x8xf32> -> vector<1x8x8xf32>
    "tpu.trace_stop"() : () -> ()
    %280 = tpu.reciprocal %275 {approx = true} : vector<1x8x1xf32> -> vector<1x8x1xf32>
    %281 = vector.broadcast %280 : vector<1x8x1xf32> to vector<1x8x8xf32>
    %282 = arith.mulf %279, %281 : vector<1x8x8xf32>
    %283 = vector.shape_cast %282 : vector<1x8x8xf32> to vector<8x8xf32>
    %c0_114 = arith.constant 0 : index
    %c16_115 = arith.constant 16 : index
    %284 = vector.load %arg40[%c0_114, %c16_115] : memref<8x32xf32, #tpu.memory_space<vmem>>, vector<8x8xf32>
    tpu.vector_store %arg40[%c0_114, %c16_115], %283 {strides = array<i32>} : memref<8x32xf32, #tpu.memory_space<vmem>>, vector<8x8xf32>,
    %285 = vector.extract_strided_slice %201 {offsets = [0, 0, 24], sizes = [1, 8, 8], strides = [1, 1, 1]} : vector<1x8x32xf32> to vector<1x8x8xf32>
    %286 = arith.truncf %285 : vector<1x8x8xf32> to vector<1x8x8xbf16>
    %287 = vector.extract_strided_slice %202 {offsets = [0, 0, 24], sizes = [1, 8, 8], strides = [1, 1, 1]} : vector<1x8x32xf32> to vector<1x8x8xf32>
    %288 = arith.truncf %287 : vector<1x8x8xf32> to vector<1x8x8xbf16>
    "tpu.trace_start"() <{level = 10 : i32, message = "bqd,bkd->bqk"}> : () -> ()
    %cst_116 = arith.constant dense<0.000000e+00> : vector<1x8x8xf32>
    %289 = tpu.matmul %286, %288, %cst_116 {dimension_numbers = #tpu.dot_dimension_numbers<[2], [2], [1], [1], [0, 0, 0, 1, 1, 1], [0], [0]>} : vector<1x8x8xbf16>, vector<1x8x8xbf16>, vector<1x8x8xf32> -> vector<1x8x8xf32>
    "tpu.trace_stop"() : () -> ()
    %cst_117 = arith.constant 0.353553385 : f32
    %290 = vector.broadcast %cst_117 : f32 to vector<1x8x8xf32>
    %291 = arith.mulf %289, %290 : vector<1x8x8xf32>
    %292 = vector.broadcast %27 : vector<1x1x8xf32> to vector<1x8x8xf32>
    %293 = arith.addf %291, %292 : vector<1x8x8xf32>
    %cst_118 = arith.constant dense<0xFF800000> : vector<1x8xf32>
    %294 = vector.multi_reduction <maximumf>, %293, %cst_118 [2] : vector<1x8x8xf32> to vector<1x8xf32>
    %295 = vector.shape_cast %294 : vector<1x8xf32> to vector<1x8x1xf32>
    %296 = vector.broadcast %295 : vector<1x8x1xf32> to vector<1x8x8xf32>
    %297 = arith.subf %293, %296 : vector<1x8x8xf32>
    %298 = math.exp %297 : vector<1x8x8xf32>
    %cst_119 = arith.constant dense<0.000000e+00> : vector<1x8xf32>
    %299 = vector.multi_reduction <add>, %298, %cst_119 [2] : vector<1x8x8xf32> to vector<1x8xf32>
    %300 = vector.shape_cast %299 : vector<1x8xf32> to vector<1x8x1xf32>
    %cst_120 = arith.constant 9.99999968E-21 : f32
    %301 = vector.broadcast %cst_120 : f32 to vector<1x8x1xf32>
    %302 = arith.maximumf %300, %301 : vector<1x8x1xf32>
    %303 = arith.truncf %298 : vector<1x8x8xf32> to vector<1x8x8xbf16>
    %304 = vector.extract_strided_slice %203 {offsets = [0, 0, 24], sizes = [1, 8, 8], strides = [1, 1, 1]} : vector<1x8x32xf32> to vector<1x8x8xf32>
    %305 = arith.truncf %304 : vector<1x8x8xf32> to vector<1x8x8xbf16>
    "tpu.trace_start"() <{level = 10 : i32, message = "bqk,bkd->bqd"}> : () -> ()
    %cst_121 = arith.constant dense<0.000000e+00> : vector<1x8x8xf32>
    %306 = tpu.matmul %303, %305, %cst_121 {dimension_numbers = #tpu.dot_dimension_numbers<[2], [1], [1], [2], [0, 0, 0, 1, 1, 2], [0], [0]>} : vector<1x8x8xbf16>, vector<1x8x8xbf16>, vector<1x8x8xf32> -> vector<1x8x8xf32>
    "tpu.trace_stop"() : () -> ()
    %307 = tpu.reciprocal %302 {approx = true} : vector<1x8x1xf32> -> vector<1x8x1xf32>
    %308 = vector.broadcast %307 : vector<1x8x1xf32> to vector<1x8x8xf32>
    %309 = arith.mulf %306, %308 : vector<1x8x8xf32>
    %310 = vector.shape_cast %309 : vector<1x8x8xf32> to vector<8x8xf32>
    %c0_122 = arith.constant 0 : index
    %c24_123 = arith.constant 24 : index
    %311 = vector.load %arg40[%c0_122, %c24_123] : memref<8x32xf32, #tpu.memory_space<vmem>>, vector<8x8xf32>
    tpu.vector_store %arg40[%c0_122, %c24_123], %310 {strides = array<i32>} : memref<8x32xf32, #tpu.memory_space<vmem>>, vector<8x8xf32>,
    %c0_124 = arith.constant 0 : index
    %c0_125 = arith.constant 0 : index
    %312 = vector.load %arg40[%c0_124, %c0_125] : memref<8x32xf32, #tpu.memory_space<vmem>>, vector<8x32xf32>
    %313 = arith.truncf %312 : vector<8x32xf32> to vector<8x32xbf16>
    %c0_126 = arith.constant 0 : index
    %c0_127 = arith.constant 0 : index
    %314 = vector.load %arg23[%c0_126, %c0_127] : memref<32x32xbf16, #tpu.memory_space<vmem>>, vector<32x32xbf16>
    %cst_128 = arith.constant dense<0.000000e+00> : vector<8x32xf32>
    %315 = tpu.matmul %313, %314, %cst_128 {dimension_numbers = #tpu.dot_dimension_numbers<[1], [0], [0], [1], [0, 0, 1, 1], [], []>} : vector<8x32xbf16>, vector<32x32xbf16>, vector<8x32xf32> -> vector<8x32xf32>
    %c0_129 = arith.constant 0 : index
    %c0_130 = arith.constant 0 : index
    %316 = vector.load %arg24[%c0_129, %c0_130] : memref<1x32xf32, #tpu.memory_space<vmem>>, vector<1x32xf32>
    %317 = vector.broadcast %316 : vector<1x32xf32> to vector<8x32xf32>
    %318 = arith.addf %315, %317 : vector<8x32xf32>
    %319 = arith.addf %183, %318 : vector<8x32xf32>
    %c0_131 = arith.constant 0 : index
    %c0_132 = arith.constant 0 : index
    %320 = vector.load %arg32[%c0_131, %c0_132] : memref<2x32xf32, #tpu.memory_space<vmem>>, vector<1x32xf32>
    %c1_133 = arith.constant 1 : index
    %c0_134 = arith.constant 0 : index
    %321 = vector.load %arg32[%c1_133, %c0_134] : memref<2x32xf32, #tpu.memory_space<vmem>>, vector<1x32xf32>
    %cst_135 = arith.constant dense<0.000000e+00> : vector<8xf32>
    %322 = vector.multi_reduction <add>, %319, %cst_135 [1] : vector<8x32xf32> to vector<8xf32>
    %323 = vector.shape_cast %322 : vector<8xf32> to vector<8x1xf32>
    %cst_136 = arith.constant 3.200000e+01 : f32
    %324 = vector.broadcast %cst_136 : f32 to vector<8x1xf32>
    %325 = arith.divf %323, %324 : vector<8x1xf32>
    %326 = vector.broadcast %325 : vector<8x1xf32> to vector<8x32xf32>
    %327 = arith.subf %319, %326 : vector<8x32xf32>
    %328 = arith.mulf %327, %327 : vector<8x32xf32>
    %cst_137 = arith.constant dense<0.000000e+00> : vector<8xf32>
    %329 = vector.multi_reduction <add>, %328, %cst_137 [1] : vector<8x32xf32> to vector<8xf32>
    %330 = vector.shape_cast %329 : vector<8xf32> to vector<8x1xf32>
    %cst_138 = arith.constant 3.200000e+01 : f32
    %331 = vector.broadcast %cst_138 : f32 to vector<8x1xf32>
    %332 = arith.divf %330, %331 : vector<8x1xf32>
    %cst_139 = arith.constant 9.99999974E-6 : f32
    %333 = vector.broadcast %cst_139 : f32 to vector<8x1xf32>
    %334 = arith.addf %332, %333 : vector<8x1xf32>
    %335 = math.rsqrt %334 : vector<8x1xf32>
    %336 = vector.broadcast %335 : vector<8x1xf32> to vector<8x32xf32>
    %337 = arith.mulf %327, %336 : vector<8x32xf32>
    %338 = vector.broadcast %320 : vector<1x32xf32> to vector<8x32xf32>
    %339 = arith.mulf %337, %338 : vector<8x32xf32>
    %340 = vector.broadcast %321 : vector<1x32xf32> to vector<8x32xf32>
    %341 = arith.addf %339, %340 : vector<8x32xf32>
    %342 = arith.addf %341, %21 : vector<8x32xf32>
    %343 = arith.truncf %342 : vector<8x32xf32> to vector<8x32xbf16>
    %c0_140 = arith.constant 0 : index
    %c0_141 = arith.constant 0 : index
    %344 = vector.load %arg25[%c0_140, %c0_141] : memref<32x32xbf16, #tpu.memory_space<vmem>>, vector<32x32xbf16>
    %cst_142 = arith.constant dense<0.000000e+00> : vector<8x32xf32>
    %345 = tpu.matmul %343, %344, %cst_142 {dimension_numbers = #tpu.dot_dimension_numbers<[1], [0], [0], [1], [0, 0, 1, 1], [], []>} : vector<8x32xbf16>, vector<32x32xbf16>, vector<8x32xf32> -> vector<8x32xf32>
    %c0_143 = arith.constant 0 : index
    %c0_144 = arith.constant 0 : index
    %346 = vector.load %arg26[%c0_143, %c0_144] : memref<1x32xf32, #tpu.memory_space<vmem>>, vector<1x32xf32>
    %347 = vector.broadcast %346 : vector<1x32xf32> to vector<8x32xf32>
    %348 = arith.addf %345, %347 : vector<8x32xf32>
    %c0_145 = arith.constant 0 : index
    %c0_146 = arith.constant 0 : index
    %c0_147 = arith.constant 0 : index
    %349 = vector.load %arg2[%c0_145, %c0_146, %c0_147] : memref<1x16x32xf32, #tpu.memory_space<vmem>>, vector<1x16x32xf32>
    %350 = vector.shape_cast %349 : vector<1x16x32xf32> to vector<16x32xf32>
    %351 = arith.truncf %350 : vector<16x32xf32> to vector<16x32xbf16>
    %c0_148 = arith.constant 0 : index
    %c0_149 = arith.constant 0 : index
    %352 = vector.load %arg27[%c0_148, %c0_149] : memref<32x64xbf16, #tpu.memory_space<vmem>>, vector<32x64xbf16>
    %cst_150 = arith.constant dense<0.000000e+00> : vector<16x64xf32>
    %353 = tpu.matmul %351, %352, %cst_150 {dimension_numbers = #tpu.dot_dimension_numbers<[1], [0], [0], [1], [0, 0, 1, 1], [], []>} : vector<16x32xbf16>, vector<32x64xbf16>, vector<16x64xf32> -> vector<16x64xf32>
    %c0_151 = arith.constant 0 : index
    %c0_152 = arith.constant 0 : index
    %354 = vector.load %arg28[%c0_151, %c0_152] : memref<1x64xf32, #tpu.memory_space<vmem>>, vector<1x64xf32>
    %355 = vector.broadcast %354 : vector<1x64xf32> to vector<16x64xf32>
    %356 = arith.addf %353, %355 : vector<16x64xf32>
    %357 = vector.extract_strided_slice %356 {offsets = [0, 0], sizes = [16, 32], strides = [1, 1]} : vector<16x64xf32> to vector<16x32xf32>
    %358 = vector.extract_strided_slice %356 {offsets = [0, 32], sizes = [16, 32], strides = [1, 1]} : vector<16x64xf32> to vector<16x32xf32>
    %359 = vector.shape_cast %348 : vector<8x32xf32> to vector<1x8x32xf32>
    %360 = vector.shape_cast %357 : vector<16x32xf32> to vector<1x16x32xf32>
    %361 = vector.shape_cast %358 : vector<16x32xf32> to vector<1x16x32xf32>
    %362 = vector.extract_strided_slice %359 {offsets = [0, 0, 0], sizes = [1, 8, 8], strides = [1, 1, 1]} : vector<1x8x32xf32> to vector<1x8x8xf32>
    %363 = arith.truncf %362 : vector<1x8x8xf32> to vector<1x8x8xbf16>
    %364 = vector.extract_strided_slice %360 {offsets = [0, 0, 0], sizes = [1, 16, 8], strides = [1, 1, 1]} : vector<1x16x32xf32> to vector<1x16x8xf32>
    %365 = arith.truncf %364 : vector<1x16x8xf32> to vector<1x16x8xbf16>
    "tpu.trace_start"() <{level = 10 : i32, message = "bqd,bkd->bqk"}> : () -> ()
    %cst_153 = arith.constant dense<0.000000e+00> : vector<1x8x16xf32>
    %366 = tpu.matmul %363, %365, %cst_153 {dimension_numbers = #tpu.dot_dimension_numbers<[2], [2], [1], [1], [0, 0, 0, 1, 1, 1], [0], [0]>} : vector<1x8x8xbf16>, vector<1x16x8xbf16>, vector<1x8x16xf32> -> vector<1x8x16xf32>
    "tpu.trace_stop"() : () -> ()
    %cst_154 = arith.constant 0.353553385 : f32
    %367 = vector.broadcast %cst_154 : f32 to vector<1x8x16xf32>
    %368 = arith.mulf %366, %367 : vector<1x8x16xf32>
    %cst_155 = arith.constant dense<0xFF800000> : vector<1x8xf32>
    %369 = vector.multi_reduction <maximumf>, %368, %cst_155 [2] : vector<1x8x16xf32> to vector<1x8xf32>
    %370 = vector.shape_cast %369 : vector<1x8xf32> to vector<1x8x1xf32>
    %371 = vector.broadcast %370 : vector<1x8x1xf32> to vector<1x8x16xf32>
    %372 = arith.subf %368, %371 : vector<1x8x16xf32>
    %373 = math.exp %372 : vector<1x8x16xf32>
    %cst_156 = arith.constant dense<0.000000e+00> : vector<1x8xf32>
    %374 = vector.multi_reduction <add>, %373, %cst_156 [2] : vector<1x8x16xf32> to vector<1x8xf32>
    %375 = vector.shape_cast %374 : vector<1x8xf32> to vector<1x8x1xf32>
    %cst_157 = arith.constant 9.99999968E-21 : f32
    %376 = vector.broadcast %cst_157 : f32 to vector<1x8x1xf32>
    %377 = arith.maximumf %375, %376 : vector<1x8x1xf32>
    %378 = arith.truncf %373 : vector<1x8x16xf32> to vector<1x8x16xbf16>
    %379 = vector.extract_strided_slice %361 {offsets = [0, 0, 0], sizes = [1, 16, 8], strides = [1, 1, 1]} : vector<1x16x32xf32> to vector<1x16x8xf32>
    %380 = arith.truncf %379 : vector<1x16x8xf32> to vector<1x16x8xbf16>
    "tpu.trace_start"() <{level = 10 : i32, message = "bqk,bkd->bqd"}> : () -> ()
    %cst_158 = arith.constant dense<0.000000e+00> : vector<1x8x8xf32>
    %381 = tpu.matmul %378, %380, %cst_158 {dimension_numbers = #tpu.dot_dimension_numbers<[2], [1], [1], [2], [0, 0, 0, 1, 1, 2], [0], [0]>} : vector<1x8x16xbf16>, vector<1x16x8xbf16>, vector<1x8x8xf32> -> vector<1x8x8xf32>
    "tpu.trace_stop"() : () -> ()
    %382 = tpu.reciprocal %377 {approx = true} : vector<1x8x1xf32> -> vector<1x8x1xf32>
    %383 = vector.broadcast %382 : vector<1x8x1xf32> to vector<1x8x8xf32>
    %384 = arith.mulf %381, %383 : vector<1x8x8xf32>
    %385 = vector.shape_cast %384 : vector<1x8x8xf32> to vector<8x8xf32>
    %c0_159 = arith.constant 0 : index
    %c0_160 = arith.constant 0 : index
    %386 = vector.load %arg40[%c0_159, %c0_160] : memref<8x32xf32, #tpu.memory_space<vmem>>, vector<8x8xf32>
    tpu.vector_store %arg40[%c0_159, %c0_160], %385 {strides = array<i32>} : memref<8x32xf32, #tpu.memory_space<vmem>>, vector<8x8xf32>,
    %387 = vector.extract_strided_slice %359 {offsets = [0, 0, 8], sizes = [1, 8, 8], strides = [1, 1, 1]} : vector<1x8x32xf32> to vector<1x8x8xf32>
    %388 = arith.truncf %387 : vector<1x8x8xf32> to vector<1x8x8xbf16>
    %389 = vector.extract_strided_slice %360 {offsets = [0, 0, 8], sizes = [1, 16, 8], strides = [1, 1, 1]} : vector<1x16x32xf32> to vector<1x16x8xf32>
    %390 = arith.truncf %389 : vector<1x16x8xf32> to vector<1x16x8xbf16>
    "tpu.trace_start"() <{level = 10 : i32, message = "bqd,bkd->bqk"}> : () -> ()
    %cst_161 = arith.constant dense<0.000000e+00> : vector<1x8x16xf32>
    %391 = tpu.matmul %388, %390, %cst_161 {dimension_numbers = #tpu.dot_dimension_numbers<[2], [2], [1], [1], [0, 0, 0, 1, 1, 1], [0], [0]>} : vector<1x8x8xbf16>, vector<1x16x8xbf16>, vector<1x8x16xf32> -> vector<1x8x16xf32>
    "tpu.trace_stop"() : () -> ()
    %cst_162 = arith.constant 0.353553385 : f32
    %392 = vector.broadcast %cst_162 : f32 to vector<1x8x16xf32>
    %393 = arith.mulf %391, %392 : vector<1x8x16xf32>
    %cst_163 = arith.constant dense<0xFF800000> : vector<1x8xf32>
    %394 = vector.multi_reduction <maximumf>, %393, %cst_163 [2] : vector<1x8x16xf32> to vector<1x8xf32>
    %395 = vector.shape_cast %394 : vector<1x8xf32> to vector<1x8x1xf32>
    %396 = vector.broadcast %395 : vector<1x8x1xf32> to vector<1x8x16xf32>
    %397 = arith.subf %393, %396 : vector<1x8x16xf32>
    %398 = math.exp %397 : vector<1x8x16xf32>
    %cst_164 = arith.constant dense<0.000000e+00> : vector<1x8xf32>
    %399 = vector.multi_reduction <add>, %398, %cst_164 [2] : vector<1x8x16xf32> to vector<1x8xf32>
    %400 = vector.shape_cast %399 : vector<1x8xf32> to vector<1x8x1xf32>
    %cst_165 = arith.constant 9.99999968E-21 : f32
    %401 = vector.broadcast %cst_165 : f32 to vector<1x8x1xf32>
    %402 = arith.maximumf %400, %401 : vector<1x8x1xf32>
    %403 = arith.truncf %398 : vector<1x8x16xf32> to vector<1x8x16xbf16>
    %404 = vector.extract_strided_slice %361 {offsets = [0, 0, 8], sizes = [1, 16, 8], strides = [1, 1, 1]} : vector<1x16x32xf32> to vector<1x16x8xf32>
    %405 = arith.truncf %404 : vector<1x16x8xf32> to vector<1x16x8xbf16>
    "tpu.trace_start"() <{level = 10 : i32, message = "bqk,bkd->bqd"}> : () -> ()
    %cst_166 = arith.constant dense<0.000000e+00> : vector<1x8x8xf32>
    %406 = tpu.matmul %403, %405, %cst_166 {dimension_numbers = #tpu.dot_dimension_numbers<[2], [1], [1], [2], [0, 0, 0, 1, 1, 2], [0], [0]>} : vector<1x8x16xbf16>, vector<1x16x8xbf16>, vector<1x8x8xf32> -> vector<1x8x8xf32>
    "tpu.trace_stop"() : () -> ()
    %407 = tpu.reciprocal %402 {approx = true} : vector<1x8x1xf32> -> vector<1x8x1xf32>
    %408 = vector.broadcast %407 : vector<1x8x1xf32> to vector<1x8x8xf32>
    %409 = arith.mulf %406, %408 : vector<1x8x8xf32>
    %410 = vector.shape_cast %409 : vector<1x8x8xf32> to vector<8x8xf32>
    %c0_167 = arith.constant 0 : index
    %c8_168 = arith.constant 8 : index
    %411 = vector.load %arg40[%c0_167, %c8_168] : memref<8x32xf32, #tpu.memory_space<vmem>>, vector<8x8xf32>
    tpu.vector_store %arg40[%c0_167, %c8_168], %410 {strides = array<i32>} : memref<8x32xf32, #tpu.memory_space<vmem>>, vector<8x8xf32>,
    %412 = vector.extract_strided_slice %359 {offsets = [0, 0, 16], sizes = [1, 8, 8], strides = [1, 1, 1]} : vector<1x8x32xf32> to vector<1x8x8xf32>
    %413 = arith.truncf %412 : vector<1x8x8xf32> to vector<1x8x8xbf16>
    %414 = vector.extract_strided_slice %360 {offsets = [0, 0, 16], sizes = [1, 16, 8], strides = [1, 1, 1]} : vector<1x16x32xf32> to vector<1x16x8xf32>
    %415 = arith.truncf %414 : vector<1x16x8xf32> to vector<1x16x8xbf16>
    "tpu.trace_start"() <{level = 10 : i32, message = "bqd,bkd->bqk"}> : () -> ()
    %cst_169 = arith.constant dense<0.000000e+00> : vector<1x8x16xf32>
    %416 = tpu.matmul %413, %415, %cst_169 {dimension_numbers = #tpu.dot_dimension_numbers<[2], [2], [1], [1], [0, 0, 0, 1, 1, 1], [0], [0]>} : vector<1x8x8xbf16>, vector<1x16x8xbf16>, vector<1x8x16xf32> -> vector<1x8x16xf32>
    "tpu.trace_stop"() : () -> ()
    %cst_170 = arith.constant 0.353553385 : f32
    %417 = vector.broadcast %cst_170 : f32 to vector<1x8x16xf32>
    %418 = arith.mulf %416, %417 : vector<1x8x16xf32>
    %cst_171 = arith.constant dense<0xFF800000> : vector<1x8xf32>
    %419 = vector.multi_reduction <maximumf>, %418, %cst_171 [2] : vector<1x8x16xf32> to vector<1x8xf32>
    %420 = vector.shape_cast %419 : vector<1x8xf32> to vector<1x8x1xf32>
    %421 = vector.broadcast %420 : vector<1x8x1xf32> to vector<1x8x16xf32>
    %422 = arith.subf %418, %421 : vector<1x8x16xf32>
    %423 = math.exp %422 : vector<1x8x16xf32>
    %cst_172 = arith.constant dense<0.000000e+00> : vector<1x8xf32>
    %424 = vector.multi_reduction <add>, %423, %cst_172 [2] : vector<1x8x16xf32> to vector<1x8xf32>
    %425 = vector.shape_cast %424 : vector<1x8xf32> to vector<1x8x1xf32>
    %cst_173 = arith.constant 9.99999968E-21 : f32
    %426 = vector.broadcast %cst_173 : f32 to vector<1x8x1xf32>
    %427 = arith.maximumf %425, %426 : vector<1x8x1xf32>
    %428 = arith.truncf %423 : vector<1x8x16xf32> to vector<1x8x16xbf16>
    %429 = vector.extract_strided_slice %361 {offsets = [0, 0, 16], sizes = [1, 16, 8], strides = [1, 1, 1]} : vector<1x16x32xf32> to vector<1x16x8xf32>
    %430 = arith.truncf %429 : vector<1x16x8xf32> to vector<1x16x8xbf16>
    "tpu.trace_start"() <{level = 10 : i32, message = "bqk,bkd->bqd"}> : () -> ()
    %cst_174 = arith.constant dense<0.000000e+00> : vector<1x8x8xf32>
    %431 = tpu.matmul %428, %430, %cst_174 {dimension_numbers = #tpu.dot_dimension_numbers<[2], [1], [1], [2], [0, 0, 0, 1, 1, 2], [0], [0]>} : vector<1x8x16xbf16>, vector<1x16x8xbf16>, vector<1x8x8xf32> -> vector<1x8x8xf32>
    "tpu.trace_stop"() : () -> ()
    %432 = tpu.reciprocal %427 {approx = true} : vector<1x8x1xf32> -> vector<1x8x1xf32>
    %433 = vector.broadcast %432 : vector<1x8x1xf32> to vector<1x8x8xf32>
    %434 = arith.mulf %431, %433 : vector<1x8x8xf32>
    %435 = vector.shape_cast %434 : vector<1x8x8xf32> to vector<8x8xf32>
    %c0_175 = arith.constant 0 : index
    %c16_176 = arith.constant 16 : index
    %436 = vector.load %arg40[%c0_175, %c16_176] : memref<8x32xf32, #tpu.memory_space<vmem>>, vector<8x8xf32>
    tpu.vector_store %arg40[%c0_175, %c16_176], %435 {strides = array<i32>} : memref<8x32xf32, #tpu.memory_space<vmem>>, vector<8x8xf32>,
    %437 = vector.extract_strided_slice %359 {offsets = [0, 0, 24], sizes = [1, 8, 8], strides = [1, 1, 1]} : vector<1x8x32xf32> to vector<1x8x8xf32>
    %438 = arith.truncf %437 : vector<1x8x8xf32> to vector<1x8x8xbf16>
    %439 = vector.extract_strided_slice %360 {offsets = [0, 0, 24], sizes = [1, 16, 8], strides = [1, 1, 1]} : vector<1x16x32xf32> to vector<1x16x8xf32>
    %440 = arith.truncf %439 : vector<1x16x8xf32> to vector<1x16x8xbf16>
    "tpu.trace_start"() <{level = 10 : i32, message = "bqd,bkd->bqk"}> : () -> ()
    %cst_177 = arith.constant dense<0.000000e+00> : vector<1x8x16xf32>
    %441 = tpu.matmul %438, %440, %cst_177 {dimension_numbers = #tpu.dot_dimension_numbers<[2], [2], [1], [1], [0, 0, 0, 1, 1, 1], [0], [0]>} : vector<1x8x8xbf16>, vector<1x16x8xbf16>, vector<1x8x16xf32> -> vector<1x8x16xf32>
    "tpu.trace_stop"() : () -> ()
    %cst_178 = arith.constant 0.353553385 : f32
    %442 = vector.broadcast %cst_178 : f32 to vector<1x8x16xf32>
    %443 = arith.mulf %441, %442 : vector<1x8x16xf32>
    %cst_179 = arith.constant dense<0xFF800000> : vector<1x8xf32>
    %444 = vector.multi_reduction <maximumf>, %443, %cst_179 [2] : vector<1x8x16xf32> to vector<1x8xf32>
    %445 = vector.shape_cast %444 : vector<1x8xf32> to vector<1x8x1xf32>
    %446 = vector.broadcast %445 : vector<1x8x1xf32> to vector<1x8x16xf32>
    %447 = arith.subf %443, %446 : vector<1x8x16xf32>
    %448 = math.exp %447 : vector<1x8x16xf32>
    %cst_180 = arith.constant dense<0.000000e+00> : vector<1x8xf32>
    %449 = vector.multi_reduction <add>, %448, %cst_180 [2] : vector<1x8x16xf32> to vector<1x8xf32>
    %450 = vector.shape_cast %449 : vector<1x8xf32> to vector<1x8x1xf32>
    %cst_181 = arith.constant 9.99999968E-21 : f32
    %451 = vector.broadcast %cst_181 : f32 to vector<1x8x1xf32>
    %452 = arith.maximumf %450, %451 : vector<1x8x1xf32>
    %453 = arith.truncf %448 : vector<1x8x16xf32> to vector<1x8x16xbf16>
    %454 = vector.extract_strided_slice %361 {offsets = [0, 0, 24], sizes = [1, 16, 8], strides = [1, 1, 1]} : vector<1x16x32xf32> to vector<1x16x8xf32>
    %455 = arith.truncf %454 : vector<1x16x8xf32> to vector<1x16x8xbf16>
    "tpu.trace_start"() <{level = 10 : i32, message = "bqk,bkd->bqd"}> : () -> ()
    %cst_182 = arith.constant dense<0.000000e+00> : vector<1x8x8xf32>
    %456 = tpu.matmul %453, %455, %cst_182 {dimension_numbers = #tpu.dot_dimension_numbers<[2], [1], [1], [2], [0, 0, 0, 1, 1, 2], [0], [0]>} : vector<1x8x16xbf16>, vector<1x16x8xbf16>, vector<1x8x8xf32> -> vector<1x8x8xf32>
    "tpu.trace_stop"() : () -> ()
    %457 = tpu.reciprocal %452 {approx = true} : vector<1x8x1xf32> -> vector<1x8x1xf32>
    %458 = vector.broadcast %457 : vector<1x8x1xf32> to vector<1x8x8xf32>
    %459 = arith.mulf %456, %458 : vector<1x8x8xf32>
    %460 = vector.shape_cast %459 : vector<1x8x8xf32> to vector<8x8xf32>
    %c0_183 = arith.constant 0 : index
    %c24_184 = arith.constant 24 : index
    %461 = vector.load %arg40[%c0_183, %c24_184] : memref<8x32xf32, #tpu.memory_space<vmem>>, vector<8x8xf32>
    tpu.vector_store %arg40[%c0_183, %c24_184], %460 {strides = array<i32>} : memref<8x32xf32, #tpu.memory_space<vmem>>, vector<8x8xf32>,
    %c0_185 = arith.constant 0 : index
    %c0_186 = arith.constant 0 : index
    %462 = vector.load %arg40[%c0_185, %c0_186] : memref<8x32xf32, #tpu.memory_space<vmem>>, vector<8x32xf32>
    %463 = arith.truncf %462 : vector<8x32xf32> to vector<8x32xbf16>
    %c0_187 = arith.constant 0 : index
    %c0_188 = arith.constant 0 : index
    %464 = vector.load %arg29[%c0_187, %c0_188] : memref<32x32xbf16, #tpu.memory_space<vmem>>, vector<32x32xbf16>
    %cst_189 = arith.constant dense<0.000000e+00> : vector<8x32xf32>
    %465 = tpu.matmul %463, %464, %cst_189 {dimension_numbers = #tpu.dot_dimension_numbers<[1], [0], [0], [1], [0, 0, 1, 1], [], []>} : vector<8x32xbf16>, vector<32x32xbf16>, vector<8x32xf32> -> vector<8x32xf32>
    %c0_190 = arith.constant 0 : index
    %c0_191 = arith.constant 0 : index
    %466 = vector.load %arg30[%c0_190, %c0_191] : memref<1x32xf32, #tpu.memory_space<vmem>>, vector<1x32xf32>
    %467 = vector.broadcast %466 : vector<1x32xf32> to vector<8x32xf32>
    %468 = arith.addf %465, %467 : vector<8x32xf32>
    %469 = arith.addf %341, %468 : vector<8x32xf32>
    %c0_192 = arith.constant 0 : index
    %c0_193 = arith.constant 0 : index
    %470 = vector.load %arg33[%c0_192, %c0_193] : memref<2x32xf32, #tpu.memory_space<vmem>>, vector<1x32xf32>
    %c1_194 = arith.constant 1 : index
    %c0_195 = arith.constant 0 : index
    %471 = vector.load %arg33[%c1_194, %c0_195] : memref<2x32xf32, #tpu.memory_space<vmem>>, vector<1x32xf32>
    %cst_196 = arith.constant dense<0.000000e+00> : vector<8xf32>
    %472 = vector.multi_reduction <add>, %469, %cst_196 [1] : vector<8x32xf32> to vector<8xf32>
    %473 = vector.shape_cast %472 : vector<8xf32> to vector<8x1xf32>
    %cst_197 = arith.constant 3.200000e+01 : f32
    %474 = vector.broadcast %cst_197 : f32 to vector<8x1xf32>
    %475 = arith.divf %473, %474 : vector<8x1xf32>
    %476 = vector.broadcast %475 : vector<8x1xf32> to vector<8x32xf32>
    %477 = arith.subf %469, %476 : vector<8x32xf32>
    %478 = arith.mulf %477, %477 : vector<8x32xf32>
    %cst_198 = arith.constant dense<0.000000e+00> : vector<8xf32>
    %479 = vector.multi_reduction <add>, %478, %cst_198 [1] : vector<8x32xf32> to vector<8xf32>
    %480 = vector.shape_cast %479 : vector<8xf32> to vector<8x1xf32>
    %cst_199 = arith.constant 3.200000e+01 : f32
    %481 = vector.broadcast %cst_199 : f32 to vector<8x1xf32>
    %482 = arith.divf %480, %481 : vector<8x1xf32>
    %cst_200 = arith.constant 9.99999974E-6 : f32
    %483 = vector.broadcast %cst_200 : f32 to vector<8x1xf32>
    %484 = arith.addf %482, %483 : vector<8x1xf32>
    %485 = math.rsqrt %484 : vector<8x1xf32>
    %486 = vector.broadcast %485 : vector<8x1xf32> to vector<8x32xf32>
    %487 = arith.mulf %477, %486 : vector<8x32xf32>
    %488 = vector.broadcast %470 : vector<1x32xf32> to vector<8x32xf32>
    %489 = arith.mulf %487, %488 : vector<8x32xf32>
    %490 = vector.broadcast %471 : vector<1x32xf32> to vector<8x32xf32>
    %491 = arith.addf %489, %490 : vector<8x32xf32>
    %492 = arith.truncf %491 : vector<8x32xf32> to vector<8x32xbf16>
    %c0_201 = arith.constant 0 : index
    %c0_202 = arith.constant 0 : index
    %493 = vector.load %arg35[%c0_201, %c0_202] : memref<32x64xbf16, #tpu.memory_space<vmem>>, vector<32x64xbf16>
    %cst_203 = arith.constant dense<0.000000e+00> : vector<8x64xf32>
    %494 = tpu.matmul %492, %493, %cst_203 {dimension_numbers = #tpu.dot_dimension_numbers<[1], [0], [0], [1], [0, 0, 1, 1], [], []>} : vector<8x32xbf16>, vector<32x64xbf16>, vector<8x64xf32> -> vector<8x64xf32>
    %c0_204 = arith.constant 0 : index
    %c0_205 = arith.constant 0 : index
    %495 = vector.load %arg36[%c0_204, %c0_205] : memref<1x64xf32, #tpu.memory_space<vmem>>, vector<1x64xf32>
    %496 = vector.broadcast %495 : vector<1x64xf32> to vector<8x64xf32>
    %497 = arith.addf %494, %496 : vector<8x64xf32>
    %cst_206 = arith.constant 0.000000e+00 : f32
    %498 = vector.broadcast %cst_206 : f32 to vector<8x64xf32>
    %499 = arith.maximumf %497, %498 : vector<8x64xf32>
    %500 = arith.truncf %499 : vector<8x64xf32> to vector<8x64xbf16>
    %c0_207 = arith.constant 0 : index
    %c0_208 = arith.constant 0 : index
    %501 = vector.load %arg37[%c0_207, %c0_208] : memref<64x32xbf16, #tpu.memory_space<vmem>>, vector<64x32xbf16>
    %cst_209 = arith.constant dense<0.000000e+00> : vector<8x32xf32>
    %502 = tpu.matmul %500, %501, %cst_209 {dimension_numbers = #tpu.dot_dimension_numbers<[1], [0], [0], [1], [0, 0, 1, 1], [], []>} : vector<8x64xbf16>, vector<64x32xbf16>, vector<8x32xf32> -> vector<8x32xf32>
    %c0_210 = arith.constant 0 : index
    %c0_211 = arith.constant 0 : index
    %503 = vector.load %arg38[%c0_210, %c0_211] : memref<1x32xf32, #tpu.memory_space<vmem>>, vector<1x32xf32>
    %504 = vector.broadcast %503 : vector<1x32xf32> to vector<8x32xf32>
    %505 = arith.addf %502, %504 : vector<8x32xf32>
    %506 = arith.addf %491, %505 : vector<8x32xf32>
    %c0_212 = arith.constant 0 : index
    %c0_213 = arith.constant 0 : index
    %507 = vector.load %arg34[%c0_212, %c0_213] : memref<2x32xf32, #tpu.memory_space<vmem>>, vector<1x32xf32>
    %c1_214 = arith.constant 1 : index
    %c0_215 = arith.constant 0 : index
    %508 = vector.load %arg34[%c1_214, %c0_215] : memref<2x32xf32, #tpu.memory_space<vmem>>, vector<1x32xf32>
    %cst_216 = arith.constant dense<0.000000e+00> : vector<8xf32>
    %509 = vector.multi_reduction <add>, %506, %cst_216 [1] : vector<8x32xf32> to vector<8xf32>
    %510 = vector.shape_cast %509 : vector<8xf32> to vector<8x1xf32>
    %cst_217 = arith.constant 3.200000e+01 : f32
    %511 = vector.broadcast %cst_217 : f32 to vector<8x1xf32>
    %512 = arith.divf %510, %511 : vector<8x1xf32>
    %513 = vector.broadcast %512 : vector<8x1xf32> to vector<8x32xf32>
    %514 = arith.subf %506, %513 : vector<8x32xf32>
    %515 = arith.mulf %514, %514 : vector<8x32xf32>
    %cst_218 = arith.constant dense<0.000000e+00> : vector<8xf32>
    %516 = vector.multi_reduction <add>, %515, %cst_218 [1] : vector<8x32xf32> to vector<8xf32>
    %517 = vector.shape_cast %516 : vector<8xf32> to vector<8x1xf32>
    %cst_219 = arith.constant 3.200000e+01 : f32
    %518 = vector.broadcast %cst_219 : f32 to vector<8x1xf32>
    %519 = arith.divf %517, %518 : vector<8x1xf32>
    %cst_220 = arith.constant 9.99999974E-6 : f32
    %520 = vector.broadcast %cst_220 : f32 to vector<8x1xf32>
    %521 = arith.addf %519, %520 : vector<8x1xf32>
    %522 = math.rsqrt %521 : vector<8x1xf32>
    %523 = vector.broadcast %522 : vector<8x1xf32> to vector<8x32xf32>
    %524 = arith.mulf %514, %523 : vector<8x32xf32>
    %525 = vector.broadcast %507 : vector<1x32xf32> to vector<8x32xf32>
    %526 = arith.mulf %524, %525 : vector<8x32xf32>
    %527 = vector.broadcast %508 : vector<1x32xf32> to vector<8x32xf32>
    %528 = arith.addf %526, %527 : vector<8x32xf32>
    %c0_221 = arith.constant 0 : index
    %c0_222 = arith.constant 0 : index
    %529 = vector.load %arg39[%c0_221, %c0_222] : memref<8x32xf32, #tpu.memory_space<vmem>>, vector<8x32xf32>
    tpu.vector_store %arg39[%c0_221, %c0_222], %528 {strides = array<i32>} : memref<8x32xf32, #tpu.memory_space<vmem>>, vector<8x32xf32>,
    return
  }
  func.func @transform_0(%arg0: i32) -> (i32, i32) {
    %c0_i32 = arith.constant 0 : i32
    %c0_i32_0 = arith.constant 0 : i32
    return %arg0, %c0_i32 : i32, i32
  }
  func.func @transform_1(%arg0: i32) -> (i32, i32, i32) {
    %c0_i32 = arith.constant 0 : i32
    %c0_i32_0 = arith.constant 0 : i32
    %c0_i32_1 = arith.constant 0 : i32
    return %arg0, %c0_i32, %c0_i32_0 : i32, i32, i32
  }
  func.func @transform_2(%arg0: i32) -> (i32, i32, i32) {
    %c0_i32 = arith.constant 0 : i32
    %c0_i32_0 = arith.constant 0 : i32
    %c0_i32_1 = arith.constant 0 : i32
    return %arg0, %c0_i32, %c0_i32_0 : i32, i32, i32
  }
  func.func @transform_3(%arg0: i32) -> (i32, i32) {
    %c0_i32 = arith.constant 0 : i32
    %c0_i32_0 = arith.constant 0 : i32
    return %arg0, %c0_i32 : i32, i32
  }
  func.func @transform_4(%arg0: i32) -> (i32, i32, i32) {
    %c0_i32 = arith.constant 0 : i32
    %c0_i32_0 = arith.constant 0 : i32
    %c0_i32_1 = arith.constant 0 : i32
    return %arg0, %c0_i32, %c0_i32_0 : i32, i32, i32
  }
  func.func @transform_5(%arg0: i32) -> (i32, i32, i32) {
    %c0_i32 = arith.constant 0 : i32
    %c0_i32_0 = arith.constant 0 : i32
    %c0_i32_1 = arith.constant 0 : i32
    return %arg0, %c0_i32, %c0_i32_0 : i32, i32, i32
  }
  func.func @transform_6(%arg0: i32) -> (i32, i32) {
    %c0_i32 = arith.constant 0 : i32
    %c0_i32_0 = arith.constant 0 : i32
    %c0_i32_1 = arith.constant 0 : i32
    return %c0_i32, %c0_i32_0 : i32, i32
  }
  func.func @transform_7(%arg0: i32) -> (i32, i32) {
    %c0_i32 = arith.constant 0 : i32
    %c0_i32_0 = arith.constant 0 : i32
    %c0_i32_1 = arith.constant 0 : i32
    return %c0_i32, %c0_i32_0 : i32, i32
  }
  func.func @transform_8(%arg0: i32) -> (i32, i32) {
    %c0_i32 = arith.constant 0 : i32
    %c0_i32_0 = arith.constant 0 : i32
    %c0_i32_1 = arith.constant 0 : i32
    return %c0_i32, %c0_i32_0 : i32, i32
  }
  func.func @transform_9(%arg0: i32) -> (i32, i32) {
    %c0_i32 = arith.constant 0 : i32
    %c0_i32_0 = arith.constant 0 : i32
    %c0_i32_1 = arith.constant 0 : i32
    return %c0_i32, %c0_i32_0 : i32, i32
  }
  func.func @transform_10(%arg0: i32) -> (i32, i32) {
    %c0_i32 = arith.constant 0 : i32
    %c0_i32_0 = arith.constant 0 : i32
    %c0_i32_1 = arith.constant 0 : i32
    return %c0_i32, %c0_i32_0 : i32, i32
  }
  func.func @transform_11(%arg0: i32) -> (i32, i32) {
    %c0_i32 = arith.constant 0 : i32
    %c0_i32_0 = arith.constant 0 : i32
    %c0_i32_1 = arith.constant 0 : i32
    return %c0_i32, %c0_i32_0 : i32, i32
  }
  func.func @transform_12(%arg0: i32) -> (i32, i32) {
    %c0_i32 = arith.constant 0 : i32
    %c0_i32_0 = arith.constant 0 : i32
    %c0_i32_1 = arith.constant 0 : i32
    return %c0_i32, %c0_i32_0 : i32, i32
  }
  func.func @transform_13(%arg0: i32) -> (i32, i32) {
    %c0_i32 = arith.constant 0 : i32
    %c0_i32_0 = arith.constant 0 : i32
    %c0_i32_1 = arith.constant 0 : i32
    return %c0_i32, %c0_i32_0 : i32, i32
  }
  func.func @transform_14(%arg0: i32) -> (i32, i32) {
    %c0_i32 = arith.constant 0 : i32
    %c0_i32_0 = arith.constant 0 : i32
    %c0_i32_1 = arith.constant 0 : i32
    return %c0_i32, %c0_i32_0 : i32, i32
  }
  func.func @transform_15(%arg0: i32) -> (i32, i32) {
    %c0_i32 = arith.constant 0 : i32
    %c0_i32_0 = arith.constant 0 : i32
    %c0_i32_1 = arith.constant 0 : i32
    return %c0_i32, %c0_i32_0 : i32, i32
  }
  func.func @transform_16(%arg0: i32) -> (i32, i32) {
    %c0_i32 = arith.constant 0 : i32
    %c0_i32_0 = arith.constant 0 : i32
    %c0_i32_1 = arith.constant 0 : i32
    return %c0_i32, %c0_i32_0 : i32, i32
  }
  func.func @transform_17(%arg0: i32) -> (i32, i32) {
    %c0_i32 = arith.constant 0 : i32
    %c0_i32_0 = arith.constant 0 : i32
    %c0_i32_1 = arith.constant 0 : i32
    return %c0_i32, %c0_i32_0 : i32, i32
  }
  func.func @transform_18(%arg0: i32) -> (i32, i32) {
    %c0_i32 = arith.constant 0 : i32
    %c0_i32_0 = arith.constant 0 : i32
    %c0_i32_1 = arith.constant 0 : i32
    return %c0_i32, %c0_i32_0 : i32, i32
  }
  func.func @transform_19(%arg0: i32) -> (i32, i32) {
    %c0_i32 = arith.constant 0 : i32
    %c0_i32_0 = arith.constant 0 : i32
    %c0_i32_1 = arith.constant 0 : i32
    return %c0_i32, %c0_i32_0 : i32, i32
  }
  func.func @transform_20(%arg0: i32) -> (i32, i32) {
    %c0_i32 = arith.constant 0 : i32
    %c0_i32_0 = arith.constant 0 : i32
    %c0_i32_1 = arith.constant 0 : i32
    return %c0_i32, %c0_i32_0 : i32, i32
  }
  func.func @transform_21(%arg0: i32) -> (i32, i32) {
    %c0_i32 = arith.constant 0 : i32
    %c0_i32_0 = arith.constant 0 : i32
    %c0_i32_1 = arith.constant 0 : i32
    return %c0_i32, %c0_i32_0 : i32, i32
  }
  func.func @transform_22(%arg0: i32) -> (i32, i32) {
    %c0_i32 = arith.constant 0 : i32
    %c0_i32_0 = arith.constant 0 : i32
    %c0_i32_1 = arith.constant 0 : i32
    return %c0_i32, %c0_i32_0 : i32, i32
  }
  func.func @transform_23(%arg0: i32) -> (i32, i32) {
    %c0_i32 = arith.constant 0 : i32
    %c0_i32_0 = arith.constant 0 : i32
    %c0_i32_1 = arith.constant 0 : i32
    return %c0_i32, %c0_i32_0 : i32, i32
  }
  func.func @transform_24(%arg0: i32) -> (i32, i32) {
    %c0_i32 = arith.constant 0 : i32
    %c0_i32_0 = arith.constant 0 : i32
    %c0_i32_1 = arith.constant 0 : i32
    return %c0_i32, %c0_i32_0 : i32, i32
  }
  func.func @transform_25(%arg0: i32) -> (i32, i32) {
    %c0_i32 = arith.constant 0 : i32
    %c0_i32_0 = arith.constant 0 : i32
    %c0_i32_1 = arith.constant 0 : i32
    return %c0_i32, %c0_i32_0 : i32, i32
  }
  func.func @transform_26(%arg0: i32) -> (i32, i32) {
    %c0_i32 = arith.constant 0 : i32
    %c0_i32_0 = arith.constant 0 : i32
    %c0_i32_1 = arith.constant 0 : i32
    return %c0_i32, %c0_i32_0 : i32, i32
  }
  func.func @transform_27(%arg0: i32) -> (i32, i32) {
    %c0_i32 = arith.constant 0 : i32
    %c0_i32_0 = arith.constant 0 : i32
    %c0_i32_1 = arith.constant 0 : i32
    return %c0_i32, %c0_i32_0 : i32, i32
  }
  func.func @transform_28(%arg0: i32) -> (i32, i32) {
    %c0_i32 = arith.constant 0 : i32
    %c0_i32_0 = arith.constant 0 : i32
    %c0_i32_1 = arith.constant 0 : i32
    return %c0_i32, %c0_i32_0 : i32, i32
  }
  func.func @transform_29(%arg0: i32) -> (i32, i32) {
    %c0_i32 = arith.constant 0 : i32
    %c0_i32_0 = arith.constant 0 : i32
    %c0_i32_1 = arith.constant 0 : i32
    return %c0_i32, %c0_i32_0 : i32, i32
  }
  func.func @transform_30(%arg0: i32) -> (i32, i32) {
    %c0_i32 = arith.constant 0 : i32
    %c0_i32_0 = arith.constant 0 : i32
    %c0_i32_1 = arith.constant 0 : i32
    return %c0_i32, %c0_i32_0 : i32, i32
  }
  func.func @transform_31(%arg0: i32) -> (i32, i32) {
    %c0_i32 = arith.constant 0 : i32
    %c0_i32_0 = arith.constant 0 : i32
    %c0_i32_1 = arith.constant 0 : i32
    return %c0_i32, %c0_i32_0 : i32, i32
  }
  func.func @transform_32(%arg0: i32) -> (i32, i32) {
    %c0_i32 = arith.constant 0 : i32
    %c0_i32_0 = arith.constant 0 : i32
    %c0_i32_1 = arith.constant 0 : i32
    return %c0_i32, %c0_i32_0 : i32, i32
  }
  func.func @transform_33(%arg0: i32) -> (i32, i32) {
    %c0_i32 = arith.constant 0 : i32
    %c0_i32_0 = arith.constant 0 : i32
    %c0_i32_1 = arith.constant 0 : i32
    return %c0_i32, %c0_i32_0 : i32, i32
  }
  func.func @transform_34(%arg0: i32) -> (i32, i32) {
    %c0_i32 = arith.constant 0 : i32
    %c0_i32_0 = arith.constant 0 : i32
    %c0_i32_1 = arith.constant 0 : i32
    return %c0_i32, %c0_i32_0 : i32, i32
  }
  func.func @transform_35(%arg0: i32) -> (i32, i32) {
    %c0_i32 = arith.constant 0 : i32
    %c0_i32_0 = arith.constant 0 : i32
    %c0_i32_1 = arith.constant 0 : i32
    return %c0_i32, %c0_i32_0 : i32, i32
  }
  func.func @transform_36(%arg0: i32) -> (i32, i32) {
    %c0_i32 = arith.constant 0 : i32
    %c0_i32_0 = arith.constant 0 : i32
    %c0_i32_1 = arith.constant 0 : i32
    return %c0_i32, %c0_i32_0 : i32, i32
  }
  func.func @transform_37(%arg0: i32) -> (i32, i32) {
    %c0_i32 = arith.constant 0 : i32
    %c0_i32_0 = arith.constant 0 : i32
    %c0_i32_1 = arith.constant 0 : i32
    return %c0_i32, %c0_i32_0 : i32, i32
  }
  func.func @transform_38(%arg0: i32) -> (i32, i32) {
    %c0_i32 = arith.constant 0 : i32
    %c0_i32_0 = arith.constant 0 : i32
    return %arg0, %c0_i32 : i32, i32
  }
}

</mosaic_0001>

<bundles_post_ra>
// kernel: tpu_custom_call.1
= control target key start
LH: loop header
LB: loop body
LE: loop exit
PB: predicated region body
PF: predicated region fallthrough
CT: control target
= control target key end

     0   :  { %s5935_s6 = smov 1   ;;  %s5936_s10 = smov 2   ;;  %s7057_s0 = inlined_call_operand.smem [shape: u32[39], index: -1, kind: input, shape index: {}] }
   0x1   :  { %s6018_s5 = sld [smem:[%s7057_s0]]   ;;  %s5937_s14 = smov 3  }
   0x2   :  { %s6023_s9 = sld [smem:[%s7057_s0 + %s5935_s6]]   ;;  %s5938_s18 = smov 4  }
   0x3   :  { %s6028_s13 = sld [smem:[%s7057_s0 + %s5936_s10]]   ;;  %s5939_s22 = smov 5  }
   0x4   :  { %s6033_s17 = sld [smem:[%s7057_s0 + %s5937_s14]]   ;;  %s5940_s26 = smov 6  }
   0x5   :  { %s6038_s21 = sld [smem:[%s7057_s0 + %s5938_s18]]   ;;  %s5941_s30 = smov 7  }
   0x6   :  { %s6043_s25 = sld [smem:[%s7057_s0 + %s5939_s22]]   ;;  %s5942_s4 = smov 8  }
   0x7   :  { %7120 = sst [smem:[#allocation52_spill]] %s6018_s5  ;;  %s5943_s10 = smov 9  }
   0x8   :  { %7121 = sst [smem:[#allocation53_spill]] %s6023_s9  ;;  %s5944_s15 = smov 10  }
   0x9   :  { %7122 = sst [smem:[#allocation54_spill]] %s6028_s13  ;;  %s5945_s20 = smov 11  }
   0xa   :  { %7123 = sst [smem:[#allocation55_spill]] %s6033_s17  ;;  %s5947_s1 = smov 13  }
   0xb   :  { %7124 = sst [smem:[#allocation56_spill]] %s6038_s21  ;;  %s5948_s7 = smov 14  }
   0xc   :  { %s6048_s29 = sld [smem:[%s7057_s0 + %s5940_s26]]   ;;  %s5946_s26 = smov 12  }
   0xd   :  { %s6053_s3 = sld [smem:[%s7057_s0 + %s5941_s30]]   ;;  %s5950_s22 = smov 16  }
   0xe   :  { %s6058_s8 = sld [smem:[%s7057_s0 + %s5942_s4]]   ;;  %s5951_s28 = smov 17  }
   0xf   :  { %s6063_s14 = sld [smem:[%s7057_s0 + %s5943_s10]]  }
  0x10   :  { %s6068_s19 = sld [smem:[%s7057_s0 + %s5944_s15]]   ;;  %s5949_s15 = smov 15  }
  0x11   :  { %s6073_s24 = sld [smem:[%s7057_s0 + %s5945_s20]]  }
  0x12   :  { %7125 = sst [smem:[#allocation57_spill]] %s6048_s29 }
  0x13   :  { %7126 = sst [smem:[#allocation58_spill]] %s6053_s3 }
  0x14   :  { %7127 = sst [smem:[#allocation59_spill]] %s6058_s8 }
  0x15   :  { %7128 = sst [smem:[#allocation60_spill]] %s6063_s14 }
  0x16   :  { %7129 = sst [smem:[#allocation61_spill]] %s6068_s19 }
  0x17   :  { %7130 = sst [smem:[#allocation62_spill]] %s6073_s24 }
  0x18   :  { %s6078_s30 = sld [smem:[%s7057_s0 + %s5946_s26]]  }
  0x19   :  { %s6083_s6 = sld [smem:[%s7057_s0 + %s5947_s1]]  }
  0x1a   :  { %s6088_s12 = sld [smem:[%s7057_s0 + %s5948_s7]]   ;;  %s5952_s7 = smov 18  }
  0x1b   :  { %s6093_s20 = sld [smem:[%s7057_s0 + %s5949_s15]]   ;;  %s5953_s15 = smov 19  }
  0x1c   :  { %s6098_s27 = sld [smem:[%s7057_s0 + %s5950_s22]]   ;;  %s5954_s22 = smov 20  }
  0x1d   :  { %s6103_s4 = sld [smem:[%s7057_s0 + %s5951_s28]]   ;;  %s5955_s28 = smov 21  }
  0x1e   :  { %7131 = sst [smem:[#allocation63_spill]] %s6078_s30 }
  0x1f   :  { %7132 = sst [smem:[#allocation64_spill]] %s6083_s6 }
  0x20   :  { %7133 = sst [smem:[#allocation65_spill]] %s6088_s12 }
  0x21   :  { %7134 = sst [smem:[#allocation66_spill]] %s6093_s20 }
  0x22   :  { %7135 = sst [smem:[#allocation67_spill]] %s6098_s27 }
  0x23   :  { %7136 = sst [smem:[#allocation68_spill]] %s6103_s4 }
  0x24   :  { %s6108_s9 = sld [smem:[%s7057_s0 + %s5952_s7]]   ;;  %s5956_s7 = smov 22  }
  0x25   :  { %s6113_s12 = sld [smem:[%s7057_s0 + %s5953_s15]]   ;;  %s5957_s15 = smov 23  }
  0x26   :  { %s6118_s27 = sld [smem:[%s7057_s0 + %s5954_s22]]   ;;  %s5958_s22 = smov 24  }
  0x27   :  { %s6123_s4 = sld [smem:[%s7057_s0 + %s5955_s28]]   ;;  %s5959_s28 = smov 25  }
  0x28   :  { %s6128_s5 = sld [smem:[%s7057_s0 + %s5956_s7]]   ;;  %s5960_s7 = smov 26  }
  0x29   :  { %s6133_s30 = sld [smem:[%s7057_s0 + %s5957_s15]]   ;;  %s5961_s15 = smov 27  }
  0x2a   :  { %7137 = sst [smem:[#allocation69_spill]] %s6108_s9 }
  0x2b   :  { %7138 = sst [smem:[#allocation70_spill]] %s6113_s12 }
  0x2c   :  { %7139 = sst [smem:[#allocation71_spill]] %s6118_s27 }
  0x2d   :  { %7140 = sst [smem:[#allocation72_spill]] %s6123_s4 }
  0x2e   :  { %7141 = sst [smem:[#allocation73_spill]] %s6128_s5 }
  0x2f   :  { %7142 = sst [smem:[#allocation74_spill]] %s6133_s30 }
  0x30   :  { %s6138_s27 = sld [smem:[%s7057_s0 + %s5958_s22]]   ;;  %s5962_s22 = smov 28  }
  0x31   :  { %s6143_s19 = sld [smem:[%s7057_s0 + %s5959_s28]]   ;;  %s5963_s28 = smov 29  }
  0x32   :  { %s6148_s17 = sld [smem:[%s7057_s0 + %s5960_s7]]   ;;  %s5964_s7 = smov 30  }
  0x33   :  { %s6153_s13 = sld [smem:[%s7057_s0 + %s5961_s15]]   ;;  %s5965_s15 = smov 31  }
  0x34   :  { %s6163_s30 = sld [smem:[%s7057_s0 + %s5963_s28]]   ;;  %s5967_s28 = smov 33  }
  0x35   :  { %s6173_s4 = sld [smem:[%s7057_s0 + %s5965_s15]]   ;;  %s5969_s15 = smov 35  }
  0x36   :  { %7143 = sst [smem:[#allocation75_spill]] %s6138_s27 }
  0x37   :  { %7144 = sst [smem:[#allocation76_spill]] %s6143_s19 }
  0x38   :  { %7145 = sst [smem:[#allocation77_spill]] %s6148_s17 }
  0x39   :  { %7146 = sst [smem:[#allocation78_spill]] %s6153_s13 }
  0x3a   :  { %s6158_s27 = sld [smem:[%s7057_s0 + %s5962_s22]]   ;;  %s5966_s22 = smov 32  }
  0x3b   :  { %7148 = sst [smem:[#allocation80_spill]] %s6163_s30 }
  0x3c   :  { %s6168_s17 = sld [smem:[%s7057_s0 + %s5964_s7]]   ;;  %s5968_s7 = smov 34  }
  0x3d   :  { %7150 = sst [smem:[#allocation82_spill]] %s6173_s4 }
  0x3e   :  { %s6183_s30 = sld [smem:[%s7057_s0 + %s5967_s28]]   ;;  %s5971_s28 = smov 37  }
  0x3f   :  { %s6188_s9 = sld [smem:[%s7057_s0 + %s5968_s7]]   ;;  %s5972_s7 = smov 38  }
  0x40   :  { %7147 = sst [smem:[#allocation79_spill]] %s6158_s27 }
  0x41   :  { %s6178_s27 = sld [smem:[%s7057_s0 + %s5966_s22]]   ;;  %s5970_s22 = smov 36  }
  0x42   :  { %7149 = sst [smem:[#allocation81_spill]] %s6168_s17 }
  0x43   :  { %s6193_s4 = sld [smem:[%s7057_s0 + %s5969_s15]]  }
  0x44   :  { %7152 = sst [smem:[#allocation84_spill]] %s6183_s30 }
  0x45   :  { %7153 = sst [smem:[#allocation85_spill]] %s6188_s9 }
  0x46   :  { %s6203_s30 = sld [smem:[%s7057_s0 + %s5971_s28]]  }
  0x47   :  { %7151 = sst [smem:[#allocation83_spill]] %s6178_s27 }
  0x48   :  { %s6198_s27 = sld [smem:[%s7057_s0 + %s5970_s22]]  }
  0x49   :  { %s6208_s9 = sld [smem:[%s7057_s0 + %s5972_s7]]  }
  0x4c   :  { %7154 = sst [smem:[#allocation86_spill]] %s6203_s30 }
  0x4f   :  { %7155 = sst [smem:[#allocation87_spill]] %s6208_s9 }
  0x50   :  { %82 = vsyncpa [#allocation4], 0 }
  0x51   :  { %84 = vsyncpa [#allocation4 + $0x1], 0 }
  0x52   :  { %85 = vsyncpa [#allocation7], 0 }
  0x53   :  { %87 = vsyncpa [#allocation7 + $0x1], 0 }
  0x54   :  { %88 = vsyncpa [#allocation10], 0 }
  0x55   :  { %89 = vsyncpa [#allocation13], 0 }
  0x56   :  { %90 = vsyncpa [#allocation16], 0 }
  0x57   :  { %91 = vsyncpa [#allocation19], 0 }
  0x58   :  { %92 = vsyncpa [#allocation22], 0 }
  0x59   :  { %93 = vsyncpa [#allocation25], 0 }
  0x5a   :  { %94 = vsyncpa [#allocation28], 0 }
  0x5b   :  { %95 = vsyncpa [#allocation31], 0 }
  0x5c   :  { %96 = vsyncpa [#allocation34], 0 }
  0x5d   :  { %97 = vsyncpa [#allocation37], 0 }
  0x5e   :  { %98 = vsyncpa [#allocation5], 0 }
  0x5f   :  { %100 = vsyncpa [#allocation5 + $0x1], 0  ;;  %s6210_s15 = smov 0   ;;  %s6212_s0 = smov 0  }
  0x60   :  { %s6214_s16 = smov 0   ;;  %s6216_s18 = smov 0  }
  0x61 LB: > { %s7156_s14 = sld [smem:[#allocation60_spill]]  ;;  %s7157_s6 = sld [smem:[#allocation64_spill]]  ;;  %s5921_s15 = sphi %s6210_s15, %s7245_s15   ;;  %s5933_s18 = sphi %s6216_s18, %s7247_s18   ;;  %s5929_s16 = sphi %s6214_s16, %s7244_s16   ;;  %s5925_s0 = sphi %s6212_s0, %s7246_s0  }
  0x62   : > { %s7158_s3 = sld [smem:[#allocation58_spill]]  ;;  %s7159_s21 = sld [smem:[#allocation56_spill]] }
  0x63   : > { %s7160_s29 = sld [smem:[#allocation57_spill]]  ;;  %s7161_s24 = sld [smem:[#allocation62_spill]] }
  0x64   : > { %s7162_s20 = sld [smem:[#allocation66_spill]]  ;;  %s7163_s19 = sld [smem:[#allocation76_spill]] }
  0x65   : > { %s7164_s17 = sld [smem:[#allocation81_spill]]  ;;  %s7165_s13 = sld [smem:[#allocation78_spill]] }
  0x66   : > { %s7166_s12 = sld [smem:[#allocation70_spill]]  ;;  %s7167_s5 = sld [smem:[#allocation73_spill]] }
  0x67   : > { %s7168_s8 = sld [smem:[#allocation59_spill]]  ;;  %7169 = sst [smem:[#allocation88_spill]] %s5929_s16 }
  0x68   : > { %s5973_s22 = smov [#allocation9]   ;;  %s6231_s26 = sadd.s32 4294967295, %s5933_s18  }
  0x69   : > { %s978_s23 = sshll.u32 %s5973_s22, 4  ;;  %p4340_p0 = scmp.ge.s32.totalorder %s5933_s18, 1  ;;  %s6236_s23 = int_to_ptr.vmem [resolvable:$true] %s978_s23 }
  0x6a   : > { %p7076_p1 = scmp.eq.s32.totalorder %s6231_s26, 0  ;;  %p965_p2 = scmp.lt.s32.totalorder %s5933_s18, 3 }
  0x6b   : > { %s5974_s1 = smov [#allocation12]   ;;  %s5975_s7 = smov [#allocation15]  }
  0x6c   : > { %p6238_p3 = pnand %p4340_p0, %p965_p2  ;;  %s1000_s2 = sshll.u32 %s5974_s1, 4  ;;  %s6245_s2 = int_to_ptr.vmem [resolvable:$true] %s1000_s2 }
  0x6d   : > { %s1025_s10 = sshll.u32 %s5975_s7, 4  ;;  %s5976_s22 = smov [#allocation18]   ;;  %s6253_s10 = int_to_ptr.vmem [resolvable:$true] %s1025_s10 }
  0x6e   : > { %s7170_s28 = scalar_select %p6238_p3, 1, 0 }
  0x6f   : > { %p4904_p5 = pneg %p6238_p3  ;;  %s6255_s9 = sshll.u32 %s5976_s22, 4  ;;  %s1054_s9 = int_to_ptr.vmem [resolvable:$true] %s6255_s9 }
  0x70   : > { %s5201_s30 = scalar_lea.hbm %s7160_s29, 64 }
  0x71   : > { %p6249_p6 = pnand %p4904_p5, %p7076_p1  ;;  %p5202_p7 = scmp.ne.s32.totalorder %s7160_s29, %s5201_s30 }
  0x72   : > { %p5208_p11 = scmp.lt.u32.totalorder %s5201_s30, %s7160_s29 }
  0x73   : > { %s7171_s11 = scalar_select %p6249_p6, 1, 0 }
  0x74   : > { %p6261_p8 = pneg %p6249_p6 }
  0x76   : > { %s7172_s1 = scalar_select %p6261_p8, 1, 0 }
  0x77   : > { %p5204_p9 = pnand %p6261_p8, %p5202_p7 }
  0x79   : > { %p5205_p10 = pneg %p5204_p9 }
  0x7b   : > { %p5210_p12 = pnand %p5208_p11, %p5205_p10 }
  0x7d   : > { %5213 = shalt.err (!%p5210_p12)
}
  0x7e   : > { %s5214_s7 = scalar_lea.vmem %s6236_s23, 64  ;;  %p5222_p5 = scmp.lt.s32.totalorder %s6236_s23, %s6236_s23 }
  0x7f   : > { %p5215_p13 = scmp.ne.s32.totalorder %s6236_s23, %s5214_s7  ;;  %p5223_p4 = scmp.lt.s32.totalorder %s5214_s7, %s5214_s7 }
  0x81   : > { %p5217_p0 = pnand %p5215_p13, %p6261_p8  ;;  %p5224_p1 = por %p5223_p4, %p5222_p5 }
  0x83   : > { %p5218_p2 = pneg %p5217_p0 }
  0x85   : > { %p5225_p3 = pnand %p5224_p1, %p5218_p2 }
  0x87   : > { %5228 = shalt.err (!%p5225_p3)
}
  0x88   : > { %4907 = dma.hbm_to_vmem [thread:$0]  (!%p6249_p6), %s7160_s29, 64, %s6236_s23, [#allocation10]  }
  0x89   : > { %s5229_s30 = scalar_lea.hbm %s7168_s8, 16 }
  0x8a   : > { %p5230_p7 = scmp.ne.s32.totalorder %s7168_s8, %s5229_s30  ;;  %p5236_p11 = scmp.lt.u32.totalorder %s5229_s30, %s7168_s8 }
  0x8c   : > { %p5232_p9 = pnand %p5230_p7, %p6261_p8 }
  0x8e   : > { %p5233_p10 = pneg %p5232_p9 }
  0x90   : > { %p5238_p12 = pnand %p5236_p11, %p5233_p10 }
  0x92   : > { %5241 = shalt.err (!%p5238_p12)
}
  0x93   : > { %s5242_s22 = scalar_lea.vmem %s6245_s2, 16  ;;  %s5249_s7 = scalar_lea.vmem %s6245_s2, 32 }
  0x94   : > { %p5243_p1 = scmp.ne.s32.totalorder %s6245_s2, %s5242_s22  ;;  %p5250_p13 = scmp.lt.s32.totalorder %s6245_s2, %s6245_s2 }
  0x95   : > { %p5251_p0 = scmp.lt.s32.totalorder %s5249_s7, %s5242_s22 }
  0x96   : > { %p5245_p3 = pnand %p5243_p1, %p6261_p8 }
  0x97   : > { %p5252_p2 = por %p5251_p0, %p5250_p13 }
  0x98   : > { %p5246_p4 = pneg %p5245_p3 }
  0x9a   : > { %p5253_p5 = pnand %p5252_p2, %p5246_p4 }
  0x9c   : > { %5256 = shalt.err (!%p5253_p5)
}
  0x9d   : > { %4913 = dma.hbm_to_vmem [thread:$0]  (!%p6249_p6), %s7168_s8, 16, %s6245_s2, [#allocation13]  }
  0x9e   : > { %s5257_s23 = scalar_lea.hbm %s7161_s24, 16 }
  0x9f   : > { %p5258_p7 = scmp.ne.s32.totalorder %s7161_s24, %s5257_s23  ;;  %p5264_p11 = scmp.lt.u32.totalorder %s5257_s23, %s7161_s24 }
  0xa1   : > { %p5260_p9 = pnand %p5258_p7, %p6261_p8 }
  0xa3   : > { %p5261_p10 = pneg %p5260_p9 }
  0xa5   : > { %p5266_p12 = pnand %p5264_p11, %p5261_p10 }
  0xa7   : > { %5269 = shalt.err (!%p5266_p12)
}
  0xa8   : > { %s5270_s30 = scalar_lea.vmem %s6253_s10, 16  ;;  %s5277_s22 = scalar_lea.vmem %s6253_s10, 32 }
  0xa9   : > { %p5271_p1 = scmp.ne.s32.totalorder %s6253_s10, %s5270_s30  ;;  %p5278_p13 = scmp.lt.s32.totalorder %s6253_s10, %s6253_s10 }
  0xaa   : > { %p5279_p0 = scmp.lt.s32.totalorder %s5277_s22, %s5270_s30 }
  0xab   : > { %p5273_p3 = pnand %p5271_p1, %p6261_p8 }
  0xac   : > { %p5280_p2 = por %p5279_p0, %p5278_p13 }
  0xad   : > { %p5274_p4 = pneg %p5273_p3 }
  0xaf   : > { %p5281_p5 = pnand %p5280_p2, %p5274_p4 }
  0xb1   : > { %5284 = shalt.err (!%p5281_p5)
}
  0xb2   : > { %4919 = dma.hbm_to_vmem [thread:$0]  (!%p6249_p6), %s7161_s24, 16, %s6253_s10, [#allocation16]  }
  0xb3   : > { %s5977_s2 = smov [#allocation21]   ;;  %s5285_s23 = scalar_lea.hbm %s7162_s20, 16 }
  0xb4   : > { %s1083_s7 = sshll.u32 %s5977_s2, 4  ;;  %p5286_p7 = scmp.ne.s32.totalorder %s7162_s20, %s5285_s23  ;;  %s1084_s7 = int_to_ptr.vmem [resolvable:$true] %s1083_s7 }
  0xb5   : > { %p5292_p11 = scmp.lt.u32.totalorder %s5285_s23, %s7162_s20 }
  0xb6   : > { %p5288_p9 = pnand %p5286_p7, %p6261_p8 }
  0xb8   : > { %p5289_p10 = pneg %p5288_p9 }
  0xba   : > { %p5294_p12 = pnand %p5292_p11, %p5289_p10 }
  0xbc   : > { %5297 = shalt.err (!%p5294_p12)
}
  0xbd   : > { %s5298_s30 = scalar_lea.vmem %s1054_s9, 16  ;;  %s5305_s22 = scalar_lea.vmem %s1054_s9, 32 }
  0xbe   : > { %p5299_p1 = scmp.ne.s32.totalorder %s1054_s9, %s5298_s30  ;;  %p5306_p13 = scmp.lt.s32.totalorder %s1054_s9, %s1054_s9 }
  0xbf   : > { %p5307_p0 = scmp.lt.s32.totalorder %s5305_s22, %s5298_s30 }
  0xc0   : > { %p5301_p3 = pnand %p5299_p1, %p6261_p8 }
  0xc1   : > { %p5308_p2 = por %p5307_p0, %p5306_p13 }
  0xc2   : > { %p5302_p4 = pneg %p5301_p3 }
  0xc4   : > { %p5309_p5 = pnand %p5308_p2, %p5302_p4 }
  0xc6   : > { %5312 = shalt.err (!%p5309_p5)
}
  0xc7   : > { %4925 = dma.hbm_to_vmem [thread:$0]  (!%p6249_p6), %s7162_s20, 16, %s1054_s9, [#allocation19]  }
  0xc8   : > { %s5313_s10 = scalar_lea.hbm %s7166_s12, 16 }
  0xc9   : > { %p5314_p7 = scmp.ne.s32.totalorder %s7166_s12, %s5313_s10  ;;  %p5320_p11 = scmp.lt.u32.totalorder %s5313_s10, %s7166_s12 }
  0xcb   : > { %p5316_p9 = pnand %p5314_p7, %p6261_p8 }
  0xcd   : > { %p5317_p10 = pneg %p5316_p9 }
  0xcf   : > { %p5322_p12 = pnand %p5320_p11, %p5317_p10 }
  0xd1   : > { %5325 = shalt.err (!%p5322_p12)
}
  0xd2   : > { %s5326_s2 = scalar_lea.vmem %s1084_s7, 16  ;;  %s5333_s23 = scalar_lea.vmem %s1084_s7, 32 }
  0xd3   : > { %p5327_p1 = scmp.ne.s32.totalorder %s1084_s7, %s5326_s2  ;;  %p5334_p13 = scmp.lt.s32.totalorder %s1084_s7, %s1084_s7 }
  0xd4   : > { %p5335_p0 = scmp.lt.s32.totalorder %s5333_s23, %s5326_s2 }
  0xd5   : > { %p5329_p3 = pnand %p5327_p1, %p6261_p8 }
  0xd6   : > { %p5336_p2 = por %p5335_p0, %p5334_p13 }
  0xd7   : > { %p5330_p4 = pneg %p5329_p3 }
  0xd9   : > { %p5337_p5 = pnand %p5336_p2, %p5330_p4 }
  0xdb   : > { %5340 = shalt.err (!%p5337_p5)
}
  0xdc   : > { %4931 = dma.hbm_to_vmem [thread:$0]  (!%p6249_p6), %s7166_s12, 16, %s1084_s7, [#allocation22]  }
  0xdd   : > { %s5978_s9 = smov [#allocation24]   ;;  %s5979_s22 = smov [#allocation27]  }
  0xde   : > { %s1107_s30 = sshll.u32 %s5978_s9, 4  ;;  %s1135_s10 = sshll.u32 %s5979_s22, 4  ;;  %s1108_s30 = int_to_ptr.vmem [resolvable:$true] %s1107_s30  ;;  %s1136_s10 = int_to_ptr.vmem [resolvable:$true] %s1135_s10 }
  0xdf   : > { %s5341_s8 = scalar_lea.hbm %s7167_s5, 256 }
  0xe0   : > { %p5342_p7 = scmp.ne.s32.totalorder %s7167_s5, %s5341_s8  ;;  %p5348_p11 = scmp.lt.u32.totalorder %s5341_s8, %s7167_s5 }
  0xe2   : > { %p5344_p9 = pnand %p5342_p7, %p6261_p8 }
  0xe4   : > { %p5345_p10 = pneg %p5344_p9 }
  0xe6   : > { %p5350_p12 = pnand %p5348_p11, %p5345_p10 }
  0xe8   : > { %5353 = shalt.err (!%p5350_p12)
}
  0xe9   : > { %s5354_s2 = scalar_lea.vmem %s1108_s30, 256  ;;  %p5362_p13 = scmp.lt.s32.totalorder %s1108_s30, %s1108_s30 }
  0xea   : > { %p5355_p1 = scmp.ne.s32.totalorder %s1108_s30, %s5354_s2  ;;  %p5363_p0 = scmp.lt.s32.totalorder %s5354_s2, %s5354_s2 }
  0xec   : > { %p5357_p3 = pnand %p5355_p1, %p6261_p8  ;;  %p5364_p2 = por %p5363_p0, %p5362_p13 }
  0xee   : > { %p5358_p4 = pneg %p5357_p3 }
  0xf0   : > { %p5365_p5 = pnand %p5364_p2, %p5358_p4 }
  0xf2   : > { %5368 = shalt.err (!%p5365_p5)
}
  0xf3   : > { %s7079_s7 = smov 64   ;;  %s7081_s8 = smov 4  }
  0xf4   : > { %4937 = dma.hbm_to_vmem [thread:$0]  (!%p6249_p6), %s7167_s5, 256, %s1108_s30, [#allocation25], %s7079_s7, %s7079_s7, %s7081_s8  }
  0xf5   : > { %s5369_s23 = scalar_lea.hbm %s7163_s19, 16 }
  0xf6   : > { %p5370_p7 = scmp.ne.s32.totalorder %s7163_s19, %s5369_s23  ;;  %p5376_p11 = scmp.lt.u32.totalorder %s5369_s23, %s7163_s19 }
  0xf8   : > { %p5372_p9 = pnand %p5370_p7, %p6261_p8 }
  0xfa   : > { %p5373_p10 = pneg %p5372_p9 }
  0xfc   : > { %p5378_p12 = pnand %p5376_p11, %p5373_p10 }
  0xfe   : > { %5381 = shalt.err (!%p5378_p12)
}
  0xff   : > { %s5382_s9 = scalar_lea.vmem %s1136_s10, 16  ;;  %s5389_s22 = scalar_lea.vmem %s1136_s10, 32 }
 0x100   : > { %p5383_p1 = scmp.ne.s32.totalorder %s1136_s10, %s5382_s9  ;;  %p5390_p13 = scmp.lt.s32.totalorder %s1136_s10, %s1136_s10 }
 0x101   : > { %p5391_p0 = scmp.lt.s32.totalorder %s5389_s22, %s5382_s9 }
 0x102   : > { %p5385_p3 = pnand %p5383_p1, %p6261_p8 }
 0x103   : > { %p5392_p2 = por %p5391_p0, %p5390_p13 }
 0x104   : > { %p5386_p4 = pneg %p5385_p3 }
 0x106   : > { %p5393_p5 = pnand %p5392_p2, %p5386_p4 }
 0x108   : > { %5396 = shalt.err (!%p5393_p5)
}
 0x109   : > { %4943 = dma.hbm_to_vmem [thread:$0]  (!%p6249_p6), %s7163_s19, 16, %s1136_s10, [#allocation28]  }
 0x10a   : > { %s5982_s30 = smov [#allocation30]   ;;  %s5983_s23 = smov [#allocation33]  }
 0x10b   : > { %s1159_s2 = sshll.u32 %s5982_s30, 4  ;;  %s1184_s7 = sshll.u32 %s5983_s23, 4  ;;  %s1160_s2 = int_to_ptr.vmem [resolvable:$true] %s1159_s2  ;;  %s1185_s7 = int_to_ptr.vmem [resolvable:$true] %s1184_s7 }
 0x10c   : > { %s5397_s8 = scalar_lea.hbm %s7165_s13, 16 }
 0x10d   : > { %p5398_p7 = scmp.ne.s32.totalorder %s7165_s13, %s5397_s8  ;;  %p5404_p11 = scmp.lt.u32.totalorder %s5397_s8, %s7165_s13 }
 0x10f   : > { %p5400_p9 = pnand %p5398_p7, %p6261_p8 }
 0x111   : > { %p5401_p10 = pneg %p5400_p9 }
 0x113   : > { %p5406_p12 = pnand %p5404_p11, %p5401_p10 }
 0x115   : > { %5409 = shalt.err (!%p5406_p12)
}
 0x116   : > { %s5410_s9 = scalar_lea.vmem %s1160_s2, 16  ;;  %s5417_s10 = scalar_lea.vmem %s1160_s2, 32 }
 0x117   : > { %p5411_p1 = scmp.ne.s32.totalorder %s1160_s2, %s5410_s9  ;;  %p5418_p13 = scmp.lt.s32.totalorder %s1160_s2, %s1160_s2 }
 0x118   : > { %p5419_p0 = scmp.lt.s32.totalorder %s5417_s10, %s5410_s9 }
 0x119   : > { %p5413_p3 = pnand %p5411_p1, %p6261_p8 }
 0x11a   : > { %p5420_p2 = por %p5419_p0, %p5418_p13 }
 0x11b   : > { %p5414_p4 = pneg %p5413_p3 }
 0x11d   : > { %p5421_p5 = pnand %p5420_p2, %p5414_p4 }
 0x11f   : > { %5424 = shalt.err (!%p5421_p5)
}
 0x120   : > { %4949 = dma.hbm_to_vmem [thread:$0]  (!%p6249_p6), %s7165_s13, 16, %s1160_s2, [#allocation31]  }
 0x121   : > { %s5425_s8 = scalar_lea.hbm %s7164_s17, 32 }
 0x122   : > { %p5426_p7 = scmp.ne.s32.totalorder %s7164_s17, %s5425_s8  ;;  %p5432_p11 = scmp.lt.u32.totalorder %s5425_s8, %s7164_s17 }
 0x124   : > { %p5428_p9 = pnand %p5426_p7, %p6261_p8 }
 0x126   : > { %p5429_p10 = pneg %p5428_p9 }
 0x128   : > { %p5434_p12 = pnand %p5432_p11, %p5429_p10 }
 0x12a   : > { %5437 = shalt.err (!%p5434_p12)
}
 0x12b   : > { %s5438_s22 = scalar_lea.vmem %s1185_s7, 32  ;;  %p5446_p13 = scmp.lt.s32.totalorder %s1185_s7, %s1185_s7 }
 0x12c   : > { %p5439_p1 = scmp.ne.s32.totalorder %s1185_s7, %s5438_s22  ;;  %p5447_p0 = scmp.lt.s32.totalorder %s5438_s22, %s5438_s22 }
 0x12e   : > { %p5441_p3 = pnand %p5439_p1, %p6261_p8  ;;  %p5448_p2 = por %p5447_p0, %p5446_p13 }
 0x130   : > { %p5442_p4 = pneg %p5441_p3 }
 0x132   : > { %p5449_p5 = pnand %p5448_p2, %p5442_p4 }
 0x134   : > { %5452 = shalt.err (!%p5449_p5)
}
 0x135   : > { %4955 = dma.hbm_to_vmem [thread:$0]  (!%p6249_p6), %s7164_s17, 32, %s1185_s7, [#allocation34]  }
 0x136   : > { %s4339_s30 = sadd.s32 4294967294, %s5933_s18   ;;  %s6376_s2 = sadd.s32 1, %s5933_s18  }
 0x137   : > { %s165_s23 = sadd.s32 1, %s5929_s16  ;;  %s162_s9 = ssub.s32 %s5933_s18, %s6376_s2 }
 0x138   : > { %p172_p7 = scmp.ne.s32.totalorder %s5929_s16, %s5925_s0  ;;  %p163_p9 = scmp.eq.s32.totalorder %s162_s9, 0 }
 0x139   : > { %p173_p10 = scmp.eq.s32.totalorder %s5933_s18, 0  ;;  %p178_p11 = scmp.ne.s32.totalorder %s5925_s0, %s5921_s15 }
 0x13a   : > { %p952_p12 = scmp.eq.s32.totalorder %s6231_s26, 1  ;;  %p7174_p3 = scmp.eq.s32.totalorder %s6231_s26, 0 }
 0x13b   : > { %s6388_s10 = scalar_select %p163_p9, %s5929_s16, %s165_s23  }
 0x13c   : > { %p174_p1 = por %p173_p10, %p172_p7  ;;  %p6392_p4 = por %p7174_p3, %p178_p11 }
 0x13d   : > { %7173 = sst [smem:[#allocation89_spill]] %s6388_s10  ;;  %p6396_p13 = por %p952_p12, %p172_p7 }
 0x13e   : > { %s7175_s7 = scalar_select %p6392_p4, 1, 0 }
 0x13f   : > { %s7176_s8 = scalar_select %p6396_p13, 1, 0 }
 0x140   : > { %p958_p0 = scmp.eq.s32.totalorder %s4339_s30, 1  ;;  %p4995_p2 = scmp.lt.s32.totalorder %s5933_s18, 2 }
 0x141   : > { %s6402_s22 = sand.u32 1, %s5929_s16   ;;  %s1272_s23 = sand.u32 1, %s5933_s18  }
 0x142   : > { %p6404_p5 = por %p958_p0, %p178_p11  ;;  %p6409_p9 = pnand %p4995_p2, %p174_p1 }
 0x143   : > { %s4363_s12 = sshll.u32 %s5933_s18, 4  ;;  %s1275_s30 = scalar_lea.vmem [#allocation6], %s6402_s22 }
 0x144   : > { %s7177_s9 = scalar_select %p6404_p5, 1, 0 }
 0x145   : > { %s7178_s5 = scalar_select %p6409_p9, 1, 0 }
 0x146   : > { %s6415_s13 = scalar_lea.hbm %s7159_s21, %s4363_s12  ;;  %s1282_s17 = sshll.u32 %s1275_s30, 4  ;;  %s6421_s17 = int_to_ptr.vmem [resolvable:$true] %s1282_s17 }
 0x147   : > { %s6419_s19 = scalar_lea.hbm %s6043_s25, %s4363_s12  ;;  %s6423_s20 = scalar_lea.sflag [#allocation7], %s1272_s23 }
 0x148   : > { %s5453_s24 = scalar_lea.hbm %s6415_s13, 16  ;;  %p6429_p10 = pneg %p6409_p9 }
 0x149   : > { %p5454_p7 = scmp.ne.s32.totalorder %s6415_s13, %s5453_s24  ;;  %s5458_s10 = scalar_lea.hbm %s7159_s21, 32 }
 0x14a   : > { %s7179_s29 = scalar_select %p6429_p10, 1, 0 }
 0x14b   : > { %p5456_p11 = pnand %p6429_p10, %p5454_p7  ;;  %p5459_p1 = scmp.lt.u32.totalorder %s6415_s13, %s7159_s21 }
 0x14c   : > { %p5460_p3 = scmp.lt.u32.totalorder %s5458_s10, %s5453_s24  ;;  %p5462_p2 = scmp.lt.u32.totalorder %s5453_s24, %s6415_s13 }
 0x14d   : > { %p5457_p12 = pneg %p5456_p11 }
 0x14e   : > { %p5461_p0 = por %p5460_p3, %p5459_p1 }
 0x150   : > { %p5463_p5 = por %p5462_p2, %p5461_p0 }
 0x152   : > { %p5464_p13 = pnand %p5463_p5, %p5457_p12 }
 0x154   : > { %5467 = shalt.err (!%p5464_p13)
}
 0x155   : > { %s5468_s12 = scalar_lea.vmem %s6421_s17, 16  ;;  %s5984_s23 = smov [#allocation6]  }
 0x156   : > { %p5469_p4 = scmp.ne.s32.totalorder %s6421_s17, %s5468_s12  ;;  %s5473_s30 = sshll.u32 %s5984_s23, 4  ;;  %s5474_s30 = int_to_ptr.vmem [resolvable:$false] %s5473_s30 }
 0x157   : > { %s5475_s16 = scalar_lea.vmem %s5474_s30, 32  ;;  %p5476_p7 = scmp.lt.s32.totalorder %s6421_s17, %s5474_s30 }
 0x158   : > { %p5471_p6 = pnand %p5469_p4, %p6429_p10  ;;  %p5477_p11 = scmp.lt.s32.totalorder %s5475_s16, %s5468_s12 }
 0x15a   : > { %p5472_p8 = pneg %p5471_p6  ;;  %p5478_p1 = por %p5477_p11, %p5476_p7 }
 0x15c   : > { %p5479_p3 = pnand %p5478_p1, %p5472_p8 }
 0x15e   : > { %5482 = shalt.err (!%p5479_p3)
}
 0x15f   : > { %4968 = dma.hbm_to_vmem [thread:$0]  (!%p6409_p9), %s6415_s13, 16, %s6421_s17, %s6423_s20  }
 0x160   : > { %s5985_s24 = smov [#allocation11]   ;;  %s5986_s23 = smov [#allocation14]  }
 0x161   : > { %s989_s10 = sshll.u32 %s5985_s24, 4  ;;  %s1011_s21 = sshll.u32 %s5986_s23, 4  ;;  %s990_s10 = int_to_ptr.vmem [resolvable:$true] %s989_s10  ;;  %s1012_s21 = int_to_ptr.vmem [resolvable:$true] %s1011_s21 }
 0x162   : > { %s5483_s30 = scalar_lea.hbm %s7158_s3, 16  ;;  %p7180_p4 = scmp.ne.s32.totalorder %s7172_s1, 0 }
 0x163   : > { %p5484_p6 = scmp.ne.s32.totalorder %s7158_s3, %s5483_s30  ;;  %p5490_p5 = scmp.lt.u32.totalorder %s5483_s30, %s7158_s3 }
 0x165   : > { %p5486_p8 = pnand %p5484_p6, %p7180_p4 }
 0x167   : > { %p5487_p13 = pneg %p5486_p8 }
 0x169   : > { %p5492_p12 = pnand %p5490_p5, %p5487_p13 }
 0x16b   : > { %5495 = shalt.err (!%p5492_p12)
}
 0x16c   : > { %s5496_s16 = scalar_lea.vmem %s990_s10, 16  ;;  %s5503_s13 = scalar_lea.vmem %s990_s10, 32 }
 0x16d   : > { %p5497_p0 = scmp.ne.s32.totalorder %s990_s10, %s5496_s16  ;;  %p5504_p11 = scmp.lt.s32.totalorder %s990_s10, %s990_s10 }
 0x16e   : > { %p5505_p1 = scmp.lt.s32.totalorder %s5503_s13, %s5496_s16 }
 0x16f   : > { %p5499_p2 = pnand %p5497_p0, %p7180_p4 }
 0x170   : > { %p5506_p3 = por %p5505_p1, %p5504_p11 }
 0x171   : > { %p5500_p7 = pneg %p5499_p2 }
 0x173   : > { %p5507_p9 = pnand %p5506_p3, %p5500_p7 }
 0x175   : > { %5510 = shalt.err (!%p5507_p9)
}
 0x176   : > { %p7181_p10 = scmp.ne.s32.totalorder %s7171_s11, 0  ;;  %s5511_s17 = scalar_lea.hbm %s7156_s14, 16 }
 0x177   : > { %p5512_p6 = scmp.ne.s32.totalorder %s7156_s14, %s5511_s17  ;;  %p5518_p5 = scmp.lt.u32.totalorder %s5511_s17, %s7156_s14 }
 0x178   : > { %4910 = dma.hbm_to_vmem [thread:$0]  (!%p7181_p10), %s7158_s3, 16, %s990_s10, [#allocation10]  }
 0x179   : > { %p5514_p8 = pnand %p5512_p6, %p7180_p4 }
 0x17b   : > { %p5515_p13 = pneg %p5514_p8 }
 0x17d   : > { %p5520_p12 = pnand %p5518_p5, %p5515_p13 }
 0x17f   : > { %5523 = shalt.err (!%p5520_p12)
}
 0x180   : > { %s5524_s12 = scalar_lea.vmem %s1012_s21, 16  ;;  %s5531_s24 = scalar_lea.vmem %s1012_s21, 32 }
 0x181   : > { %p5525_p9 = scmp.ne.s32.totalorder %s1012_s21, %s5524_s12  ;;  %p5532_p7 = scmp.lt.s32.totalorder %s1012_s21, %s1012_s21 }
 0x182   : > { %p5533_p11 = scmp.lt.s32.totalorder %s5531_s24, %s5524_s12 }
 0x183   : > { %p5527_p0 = pnand %p5525_p9, %p7180_p4 }
 0x184   : > { %p5534_p1 = por %p5533_p11, %p5532_p7 }
 0x185   : > { %p5528_p2 = pneg %p5527_p0 }
 0x187   : > { %p5535_p3 = pnand %p5534_p1, %p5528_p2 }
 0x189   : > { %5538 = shalt.err (!%p5535_p3)
}
 0x18a   : > { %4916 = dma.hbm_to_vmem [thread:$0]  (!%p7181_p10), %s7156_s14, 16, %s1012_s21, [#allocation13]  }
 0x18b   : > { %s5987_s10 = smov [#allocation17]   ;;  %s5988_s30 = smov [#allocation20]  }
 0x18c   : > { %s1039_s23 = sshll.u32 %s5987_s10, 4  ;;  %s1069_s16 = sshll.u32 %s5988_s30, 4  ;;  %s1040_s23 = int_to_ptr.vmem [resolvable:$true] %s1039_s23  ;;  %s1070_s16 = int_to_ptr.vmem [resolvable:$true] %s1069_s16 }
 0x18d   : > { %s5539_s13 = scalar_lea.hbm %s7157_s6, 16 }
 0x18e   : > { %p5540_p6 = scmp.ne.s32.totalorder %s7157_s6, %s5539_s13  ;;  %p5546_p5 = scmp.lt.u32.totalorder %s5539_s13, %s7157_s6 }
 0x190   : > { %p5542_p8 = pnand %p5540_p6, %p7180_p4 }
 0x192   : > { %p5543_p13 = pneg %p5542_p8 }
 0x194   : > { %p5548_p12 = pnand %p5546_p5, %p5543_p13 }
 0x196   : > { %5551 = shalt.err (!%p5548_p12)
}
 0x197   : > { %s5552_s17 = scalar_lea.vmem %s1040_s23, 16  ;;  %s5559_s21 = scalar_lea.vmem %s1040_s23, 32 }
 0x198   : > { %p5553_p9 = scmp.ne.s32.totalorder %s1040_s23, %s5552_s17  ;;  %p5560_p7 = scmp.lt.s32.totalorder %s1040_s23, %s1040_s23 }
 0x199   : > { %p5561_p11 = scmp.lt.s32.totalorder %s5559_s21, %s5552_s17 }
 0x19a   : > { %p5555_p0 = pnand %p5553_p9, %p7180_p4 }
 0x19b   : > { %p5562_p1 = por %p5561_p11, %p5560_p7 }
 0x19c   : > { %p5556_p2 = pneg %p5555_p0 }
 0x19e   : > { %p5563_p3 = pnand %p5562_p1, %p5556_p2 }
 0x1a0   : > { %5566 = shalt.err (!%p5563_p3)
}
 0x1a1   : > { %s7182_s12 = sld [smem:[#allocation69_spill]] }
 0x1a2   : > { %4922 = dma.hbm_to_vmem [thread:$0]  (!%p7181_p10), %s7157_s6, 16, %s1040_s23, [#allocation16]  }
 0x1a7   : > { %s5567_s24 = scalar_lea.hbm %s7182_s12, 256 }
 0x1a8   : > { %p5568_p6 = scmp.ne.s32.totalorder %s7182_s12, %s5567_s24  ;;  %p5574_p5 = scmp.lt.u32.totalorder %s5567_s24, %s7182_s12 }
 0x1aa   : > { %p5570_p8 = pnand %p5568_p6, %p7180_p4 }
 0x1ac   : > { %p5571_p13 = pneg %p5570_p8 }
 0x1ae   : > { %p5576_p12 = pnand %p5574_p5, %p5571_p13 }
 0x1b0   : > { %5579 = shalt.err (!%p5576_p12)
}
 0x1b1   : > { %s5580_s10 = scalar_lea.vmem %s1070_s16, 256  ;;  %p5588_p7 = scmp.lt.s32.totalorder %s1070_s16, %s1070_s16 }
 0x1b2   : > { %p5581_p9 = scmp.ne.s32.totalorder %s1070_s16, %s5580_s10  ;;  %p5589_p11 = scmp.lt.s32.totalorder %s5580_s10, %s5580_s10 }
 0x1b4   : > { %p5583_p0 = pnand %p5581_p9, %p7180_p4  ;;  %p5590_p1 = por %p5589_p11, %p5588_p7 }
 0x1b6   : > { %p5584_p2 = pneg %p5583_p0 }
 0x1b8   : > { %p5591_p3 = pnand %p5590_p1, %p5584_p2 }
 0x1ba   : > { %5594 = shalt.err (!%p5591_p3)
}
 0x1bb   : > { %s7183_s23 = smov 4   ;;  %s7184_s30 = smov 64  }
 0x1bc   : > { %s7185_s13 = sld [smem:[#allocation72_spill]]  ;;  %s5989_s17 = smov [#allocation23]  }
 0x1bd   : > { %4928 = dma.hbm_to_vmem [thread:$0]  (!%p7181_p10), %s7182_s12, 256, %s1070_s16, [#allocation19], %s7184_s30, %s7184_s30, %s7183_s23  }
 0x1be   : > { %s1097_s21 = sshll.u32 %s5989_s17, 4  ;;  %s5990_s24 = smov [#allocation26]   ;;  %s1098_s21 = int_to_ptr.vmem [resolvable:$true] %s1097_s21 }
 0x1bf   : > { %s1121_s3 = sshll.u32 %s5990_s24, 4  ;;  %s1122_s3 = int_to_ptr.vmem [resolvable:$true] %s1121_s3 }
 0x1c2   : > { %s5595_s10 = scalar_lea.hbm %s7185_s13, 16 }
 0x1c3   : > { %p5596_p6 = scmp.ne.s32.totalorder %s7185_s13, %s5595_s10  ;;  %p5602_p5 = scmp.lt.u32.totalorder %s5595_s10, %s7185_s13 }
 0x1c5   : > { %p5598_p8 = pnand %p5596_p6, %p7180_p4 }
 0x1c7   : > { %p5599_p13 = pneg %p5598_p8 }
 0x1c9   : > { %p5604_p12 = pnand %p5602_p5, %p5599_p13 }
 0x1cb   : > { %5607 = shalt.err (!%p5604_p12)
}
 0x1cc   : > { %s5608_s6 = scalar_lea.vmem %s1098_s21, 16  ;;  %s5615_s16 = scalar_lea.vmem %s1098_s21, 32 }
 0x1cd   : > { %p5609_p9 = scmp.ne.s32.totalorder %s1098_s21, %s5608_s6  ;;  %p5616_p7 = scmp.lt.s32.totalorder %s1098_s21, %s1098_s21 }
 0x1ce   : > { %p5617_p11 = scmp.lt.s32.totalorder %s5615_s16, %s5608_s6 }
 0x1cf   : > { %p5611_p0 = pnand %p5609_p9, %p7180_p4 }
 0x1d0   : > { %p5618_p1 = por %p5617_p11, %p5616_p7 }
 0x1d1   : > { %p5612_p2 = pneg %p5611_p0 }
 0x1d3   : > { %p5619_p3 = pnand %p5618_p1, %p5612_p2 }
 0x1d5   : > { %5622 = shalt.err (!%p5619_p3)
}
 0x1d6   : > { %s7186_s17 = sld [smem:[#allocation74_spill]] }
 0x1d7   : > { %4934 = dma.hbm_to_vmem [thread:$0]  (!%p7181_p10), %s7185_s13, 16, %s1098_s21, [#allocation22]  }
 0x1dc   : > { %s5623_s24 = scalar_lea.hbm %s7186_s17, 16 }
 0x1dd   : > { %p5624_p6 = scmp.ne.s32.totalorder %s7186_s17, %s5623_s24  ;;  %p5630_p5 = scmp.lt.u32.totalorder %s5623_s24, %s7186_s17 }
 0x1df   : > { %p5626_p8 = pnand %p5624_p6, %p7180_p4 }
 0x1e1   : > { %p5627_p13 = pneg %p5626_p8 }
 0x1e3   : > { %p5632_p12 = pnand %p5630_p5, %p5627_p13 }
 0x1e5   : > { %5635 = shalt.err (!%p5632_p12)
}
 0x1e6   : > { %s5636_s6 = scalar_lea.vmem %s1122_s3, 16  ;;  %s5643_s10 = scalar_lea.vmem %s1122_s3, 32 }
 0x1e7   : > { %p5637_p9 = scmp.ne.s32.totalorder %s1122_s3, %s5636_s6  ;;  %p5644_p7 = scmp.lt.s32.totalorder %s1122_s3, %s1122_s3 }
 0x1e8   : > { %p5645_p11 = scmp.lt.s32.totalorder %s5643_s10, %s5636_s6 }
 0x1e9   : > { %p5639_p0 = pnand %p5637_p9, %p7180_p4 }
 0x1ea   : > { %p5646_p1 = por %p5645_p11, %p5644_p7 }
 0x1eb   : > { %p5640_p2 = pneg %p5639_p0 }
 0x1ed   : > { %p5647_p3 = pnand %p5646_p1, %p5640_p2 }
 0x1ef   : > { %5650 = shalt.err (!%p5647_p3)
}
 0x1f0   : > { %s7187_s21 = sld [smem:[#allocation77_spill]]  ;;  %s5991_s16 = smov [#allocation29]  }
 0x1f1   : > { %4940 = dma.hbm_to_vmem [thread:$0]  (!%p7181_p10), %s7186_s17, 16, %s1122_s3, [#allocation25]  }
 0x1f2   : > { %s1145_s24 = sshll.u32 %s5991_s16, 4  ;;  %s5992_s12 = smov [#allocation32]   ;;  %s1146_s24 = int_to_ptr.vmem [resolvable:$true] %s1145_s24 }
 0x1f3   : > { %s1173_s13 = sshll.u32 %s5992_s12, 4  ;;  %s1174_s13 = int_to_ptr.vmem [resolvable:$true] %s1173_s13 }
 0x1f6   : > { %s5651_s14 = scalar_lea.hbm %s7187_s21, 256 }
 0x1f7   : > { %p5652_p6 = scmp.ne.s32.totalorder %s7187_s21, %s5651_s14  ;;  %p5658_p5 = scmp.lt.u32.totalorder %s5651_s14, %s7187_s21 }
 0x1f9   : > { %p5654_p8 = pnand %p5652_p6, %p7180_p4 }
 0x1fb   : > { %p5655_p13 = pneg %p5654_p8 }
 0x1fd   : > { %p5660_p12 = pnand %p5658_p5, %p5655_p13 }
 0x1ff   : > { %5663 = shalt.err (!%p5660_p12)
}
 0x200   : > { %s5664_s6 = scalar_lea.vmem %s1146_s24, 256  ;;  %p5672_p7 = scmp.lt.s32.totalorder %s1146_s24, %s1146_s24 }
 0x201   : > { %p5665_p9 = scmp.ne.s32.totalorder %s1146_s24, %s5664_s6  ;;  %p5673_p11 = scmp.lt.s32.totalorder %s5664_s6, %s5664_s6 }
 0x203   : > { %p5667_p0 = pnand %p5665_p9, %p7180_p4  ;;  %p5674_p1 = por %p5673_p11, %p5672_p7 }
 0x205   : > { %p5668_p2 = pneg %p5667_p0 }
 0x207   : > { %p5675_p3 = pnand %p5674_p1, %p5668_p2 }
 0x209   : > { %5678 = shalt.err (!%p5675_p3)
}
 0x20a   : > { %s7188_s3 = sld [smem:[#allocation80_spill]] }
 0x20b   : > { %4946 = dma.hbm_to_vmem [thread:$0]  (!%p7181_p10), %s7187_s21, 256, %s1146_s24, [#allocation28], %s7184_s30, %s7184_s30, %s7183_s23  }
 0x210   : > { %s5679_s14 = scalar_lea.hbm %s7188_s3, 16 }
 0x211   : > { %p5680_p6 = scmp.ne.s32.totalorder %s7188_s3, %s5679_s14  ;;  %p5686_p5 = scmp.lt.u32.totalorder %s5679_s14, %s7188_s3 }
 0x213   : > { %p5682_p8 = pnand %p5680_p6, %p7180_p4 }
 0x215   : > { %p5683_p13 = pneg %p5682_p8 }
 0x217   : > { %p5688_p12 = pnand %p5686_p5, %p5683_p13 }
 0x219   : > { %5691 = shalt.err (!%p5688_p12)
}
 0x21a   : > { %s5692_s12 = scalar_lea.vmem %s1174_s13, 16  ;;  %s5699_s10 = scalar_lea.vmem %s1174_s13, 32 }
 0x21b   : > { %p5693_p9 = scmp.ne.s32.totalorder %s1174_s13, %s5692_s12  ;;  %p5700_p7 = scmp.lt.s32.totalorder %s1174_s13, %s1174_s13 }
 0x21c   : > { %p5701_p11 = scmp.lt.s32.totalorder %s5699_s10, %s5692_s12 }
 0x21d   : > { %p5695_p0 = pnand %p5693_p9, %p7180_p4 }
 0x21e   : > { %p5702_p1 = por %p5701_p11, %p5700_p7 }
 0x21f   : > { %p5696_p2 = pneg %p5695_p0 }
 0x221   : > { %p5703_p3 = pnand %p5702_p1, %p5696_p2 }
 0x223   : > { %5706 = shalt.err (!%p5703_p3)
}
 0x224   : > { %s7189_s23 = sld [smem:[#allocation82_spill]]  ;;  %s5993_s30 = smov [#allocation35]  }
 0x225   : > { %4952 = dma.hbm_to_vmem [thread:$0]  (!%p7181_p10), %s7188_s3, 16, %s1174_s13, [#allocation31]  }
 0x226   : > { %s1195_s16 = sshll.u32 %s5993_s30, 4  ;;  %s5994_s24 = smov [#allocation36]   ;;  %s1196_s16 = int_to_ptr.vmem [resolvable:$true] %s1195_s16 }
 0x227   : > { %s1206_s6 = sshll.u32 %s5994_s24, 4  ;;  %s1207_s6 = int_to_ptr.vmem [resolvable:$true] %s1206_s6 }
 0x22a   : > { %s5707_s14 = scalar_lea.hbm %s7189_s23, 32 }
 0x22b   : > { %p5708_p6 = scmp.ne.s32.totalorder %s7189_s23, %s5707_s14  ;;  %p5714_p5 = scmp.lt.u32.totalorder %s5707_s14, %s7189_s23 }
 0x22d   : > { %p5710_p8 = pnand %p5708_p6, %p7180_p4 }
 0x22f   : > { %p5711_p13 = pneg %p5710_p8 }
 0x231   : > { %p5716_p12 = pnand %p5714_p5, %p5711_p13 }
 0x233   : > { %5719 = shalt.err (!%p5716_p12)
}
 0x234   : > { %s5720_s12 = scalar_lea.vmem %s1196_s16, 32  ;;  %p5728_p7 = scmp.lt.s32.totalorder %s1196_s16, %s1196_s16 }
 0x235   : > { %p5721_p9 = scmp.ne.s32.totalorder %s1196_s16, %s5720_s12  ;;  %p5729_p11 = scmp.lt.s32.totalorder %s5720_s12, %s5720_s12 }
 0x237   : > { %p5723_p0 = pnand %p5721_p9, %p7180_p4  ;;  %p5730_p1 = por %p5729_p11, %p5728_p7 }
 0x239   : > { %p5724_p2 = pneg %p5723_p0 }
 0x23b   : > { %p5731_p3 = pnand %p5730_p1, %p5724_p2 }
 0x23d   : > { %5734 = shalt.err (!%p5731_p3)
}
 0x23e   : > { %s7190_s13 = sld [smem:[#allocation83_spill]] }
 0x23f   : > { %4958 = dma.hbm_to_vmem [thread:$0]  (!%p7181_p10), %s7189_s23, 32, %s1196_s16, [#allocation34]  }
 0x244   : > { %s5735_s10 = scalar_lea.hbm %s7190_s13, 32 }
 0x245   : > { %p5736_p6 = scmp.ne.s32.totalorder %s7190_s13, %s5735_s10  ;;  %p5742_p5 = scmp.lt.u32.totalorder %s5735_s10, %s7190_s13 }
 0x247   : > { %p5738_p8 = pnand %p5736_p6, %p7180_p4 }
 0x249   : > { %p5739_p13 = pneg %p5738_p8 }
 0x24b   : > { %p5744_p12 = pnand %p5742_p5, %p5739_p13 }
 0x24d   : > { %5747 = shalt.err (!%p5744_p12)
}
 0x24e   : > { %s5748_s30 = scalar_lea.vmem %s1207_s6, 32  ;;  %p5756_p7 = scmp.lt.s32.totalorder %s1207_s6, %s1207_s6 }
 0x24f   : > { %p5749_p9 = scmp.ne.s32.totalorder %s1207_s6, %s5748_s30  ;;  %p5757_p11 = scmp.lt.s32.totalorder %s5748_s30, %s5748_s30 }
 0x251   : > { %p5751_p0 = pnand %p5749_p9, %p7180_p4  ;;  %p5758_p1 = por %p5757_p11, %p5756_p7 }
 0x253   : > { %p5752_p2 = pneg %p5751_p0 }
 0x255   : > { %p5759_p3 = pnand %p5758_p1, %p5752_p2 }
 0x257   : > { %5762 = shalt.err (!%p5759_p3)
}
 0x258   : > { %s7191_s16 = sld [smem:[#allocation54_spill]]  ;;  %s4361_s1 = sshll.u32 %s6402_s22, 3 }
 0x259   : > { %4961 = dma.hbm_to_vmem [thread:$0]  (!%p7181_p10), %s7190_s13, 32, %s1207_s6, [#allocation37]  }
 0x25a   : > { %s4362_s14 = sshll.u32 %s5933_s18, 7  ;;  %s1251_s10 = scalar_lea.vmem [#allocation3], %s4361_s1 }
 0x25b   : > { %s1258_s11 = sshll.u32 %s1251_s10, 4  ;;  %s1292_s30 = scalar_lea.vmem [#allocation8], %s6402_s22  ;;  %s6560_s11 = int_to_ptr.vmem [resolvable:$true] %s1258_s11 }
 0x25c   : > { %s6563_s3 = sshll.u32 %s1292_s30, 4  ;;  %s1248_s17 = scalar_lea.sflag [#allocation4], %s6402_s22  ;;  %s1300_s3 = int_to_ptr.vmem [resolvable:$true] %s6563_s3 }
 0x25d   : > { %p7193_p6 = scmp.ne.s32.totalorder %s7179_s29, 0 }
 0x25e   : > { %s7192_s24 = smov %s7191_s16  ;;  %s6558_s12 = scalar_lea.hbm %s7191_s16, %s4362_s14 }
 0x25f   : > { %s5763_s21 = scalar_lea.hbm %s6558_s12, 128  ;;  %s5768_s6 = scalar_lea.hbm %s7192_s24, 256 }
 0x260   : > { %p5764_p4 = scmp.ne.s32.totalorder %s6558_s12, %s5763_s21  ;;  %p5769_p13 = scmp.lt.u32.totalorder %s6558_s12, %s7192_s24 }
 0x261   : > { %p5770_p5 = scmp.lt.u32.totalorder %s5768_s6, %s5763_s21  ;;  %p5772_p9 = scmp.lt.u32.totalorder %s5763_s21, %s6558_s12 }
 0x262   : > { %p5766_p10 = pnand %p5764_p4, %p7193_p6 }
 0x263   : > { %p5771_p12 = por %p5770_p5, %p5769_p13 }
 0x264   : > { %p5767_p8 = pneg %p5766_p10 }
 0x265   : > { %p5773_p0 = por %p5772_p9, %p5771_p12 }
 0x267   : > { %p5774_p2 = pnand %p5773_p0, %p5767_p8 }
 0x269   : > { %5777 = shalt.err (!%p5774_p2)
}
 0x26a   : > { %s5778_s16 = scalar_lea.vmem %s6560_s11, 128  ;;  %s5995_s22 = smov [#allocation3]  }
 0x26b   : > { %p5779_p7 = scmp.ne.s32.totalorder %s6560_s11, %s5778_s16  ;;  %s5783_s1 = sshll.u32 %s5995_s22, 4  ;;  %s5784_s1 = int_to_ptr.vmem [resolvable:$false] %s5783_s1 }
 0x26c   : > { %s5785_s14 = scalar_lea.vmem %s5784_s1, 256  ;;  %p5786_p3 = scmp.lt.s32.totalorder %s6560_s11, %s5784_s1 }
 0x26d   : > { %p5781_p11 = pnand %p5779_p7, %p7193_p6  ;;  %p5787_p4 = scmp.lt.s32.totalorder %s5785_s14, %s5778_s16 }
 0x26f   : > { %p5782_p1 = pneg %p5781_p11  ;;  %p5788_p10 = por %p5787_p4, %p5786_p3 }
 0x271   : > { %p5789_p13 = pnand %p5788_p10, %p5782_p1 }
 0x273   : > { %5792 = shalt.err (!%p5789_p13)
}
 0x274   : > { %p7194_p8 = scmp.ne.s32.totalorder %s7178_s5, 0  ;;  %s5793_s21 = scalar_lea.hbm %s6419_s19, 16 }
 0x275   : > { %p5794_p5 = scmp.ne.s32.totalorder %s6419_s19, %s5793_s21  ;;  %s5798_s10 = scalar_lea.hbm %s6043_s25, 32 }
 0x276   : > { %4965 = dma.hbm_to_vmem [thread:$0]  (!%p7194_p8), %s6558_s12, 128, %s6560_s11, %s1248_s17  }
 0x277   : > { %p5796_p12 = pnand %p5794_p5, %p7193_p6  ;;  %p5799_p0 = scmp.lt.u32.totalorder %s6419_s19, %s6043_s25 }
 0x278   : > { %p5800_p2 = scmp.lt.u32.totalorder %s5798_s10, %s5793_s21  ;;  %p5802_p11 = scmp.lt.u32.totalorder %s5793_s21, %s6419_s19 }
 0x279   : > { %p5797_p9 = pneg %p5796_p12 }
 0x27a   : > { %p5801_p7 = por %p5800_p2, %p5799_p0 }
 0x27c   : > { %p5803_p1 = por %p5802_p11, %p5801_p7 }
 0x27e   : > { %p5804_p3 = pnand %p5803_p1, %p5797_p9 }
 0x280   : > { %5807 = shalt.err (!%p5804_p3)
}
 0x281   : > { %s5808_s30 = scalar_lea.vmem %s1300_s3, 16  ;;  %s5996_s17 = smov [#allocation8]  }
 0x282   : > { %p5809_p4 = scmp.ne.s32.totalorder %s1300_s3, %s5808_s30  ;;  %s5813_s12 = sshll.u32 %s5996_s17, 4  ;;  %s5814_s12 = int_to_ptr.vmem [resolvable:$false] %s5813_s12 }
 0x283   : > { %s5815_s11 = scalar_lea.vmem %s5814_s12, 32  ;;  %p5816_p5 = scmp.lt.s32.totalorder %s1300_s3, %s5814_s12 }
 0x284   : > { %p5811_p10 = pnand %p5809_p4, %p7193_p6  ;;  %p5817_p12 = scmp.lt.s32.totalorder %s5815_s11, %s5808_s30 }
 0x286   : > { %p5812_p13 = pneg %p5811_p10  ;;  %p5818_p8 = por %p5817_p12, %p5816_p5 }
 0x288   : > { %p5819_p0 = pnand %p5818_p8, %p5812_p13 }
 0x28a   : > { %5822 = shalt.err (!%p5819_p0)
}
 0x28b   : > { %p7195_p2 = scmp.ne.s32.totalorder %s7178_s5, 0  ;;  %p7196_p9 = scmp.ne.s32.totalorder %s7170_s28, 0 }
 0x28c   : > { %s6601_s29 = sand.u32 (!%p7196_p9), 1, %s5925_s0   ;;  %p7197_p6 = scmp.ne.s32.totalorder (!%p7196_p9), %s7175_s7, 0 }
 0x28d   : > { %4971 = dma.hbm_to_vmem [thread:$0]  (!%p7195_p2), %s6419_s19, 16, %s1300_s3, %s6423_s20  }
 0x28e   : > { %1308 = sbr.rel (%p7196_p9) target bundleno = 6750 (0x1a5e), region = 172  ;;  %s7111_s6 = sshll.u32 (!%p7196_p9), %s6601_s29, 3 }
 0x28f   : > { %s1311_s16 = scalar_lea.sflag (!%p7196_p9), [#allocation4], %s6601_s29  ;;  %s6607_s22 = scalar_lea.vmem (!%p7196_p9), [#allocation3], %s7111_s6 }
 0x295   : > { %5868 = dma.done.wait (%p7197_p6), %s1311_s16, 128  }
 0x296   : > { %5870 = vsyncadd (%p7197_p6), %s1311_s16, 4294967168  ;;  %s1319_s5 = sand.u32 1, %s6231_s26   ;;  %s1322_s20 = scalar_lea.vmem [#allocation6], %s6601_s29 }
 0x297   : > { %s1320_s19 = scalar_lea.sflag [#allocation7], %s1319_s5 }
 0x298   : > { %5872 = dma.done.wait (%p7197_p6), %s1320_s19, 32  }
 0x299   : > { %5874 = vsyncadd (%p7197_p6), %s1320_s19, 4294967264  ;;  %s1330_s28 = scalar_lea.vmem [#allocation8], %s6601_s29  ;;  %p7198_p8 = scmp.eq.s32.totalorder %s6231_s26, 0 }
 0x29b   : > { %5876 = dma.done.wait (%p7198_p8), [#allocation10], 80   ;;  %p7199_p7 = pmov %p7198_p8 }
 0x29d   : > { %5878 = vsyncadd (%p7199_p7), [#allocation10], 4294967216  ;;  %p7200_p11 = pmov %p7199_p7 }
 0x29e   : > { %p7201_p1 = pmov %p7199_p7 }
 0x29f   : > { %5880 = dma.done.wait (%p7200_p11), [#allocation13], 32  }
 0x2a0   : > { %5882 = vsyncadd (%p7201_p1), [#allocation13], 4294967264  ;;  %p7202_p3 = pmov %p7201_p1 }
 0x2a1   : > { %p7203_p4 = pmov %p7201_p1 }
 0x2a2   : > { %5884 = dma.done.wait (%p7202_p3), [#allocation16], 32  }
 0x2a3   : > { %5886 = vsyncadd (%p7203_p4), [#allocation16], 4294967264  ;;  %p7204_p10 = pmov %p7201_p1 }
 0x2a4   : > { %p7205_p13 = pmov %p7201_p1 }
 0x2a5   : > { %5888 = dma.done.wait (%p7204_p10), [#allocation19], 272  }
 0x2a6   : > { %5890 = vsyncadd (%p7205_p13), [#allocation19], 4294967024  ;;  %p7206_p5 = pmov %p7201_p1 }
 0x2a7   : > { %p7207_p12 = pmov %p7201_p1 }
 0x2a8   : > { %5892 = dma.done.wait (%p7206_p5), [#allocation22], 32  }
 0x2a9   : > { %5894 = vsyncadd (%p7207_p12), [#allocation22], 4294967264  ;;  %p7208_p0 = pmov %p7201_p1 }
 0x2ab   : > { %5896 = dma.done.wait (%p7208_p0), [#allocation25], 272   ;;  %p7209_p2 = pmov %p7208_p0 }
 0x2ac   : > { %p7210_p9 = pmov %p7208_p0 }
 0x2ad   : > { %5898 = vsyncadd (%p7209_p2), [#allocation25], 4294967024 }
 0x2ae   : > { %5900 = dma.done.wait (%p7210_p9), [#allocation28], 272   ;;  %p7211_p6 = pmov %p7208_p0 }
 0x2af   : > { %p7212_p8 = pmov %p7208_p0 }
 0x2b0   : > { %5902 = vsyncadd (%p7211_p6), [#allocation28], 4294967024 }
 0x2b1   : > { %5904 = dma.done.wait (%p7212_p8), [#allocation31], 32   ;;  %p7213_p7 = pmov %p7208_p0 }
 0x2b2   : > { %p7214_p11 = pmov %p7208_p0 }
 0x2b3   : > { %5906 = vsyncadd (%p7213_p7), [#allocation31], 4294967264 }
 0x2b4   : > { %5908 = dma.done.wait (%p7214_p11), [#allocation34], 64   ;;  %p7215_p1 = pmov %p7208_p0 }
 0x2b5   : > { %p7216_p3 = pmov %p7208_p0 }
 0x2b6   : > { %5910 = vsyncadd (%p7215_p1), [#allocation34], 4294967232 }
 0x2b7   : > { %5912 = dma.done.wait (%p7216_p3), [#allocation37], 32   ;;  %p7217_p4 = pmov %p7208_p0 }
 0x2b8   : > { %s7218_s7 = sld [smem:[#allocation55_spill]]  ;;  %p1520_p10 = scmp.lt.s32.totalorder %s6231_s26, 1  ;;  %v5997_v0 = vmov 0.0   ;;  %vm5998_vm0 = vmmov 0   ;;  %vm1549_vm1 = vcmask 1042432   ;;  %vm1545_vm2 = vcmask 48128  }
 0x2b9   : > { %5914 = vsyncadd (%p7217_p4), [#allocation37], 4294967264  ;;  %4570 = vmatprep.subr.bf16.mxu1 %v5997_v0  ;;  %4572 = vmatprep.mubr.msk.bf16.mxu1 %vm5998_vm0, %v5997_v0  ;;  %s7219_s3 = sld [smem:[#allocation61_spill]]  ;;  %v1537_v1 = vld [vmem:[#allocation9] sm:$0x7]  ;;  %s7220_s10 = sld [smem:[#allocation63_spill]]  ;;  %v1870_v59 = vlaneseq }
 0x2ba   : > { %s6665_s1 = scalar_select %p1520_p10, %s6231_s26, 1  ;;  %4584 = vmatprep.subr.bf16.mxu0 %v5997_v0  ;;  %4588 = vmatprep.mubr.msk.bf16.mxu0 %vm5998_vm0, %v5997_v0  ;;  %v1551_v3 = vsel %vm1549_vm1, %v1537_v1, 0  ;;  %v4391_v7 = vld [vmem:[#allocation11] ss:$0 sm:$0xff]  ;;  %v4393_v9 = vld [vmem:[#allocation12] ss:$0 sm:$0xff] }
 0x2bb   : > { %4571 = vmatpush3.bf16.msra.mxu1 %v1551_v3  ;;  %v4394_v12 = vld [vmem:[#allocation14] ss:$0 sm:$0xff]  ;;  %s7221_s30 = sld [smem:[#allocation52_spill]]  ;;  %vm1634_vm3 = vcmask 261120   ;;  %v4395_v21 = vld [vmem:[#allocation15] ss:$0 sm:$0xff] }
 0x2bc   : > { %s4387_s14 = sshll.u32 %s6665_s1, 3  ;;  %4576 = vmatprep.subr.bf16.mxu1 %v5997_v0  ;;  %s7222_s12 = sld [smem:[#allocation65_spill]]  ;;  %v4399_v30 = vld [vmem:[#allocation17] ss:$0 sm:$0xff]  ;;  %vm1821_vm4 = vcmask 64512   ;;  %vm1891_vm5 = vcmask 1043456  }
 0x2bd   : > { %s5999_s11 = smov 120   ;;  %s6000_s16 = smov 96   ;;  %v4403_v51 = vld [vmem:[#allocation18] ss:$0 sm:$0xff]  ;;  %v6738_v60 = vshrl.u32 %v1870_v59, 7  ;;  %vm2056_vm6 = vcmask 130112  }
 0x2be   : > { %s1532_s21 = scalar_lea.vmem %s7218_s7, %s4387_s14  ;;  %s6001_s5 = smov 80   ;;  %v1678_v61 = vld [vmem:[%s1322_s20] sm:$0x1]  ;;  %vm2175_vm7 = vcmask 195712   ;;  %vm2294_vm8 = vcmask 261312   ;;  %vm3282_vm9 = vcmask 130048  }
 0x2bf   : > { %v1535_v2 = vld [vmem:[%s1532_s21] sm:$0xff]  ;;  %v5120_v6 = vld [vmem:[%s7219_s3 + $0x8] sm:$0xff]   ;;  %s7117_s19 = smov 88   ;;  %s7118_s7 = smov 72   ;;  %v1679_v62 = vmul.f32 -1e+30, %v1678_v61 }
 0x2c0   : > { %v1536_v4 = vpack.c.bf16 %v1535_v2, %v1535_v2  ;;  %v5119_v5 = vld [vmem:[%s7219_s3] sm:$0xff]   ;;  %v5122_v20 = vld [vmem:[%s7220_s10 + $0x8] sm:$0xff]   ;;  %s6005_s21 = smov 104   ;;  %v1872_v63 = vsub.s32 0, %v6738_v60  ;;  %s7223_s20 = sld [smem:[#allocation67_spill]]  ;;  %vm3892_vm10 = vcmask 523264  }
 0x2c1   : > { %v5121_v19 = vld [vmem:[%s7220_s10] sm:$0xff]   ;;  %s1523_s17 = scalar_lea.vmem %s7221_s30, %s4387_s14  ;;  %s6004_s14 = smov 112  }
 0x2c2   : > { %4573 = vmatmul.mubr.msk.bf16.vlgmr.msra.gmra.mrb[0].mxu1 %vm1545_vm2, %v1536_v4  ;;  %4585 = vmatpush3.bf16.msra.mxu0 %v5121_v19  ;;  %v6691_v22 = vld [vmem:[%s1523_s17] sm:$0xff]  ;;  %v5124_v38 = vld [vmem:[%s7222_s12 + $0x8] sm:$0xff]   ;;  %v1873_v1 = vrot.slane %v1679_v62, %v1872_v63  ;;  %s7112_s30 = smov 8   ;;  %s7116_s17 = smov 16  }
 0x2c3   : > { %4580 = vmatprep.mubr.msk.bf16.mxu1 %vm5998_vm0, %v5997_v0  ;;  %4577 = vmatpush3.bf16.msra.mxu1 %v5119_v5  ;;  %v5123_v37 = vld [vmem:[%s7222_s12] sm:$0xff]   ;;  %v1750_v39 = vpack.c.bf16 %v6691_v22, %v6691_v22  ;;  %s7114_s6 = smov 24   ;;  %p7240_p5 = scmp.ne.s32.totalorder %s7176_s8, 0 }
 0x2c4   : > { %4578 = vmatprep.subr.bf16.mxu1 %v5997_v0  ;;  %4586 = vmatprep.subr.bf16.mxu0 %v5997_v0 }
 0x2c6   : > { %4587 = vmatpush3.bf16.msra.mxu0 %v5122_v20 }
 0x2c7   : > { %4579 = vmatpush3.bf16.msra.mxu1 %v5120_v6  ;;  %4600 = vmatprep.subr.bf16.mxu0 %v5997_v0 }
 0x2c8   : > { %4592 = vmatprep.subr.bf16.mxu1 %v5997_v0 }
 0x395   : > { %v1587_v8 = vpop.f32.mrb[0].mxu1 }
 0x396   : > { %v1588_v10 = vadd.f32 %v4391_v7, %v1587_v8  ;;  %v4574_v11 = vpop.f32.mrb[1].mxu1 }
 0x397   : > { %v1590_v13 = vpop.f32.mrb[2].mxu1 }
 0x398   : > { %v1600_v14 = vmul.f32 %v4393_v9, %v1588_v10  ;;  %v4575_v15 = vpop.f32.mrb[3].mxu1 }
 0x39a   : > { %v1608_v16 = vadd.f32 %v4394_v12, %v1600_v14 }
 0x39c   : > { %v1609_v17 = vmax.f32 %v1608_v16, 0.0 }
 0x39e   : > { %v1610_v18 = vpack.c.bf16 %v1609_v17, %v1609_v17 }
 0x3a0   : > { %4581 = vmatmul.mubr.msk.bf16.vlgmr.msra.gmra.mrb[4].mxu1 %vm1634_vm3, %v1610_v18 }
 0x3a1   : > { %4596 = vmatprep.mubr.msk.bf16.mxu1 %vm5998_vm0, %v5997_v0  ;;  %4593 = vmatpush3.bf16.msra.mxu1 %v5123_v37 }
 0x3a2   : > { %4594 = vmatprep.subr.bf16.mxu1 %v5997_v0 }
 0x3a5   : > { %4595 = vmatpush3.bf16.msra.mxu1 %v5124_v38 }
 0x3a6   : > { %4606 = vmatprep.subr.bf16.mxu1 %v5997_v0 }
 0x3a8   : > { %4597 = vmatmul.mubr.msk.bf16.vlgmr.msra.gmra.mrb[8].mxu1 %vm1634_vm3, %v1750_v39 }
 0x3a9   : > { %4608 = vmatprep.mubr.msk.bf16.mxu1 %vm5998_vm0, %v5997_v0 }
 0x473   : > { %v1672_v23 = vpop.f32.mrb[4].mxu1 }
 0x474   : > { %v6693_v24 = vadd.f32 %v4395_v21, %v1672_v23  ;;  %v4582_v25 = vpop.f32.mrb[5].mxu1 }
 0x475   : > { %v1675_v26 = vpop.f32.mrb[6].mxu1 }
 0x476   : > { %v1682_v27 = vadd.f32 %v6693_v24, %v6691_v22  ;;  %v4583_v28 = vpop.f32.mrb[7].mxu1 }
 0x478   : > { %v1683_v29 = vpack.c.bf16 %v1682_v27, %v1682_v27 }
 0x47a   : > { %4589 = vmatmul.mubr.msk.bf16.vlgmr.msra.gmra.mrb[0].mxu0 %vm1634_vm3, %v1683_v29 }
 0x47b   : > { %4602 = vmatprep.mubr.msk.bf16.mxu0 %vm5998_vm0, %v5997_v0  ;;  %v1811_v52 = vpop.f32.mrb[8].mxu1 }
 0x47c   : > { %v1812_v53 = vadd.f32 %v4403_v51, %v1811_v52  ;;  %v4598_v54 = vpop.f32.mrb[9].mxu1 }
 0x47d   : > { %v1814_v55 = vpop.f32.mrb[10].mxu1 }
 0x47e   : > { %v4599_v56 = vpop.f32.mrb[11].mxu1  ;;  %v1887_v57 = vpack.c.bf16 %v1812_v53, %v1812_v53 }
 0x480   : > { %v1893_v58 = vsel %vm1891_vm5, %v1887_v57, 0 }
 0x481   : > { %4607 = vmatpush3.bf16.msra.mxu1 %v1893_v58 }
 0x482   : > { %4618 = vmatprep.subr.bf16.mxu1 %v5997_v0 }
 0x54d   : > { %v1744_v31 = vpop.f32.mrb[0].mxu0 }
 0x54e   : > { %v1745_v32 = vadd.f32 %v4399_v30, %v1744_v31  ;;  %v4590_v33 = vpop.f32.mrb[1].mxu0 }
 0x54f   : > { %v1747_v34 = vpop.f32.mrb[2].mxu0 }
 0x550   : > { %v1817_v35 = vpack.c.bf16 %v1745_v32, %v1745_v32  ;;  %v4591_v36 = vpop.f32.mrb[3].mxu0 }
 0x552   : > { %1938 = vrot.lane.b32.xlu1 %v1817_v35, %s5999_s11  ;;  %1819 = vrot.lane.b32.xlu0 %v1817_v35, %s6000_s16 }
 0x556   : > { %2060 = vrot.lane.b32.xlu1 %v1817_v35, %s6001_s5  ;;  %1940 = vrot.lane.b32.xlu0 %v1817_v35, %s7117_s19 }
 0x55a   : > { %2179 = vrot.lane.b32.xlu1 %v1817_v35, %s7118_s7  ;;  %2058 = vrot.lane.b32.xlu0 %v1817_v35, %s6004_s14 }
 0x55e   : > { %2177 = vrot.lane.b32.xlu0 %v1817_v35, %s6005_s21 }
 0x5c4   : > { %v1820_v40 = vpop.permute.xlu0 %1819  ;;  %v1939_v43 = vpop.permute.xlu1 %1938 }
 0x5c5   : > { %v1826_v41 = vsel %vm1821_vm4, %v1820_v40, 0 }
 0x5c6   : > { %4601 = vmatpush3.bf16.xpose.msra.mxu0 %v1826_v41 }
 0x5c7   : > { %4612 = vmatprep.subr.bf16.mxu0 %v5997_v0 }
 0x5c8   : > { %v1941_v42 = vpop.permute.xlu0 %1940  ;;  %v2061_v45 = vpop.permute.xlu1 %2060 }
 0x5c9   : > { %v1946_v44 = vsel %vm1821_vm4, %v1941_v42, 0  ;;  %v2066_v46 = vsel %vm1821_vm4, %v2061_v45, 0 }
 0x5cc   : > { %v2180_v47 = vpop.permute.xlu1 %2179  ;;  %v2059_v48 = vpop.permute.xlu0 %2058 }
 0x5cd   : > { %4603 = vmatmul.mubr.msk.bf16.vlgmr.msra.gmra.mrb[4].mxu0 %vm1821_vm4, %v1817_v35  ;;  %v2185_v49 = vsel %vm1821_vm4, %v2180_v47, 0 }
 0x5ce   : > { %4613 = vmatpush3.bf16.xpose.msra.mxu0 %v1946_v44  ;;  %4614 = vmatprep.mubr.msk.bf16.mxu0 %vm5998_vm0, %v5997_v0 }
 0x5cf   : > { %4624 = vmatprep.subr.bf16.mxu0 %v5997_v0 }
 0x5d0   : > { %v2178_v50 = vpop.permute.xlu0 %2177 }
 0x5d5   : > { %4615 = vmatmul.mubr.msk.bf16.vlgmr.msra.gmra.mrb[8].mxu0 %vm1821_vm4, %v1939_v43 }
 0x5d6   : > { %4625 = vmatpush3.bf16.xpose.msra.mxu0 %v2066_v46  ;;  %4626 = vmatprep.mubr.msk.bf16.mxu0 %vm5998_vm0, %v5997_v0 }
 0x5d7   : > { %4636 = vmatprep.subr.bf16.mxu0 %v5997_v0 }
 0x5dd   : > { %4627 = vmatmul.mubr.msk.bf16.vlgmr.msra.gmra.mrb[12].mxu0 %vm1821_vm4, %v2059_v48 }
 0x5de   : > { %4637 = vmatpush3.bf16.xpose.msra.mxu0 %v2185_v49  ;;  %4638 = vmatprep.mubr.msk.bf16.mxu0 %vm5998_vm0, %v5997_v0 }
 0x5df   : > { %4648 = vmatprep.subr.bf16.mxu0 %v5997_v0 }
 0x5e5   : > { %4639 = vmatmul.mubr.msk.bf16.vlgmr.msra.gmra.mrb[16].mxu0 %vm1821_vm4, %v2178_v50 }
 0x5e6   : > { %4652 = vmatprep.mubr.msk.bf16.mxu0 %vm5998_vm0, %v5997_v0 }
 0x6a0   : > { %v1862_v2 = vpop.f32.mrb[4].mxu0 }
 0x6a1   : > { %v1868_v3 = vmul.f32 0.35355338, %v1862_v2  ;;  %v4604_v4 = vpop.f32.mrb[5].mxu0 }
 0x6a2   : > { %v1865_v5 = vpop.f32.mrb[6].mxu0 }
 0x6a3   : > { %v4605_v6 = vpop.f32.mrb[7].mxu0  ;;  %v1875_v7 = vadd.f32 %v1873_v1, %v1868_v3 }
 0x6a5   : > { %v1876_v8 = vsel %vm1821_vm4, %v1875_v7, -inf }
 0x6a6   : > { %1877 = vmax.xlane.f32.xlu1 %v1876_v8 }
 0x6a8   : > { %v1982_v9 = vpop.f32.mrb[8].mxu0 }
 0x6a9   : > { %v1988_v10 = vmul.f32 0.35355338, %v1982_v9  ;;  %v4616_v11 = vpop.f32.mrb[9].mxu0 }
 0x6aa   : > { %v1985_v12 = vpop.f32.mrb[10].mxu0 }
 0x6ab   : > { %v4617_v13 = vpop.f32.mrb[11].mxu0  ;;  %v1989_v14 = vadd.f32 %v1988_v10, %v1873_v1 }
 0x6ad   : > { %v1990_v15 = vsel %vm1821_vm4, %v1989_v14, -inf }
 0x6ae   : > { %1991 = vmax.xlane.f32.xlu0 %v1990_v15 }
 0x6b0   : > { %v2102_v16 = vpop.f32.mrb[12].mxu0 }
 0x6b1   : > { %v2108_v17 = vmul.f32 0.35355338, %v2102_v16  ;;  %v4628_v18 = vpop.f32.mrb[13].mxu0 }
 0x6b2   : > { %v2105_v19 = vpop.f32.mrb[14].mxu0 }
 0x6b3   : > { %v4629_v20 = vpop.f32.mrb[15].mxu0  ;;  %v2109_v21 = vadd.f32 %v2108_v17, %v1873_v1 }
 0x6b5   : > { %v2110_v23 = vsel %vm1821_vm4, %v2109_v21, -inf }
 0x6b6   : > { %2111 = vmax.xlane.f32.xlu0 %v2110_v23 }
 0x6b7   : > { %2121 = vrot.lane.b32.xlu1 %v1887_v57, %s6004_s14 }
 0x6b8   : > { %v2221_v25 = vpop.f32.mrb[16].mxu0 }
 0x6b9   : > { %v4640_v26 = vpop.f32.mrb[17].mxu0  ;;  %v2227_v29 = vmul.f32 0.35355338, %v2221_v25 }
 0x6ba   : > { %v2224_v27 = vpop.f32.mrb[18].mxu0 }
 0x6bb   : > { %v4641_v28 = vpop.f32.mrb[19].mxu0  ;;  %v2228_v30 = vadd.f32 %v2227_v29, %v1873_v1  ;;  %v5125_v29 = vld [vmem:[%s7223_s20] sm:$0xff]  }
 0x6bc   : > { %4649 = vmatpush3.bf16.msra.mxu0 %v5125_v29 }
 0x6bd   : > { %v2229_v31 = vsel %vm1821_vm4, %v2228_v30, -inf  ;;  %4650 = vmatprep.subr.bf16.mxu0 %v5997_v0 }
 0x6cc   : > { %2002 = vrot.lane.b32.xlu0 %v1887_v57, %s5999_s11 }
 0x6db   : > { %2230 = vmax.xlane.f32.xlu1 %v2229_v31 }
 0x6ec   : > { %2240 = vrot.lane.b32.xlu1 %v1887_v57, %s6005_s21 }
 0x733   : > { %v1878_v32 = vpop.xlane.xlu1 %1877 }
 0x734   : > { %v1879_v33 = vsub.f32 %v1875_v7, %v1878_v32 }
 0x736   : > { %v1880_v34 = vmul.f32 1.442695, %v1879_v33 }
 0x737   : > { %v2122_v46 = vpop.permute.xlu1 %2121 }
 0x738   : > { %5145 = vpow2.f32 %v1880_v34  ;;  %v2127_v49 = vsel %vm1891_vm5, %v2122_v46, 0 }
 0x73b   : > { %v1992_v35 = vpop.xlane.xlu0 %1991 }
 0x73c   : > { %v1993_v36 = vsub.f32 %v1989_v14, %v1992_v35 }
 0x73e   : > { %v1994_v37 = vmul.f32 1.442695, %v1993_v36 }
 0x740   : > { %5147 = vpow2.f32 %v1994_v37 }
 0x742   : > { %v5146_v38 = vpop.eup %5145 }
 0x743   : > { %v2112_v39 = vpop.xlane.xlu0 %2111  ;;  %v1886_v40 = vpack.c.bf16 %v5146_v38, %v5146_v38  ;;  %v1882_v62 = vsel %vm1821_vm4, %v5146_v38, 0.0 }
 0x744   : > { %v2113_v41 = vsub.f32 %v2109_v21, %v2112_v39 }
 0x745   : > { %4609 = vmatmul.mubr.msk.bf16.vlgmr.msra.gmra.mrb[12].mxu1 %vm1821_vm4, %v1886_v40 }
 0x746   : > { %v2114_v42 = vmul.f32 1.442695, %v2113_v41  ;;  %4620 = vmatprep.mubr.msk.bf16.mxu1 %vm5998_vm0, %v5997_v0 }
 0x747   : > { %v2003_v43 = vpop.permute.xlu0 %2002 }
 0x748   : > { %5149 = vpow2.f32 %v2114_v42  ;;  %v2008_v44 = vsel %vm1891_vm5, %v2003_v43, 0 }
 0x749   : > { %4619 = vmatpush3.bf16.msra.mxu1 %v2008_v44 }
 0x74a   : > { %v5148_v45 = vpop.eup %5147  ;;  %4630 = vmatprep.subr.bf16.mxu1 %v5997_v0 }
 0x74b   : > { %v1996_v47 = vsel %vm1821_vm4, %v5148_v45, 0.0  ;;  %v2000_v48 = vpack.c.bf16 %v5148_v45, %v5148_v45 }
 0x74c   : > { %1997 = vadd.xlane.f32.xlu0 %v1996_v47 }
 0x74d   : > { %4621 = vmatmul.mubr.msk.bf16.vlgmr.msra.gmra.mrb[16].mxu1 %vm1821_vm4, %v2000_v48 }
 0x74e   : > { %4631 = vmatpush3.bf16.msra.mxu1 %v2127_v49  ;;  %4632 = vmatprep.mubr.msk.bf16.mxu1 %vm5998_vm0, %v5997_v0 }
 0x74f   : > { %4642 = vmatprep.subr.bf16.mxu1 %v5997_v0 }
 0x752   : > { %v5150_v50 = vpop.eup %5149 }
 0x753   : > { %v2116_v51 = vsel %vm1821_vm4, %v5150_v50, 0.0  ;;  %v2120_v52 = vpack.c.bf16 %v5150_v50, %v5150_v50 }
 0x754   : > { %2117 = vadd.xlane.f32.xlu1 %v2116_v51 }
 0x755   : > { %4633 = vmatmul.mubr.msk.bf16.vlgmr.msra.gmra.mrb[20].mxu1 %vm1821_vm4, %v2120_v52 }
 0x756   : > { %4644 = vmatprep.mubr.msk.bf16.mxu1 %vm5998_vm0, %v5997_v0 }
 0x768   : > { %v2231_v53 = vpop.xlane.xlu1 %2230 }
 0x769   : > { %v2232_v54 = vsub.f32 %v2228_v30, %v2231_v53  ;;  %v5126_v30 = vld [vmem:[%s7223_s20 + $0x8] sm:$0xff]  }
 0x76a   : > { %4651 = vmatpush3.bf16.msra.mxu0 %v5126_v30 }
 0x76b   : > { %v2233_v55 = vmul.f32 1.442695, %v2232_v54  ;;  %4664 = vmatprep.subr.bf16.mxu0 %v5997_v0 }
 0x76c   : > { %v2241_v56 = vpop.permute.xlu1 %2240 }
 0x76d   : > { %5151 = vpow2.f32 %v2233_v55  ;;  %v2246_v57 = vsel %vm1891_vm5, %v2241_v56, 0 }
 0x76e   : > { %4643 = vmatpush3.bf16.msra.mxu1 %v2246_v57  ;;  %v2459_v57 = vld [vmem:[%s6607_s22] sm:$0xff]  ;;  %s7226_s22 = smov 8  }
 0x76f   : > { %4656 = vmatprep.subr.bf16.mxu1 %v5997_v0 }
 0x777   : > { %v5152_v58 = vpop.eup %5151 }
 0x778   : > { %v2235_v59 = vsel %vm1821_vm4, %v5152_v58, 0.0  ;;  %v2239_v61 = vpack.c.bf16 %v5152_v58, %v5152_v58  ;;  %v2460_v58 = vpack.c.bf16 %v2459_v57, %v2459_v57 }
 0x779   : > { %2236 = vadd.xlane.f32.xlu0 %v2235_v59  ;;  %v5130_v59 = vld [vmem:[#allocation20 + $0x8] sm:$0xff]  }
 0x77a   : > { %4645 = vmatmul.mubr.msk.bf16.vlgmr.msra.gmra.mrb[24].mxu1 %vm1821_vm4, %v2239_v61 }
 0x77b   : > { %4660 = vmatprep.mubr.msk.bf16.mxu1 %vm5998_vm0, %v5997_v0 }
 0x77d   : > { %1883 = vadd.xlane.f32.xlu0 %v1882_v62 }
 0x7d9   : > { %v1998_v1 = vpop.xlane.xlu0 %1997 }
 0x7da   : > { %v1999_v5 = vmax.f32 %v1998_v1, 1e-20 }
 0x7e1   : > { %v2118_v7 = vpop.xlane.xlu1 %2117 }
 0x7e2   : > { %v2119_v11 = vmax.f32 %v2118_v7, 1e-20 }
 0x806   : > { %v2237_v2 = vpop.xlane.xlu0 %2236 }
 0x807   : > { %v2238_v28 = vmax.f32 %v2237_v2, 1e-20 }
 0x80a   : > { %v1884_v3 = vpop.xlane.xlu0 %1883 }
 0x80b   : > { %v1885_v4 = vmax.f32 %v1884_v3, 1e-20  ;;  %v4419_v3 = vld [vmem:[#allocation33] ss:$0 sm:$0xff] }
 0x80d   : > { %5153 = vrcp.f32 %v1885_v4 }
 0x80e   : > { %5155 = vrcp.f32 %v1999_v5  ;;  %v4420_v5 = vld [vmem:[#allocation33 + $0x1] ss:$0 sm:$0xff] }
 0x80f   : > { %5157 = vrcp.f32 %v2119_v11 }
 0x810   : > { %5159 = vrcp.f32 %v2238_v28 }
 0x817   : > { %v5154_v6 = vpop.eup %5153 }
 0x818   : > { %v1929_v8 = vpop.f32.mrb[12].mxu1  ;;  %v5156_v14 = vpop.eup %5155 }
 0x819   : > { %v1936_v9 = vmul.f32 %v5154_v6, %v1929_v8  ;;  %v4610_v10 = vpop.f32.mrb[13].mxu1  ;;  %v5158_v20 = vpop.eup %5157 }
 0x81a   : > { %v1932_v12 = vpop.f32.mrb[14].mxu1  ;;  %v5160_v31 = vpop.eup %5159  ;;  %v4425_v10 = vld [vmem:[#allocation23] ss:$0 sm:$0xff] }
 0x81b   : > { %1937 = vst.msk [vmem:[#allocation2] sm:$0xff] %vm1821_vm4, %v1936_v9  ;;  %v4611_v13 = vpop.f32.mrb[15].mxu1 }
 0x820   : > { %v2044_v15 = vpop.f32.mrb[16].mxu1 }
 0x821   : > { %v2051_v16 = vmul.f32 %v5156_v14, %v2044_v15  ;;  %v4622_v17 = vpop.f32.mrb[17].mxu1 }
 0x822   : > { %v2047_v18 = vpop.f32.mrb[18].mxu1 }
 0x823   : > { %v4623_v19 = vpop.f32.mrb[19].mxu1  ;;  %2053 = vrot.lane.b32.xlu1 %v2051_v16, %s7112_s30  ;;  %s7224_s30 = sld [smem:[#allocation68_spill]]  ;;  %v4421_v18 = vld [vmem:[#allocation21] ss:$0 sm:$0xff] }
 0x828   : > { %v2163_v21 = vpop.f32.mrb[20].mxu1 }
 0x829   : > { %v2170_v23 = vmul.f32 %v5158_v20, %v2163_v21  ;;  %v4634_v25 = vpop.f32.mrb[21].mxu1  ;;  %v4415_v42 = vld [vmem:[%s7224_s30] ss:$0 sm:$0xff]  ;;  %s7228_s30 = sld [smem:[#allocation53_spill]] }
 0x82a   : > { %v2166_v26 = vpop.f32.mrb[22].mxu1 }
 0x82b   : > { %v4635_v27 = vpop.f32.mrb[23].mxu1  ;;  %2172 = vrot.lane.b32.xlu0 %v2170_v23, %s7116_s17 }
 0x84d   : > { %v2282_v32 = vpop.f32.mrb[24].mxu1 }
 0x84e   : > { %v2289_v33 = vmul.f32 %v5160_v31, %v2282_v32  ;;  %v4646_v34 = vpop.f32.mrb[25].mxu1 }
 0x84f   : > { %v2285_v35 = vpop.f32.mrb[26].mxu1 }
 0x850   : > { %2291 = vrot.lane.b32.xlu1 %v2289_v33, %s7114_s6  ;;  %v4647_v36 = vpop.f32.mrb[27].mxu1  ;;  %s7225_s6 = sld [smem:[#allocation71_spill]] }
 0x851   : > { %v1680_v36 = vld [vmem:[%s1330_s28] sm:$0x1]  ;;  %s7227_s28 = smov 24  }
 0x856   : > { %v5127_v55 = vld [vmem:[%s7225_s6] sm:$0xff]   ;;  %v5128_v56 = vld [vmem:[%s7225_s6 + $0x8] sm:$0xff]  }
 0x895   : > { %v2054_v37 = vpop.permute.xlu1 %2053 }
 0x896   : > { %2057 = vst.msk [vmem:[#allocation2] sm:$0xff] %vm2056_vm6, %v2054_v37  ;;  %v1681_v37 = vmul.f32 -1e+30, %v1680_v36 }
 0x89d   : > { %v2173_v38 = vpop.permute.xlu0 %2172 }
 0x89e   : > { %2176 = vst.msk [vmem:[#allocation2] sm:$0xff] %vm2175_vm7, %v2173_v38  ;;  %v2580_v38 = vrot.slane %v1681_v37, %v1872_v63 }
 0x8c2   : > { %v2292_v39 = vpop.permute.xlu1 %2291 }
 0x8c3   : > { %2295 = vst.msk [vmem:[#allocation2] sm:$0xff] %vm2294_vm8, %v2292_v39 }
 0x8ca   : > { %v2296_v40 = vld [vmem:[#allocation2] sm:$0xff] }
 0x8cb   : > { %v2297_v41 = vpack.c.bf16 %v2296_v40, %v2296_v40 }
 0x8cd   : > { %4653 = vmatmul.mubr.msk.bf16.vlgmr.msra.gmra.mrb[20].mxu0 %vm1634_vm3, %v2297_v41 }
 0x8ce   : > { %4668 = vmatprep.mubr.msk.bf16.mxu0 %vm5998_vm0, %v5997_v0  ;;  %4665 = vmatpush3.bf16.msra.mxu0 %v5127_v55 }
 0x8cf   : > { %4666 = vmatprep.subr.bf16.mxu0 %v5997_v0 }
 0x8d2   : > { %4667 = vmatpush3.bf16.msra.mxu0 %v5128_v56 }
 0x8d3   : > { %4678 = vmatprep.subr.bf16.mxu0 %v5997_v0 }
 0x8d5   : > { %4669 = vmatmul.mubr.msk.bf16.vlgmr.msra.gmra.mrb[24].mxu0 %vm1634_vm3, %v2460_v58 }
 0x8d6   : > { %4680 = vmatprep.mubr.msk.bf16.mxu0 %vm5998_vm0, %v5997_v0 }
 0x9a0   : > { %v2358_v43 = vpop.f32.mrb[20].mxu0 }
 0x9a1   : > { %v2359_v44 = vadd.f32 %v4415_v42, %v2358_v43  ;;  %v4654_v45 = vpop.f32.mrb[21].mxu0 }
 0x9a2   : > { %v2361_v46 = vpop.f32.mrb[22].mxu0 }
 0x9a3   : > { %v4655_v47 = vpop.f32.mrb[23].mxu0  ;;  %v2364_v48 = vadd.f32 %v2359_v44, %v6691_v22  ;;  %v5129_v22 = vld [vmem:[#allocation20] sm:$0xff]  }
 0x9a4   : > { %4657 = vmatpush3.bf16.msra.mxu1 %v5129_v22 }
 0x9a5   : > { %v2367_v49 = vsel %vm1634_vm3, %v2364_v48, 0.0  ;;  %4658 = vmatprep.subr.bf16.mxu1 %v5997_v0 }
 0x9a6   : > { %2368 = vadd.xlane.f32.xlu1 %v2367_v49 }
 0x9a8   : > { %4659 = vmatpush3.bf16.msra.mxu1 %v5130_v59  ;;  %v2521_v11 = vpop.f32.mrb[24].mxu0 }
 0x9a9   : > { %4672 = vmatprep.subr.bf16.mxu1 %v5997_v0  ;;  %v2522_v12 = vadd.f32 %v4425_v10, %v2521_v11  ;;  %v4670_v13 = vpop.f32.mrb[25].mxu0 }
 0x9aa   : > { %v2524_v14 = vpop.f32.mrb[26].mxu0 }
 0x9ab   : > { %v6809_v15 = vpack.c.bf16 %v2522_v12, %v2522_v12  ;;  %v4671_v16 = vpop.f32.mrb[27].mxu0 }
 0x9ad   : > { %v2533_v17 = vsel %vm1821_vm4, %v6809_v15, 0 }
 0xa33   : > { %v2369_v50 = vpop.xlane.xlu1 %2368 }
 0xa34   : > { %v2371_v51 = vmul.f32 0.03125, %v2369_v50 }
 0xa36   : > { %v2372_v52 = vsub.f32 %v2364_v48, %v2371_v51 }
 0xa38   : > { %v2373_v53 = vmul.f32 %v2372_v52, %v2372_v52 }
 0xa3a   : > { %v2374_v54 = vsel %vm1634_vm3, %v2373_v53, 0.0 }
 0xa3b   : > { %2375 = vadd.xlane.f32.xlu0 %v2374_v54 }
 0xa51   : > { %2649 = vrot.lane.b32.xlu0 %v6809_v15, %s5999_s11 }
 0xac8   : > { %v2376_v61 = vpop.xlane.xlu0 %2375 }
 0xac9   : > { %v2377_v62 = vmul.f32 0.03125, %v2376_v61 }
 0xacb   : > { %v2378_v1 = vadd.f32 1e-05, %v2377_v62 }
 0xacc   : > { %v2650_v23 = vpop.permute.xlu0 %2649 }
 0xacd   : > { %5161 = vrsqrt.f32 %v2378_v1  ;;  %v2655_v28 = vsel %vm1821_vm4, %v2650_v23, 0 }
 0xad7   : > { %v5162_v2 = vpop.eup %5161 }
 0xad8   : > { %v2380_v4 = vmul.f32 %v5162_v2, %v2372_v52 }
 0xada   : > { %v2385_v6 = vmul.f32 %v4419_v3, %v2380_v4 }
 0xadc   : > { %v6802_v7 = vadd.f32 %v4420_v5, %v2385_v6 }
 0xade   : > { %v2391_v8 = vadd.f32 %v6802_v7, %v6693_v24 }
 0xae0   : > { %v2392_v9 = vpack.c.bf16 %v2391_v8, %v2391_v8 }
 0xae2   : > { %4661 = vmatmul.mubr.msk.bf16.vlgmr.msra.gmra.mrb[28].mxu1 %vm1634_vm3, %v2392_v9 }
 0xae3   : > { %4674 = vmatprep.mubr.msk.bf16.mxu1 %vm5998_vm0, %v5997_v0  ;;  %4673 = vmatpush3.bf16.xpose.msra.mxu1 %v2533_v17 }
 0xae4   : > { %4684 = vmatprep.subr.bf16.mxu1 %v5997_v0 }
 0xbb5   : > { %v2453_v19 = vpop.f32.mrb[28].mxu1 }
 0xbb6   : > { %v2454_v20 = vadd.f32 %v4421_v18, %v2453_v19  ;;  %v4662_v21 = vpop.f32.mrb[29].mxu1 }
 0xbb7   : > { %v2456_v25 = vpop.f32.mrb[30].mxu1 }
 0xbb8   : > { %v2527_v26 = vpack.c.bf16 %v2454_v20, %v2454_v20  ;;  %v4663_v27 = vpop.f32.mrb[31].mxu1 }
 0xbba   : > { %2647 = vrot.lane.b32.xlu1 %v2527_v26, %s5999_s11  ;;  %2765 = vrot.lane.b32.xlu0 %v2527_v26, %s6004_s14 }
 0xbbb   : > { %4675 = vmatmul.mubr.msk.bf16.vlgmr.msra.gmra.mrb[32].mxu1 %vm1821_vm4, %v2527_v26 }
 0xbbc   : > { %4685 = vmatpush3.bf16.xpose.msra.mxu1 %v2655_v28  ;;  %4686 = vmatprep.mubr.msk.bf16.mxu1 %vm5998_vm0, %v5997_v0 }
 0xbbd   : > { %4696 = vmatprep.subr.bf16.mxu1 %v5997_v0 }
 0xbbe   : > { %2767 = vrot.lane.b32.xlu1 %v6809_v15, %s6004_s14  ;;  %2883 = vrot.lane.b32.xlu0 %v2527_v26, %s6005_s21 }
 0xbc2   : > { %2885 = vrot.lane.b32.xlu1 %v6809_v15, %s6005_s21 }
 0xc2c   : > { %v2648_v29 = vpop.permute.xlu1 %2647  ;;  %v2766_v33 = vpop.permute.xlu0 %2765 }
 0xc2d   : > { %4687 = vmatmul.mubr.msk.bf16.vlgmr.msra.gmra.mrb[36].mxu1 %vm1821_vm4, %v2648_v29 }
 0xc2e   : > { %4698 = vmatprep.mubr.msk.bf16.mxu1 %vm5998_vm0, %v5997_v0 }
 0xc30   : > { %v2768_v30 = vpop.permute.xlu1 %2767  ;;  %v2884_v35 = vpop.permute.xlu0 %2883 }
 0xc31   : > { %v2773_v31 = vsel %vm1821_vm4, %v2768_v30, 0 }
 0xc32   : > { %4697 = vmatpush3.bf16.xpose.msra.mxu1 %v2773_v31 }
 0xc33   : > { %4708 = vmatprep.subr.bf16.mxu1 %v5997_v0 }
 0xc34   : > { %v2886_v32 = vpop.permute.xlu1 %2885 }
 0xc35   : > { %v2891_v34 = vsel %vm1821_vm4, %v2886_v32, 0 }
 0xc39   : > { %4699 = vmatmul.mubr.msk.bf16.vlgmr.msra.gmra.mrb[40].mxu1 %vm1821_vm4, %v2766_v33 }
 0xc3a   : > { %4709 = vmatpush3.bf16.xpose.msra.mxu1 %v2891_v34  ;;  %4710 = vmatprep.mubr.msk.bf16.mxu1 %vm5998_vm0, %v5997_v0 }
 0xc3b   : > { %4720 = vmatprep.subr.bf16.mxu1 %v5997_v0 }
 0xc41   : > { %4711 = vmatmul.mubr.msk.bf16.vlgmr.msra.gmra.mrb[44].mxu1 %vm1821_vm4, %v2884_v35 }
 0xc42   : > { %4724 = vmatprep.mubr.msk.bf16.mxu1 %vm5998_vm0, %v5997_v0 }
 0xc8e   : > { %v2569_v39 = vpop.f32.mrb[32].mxu1 }
 0xc8f   : > { %v2575_v40 = vmul.f32 0.35355338, %v2569_v39  ;;  %v4676_v41 = vpop.f32.mrb[33].mxu1 }
 0xc90   : > { %v2572_v42 = vpop.f32.mrb[34].mxu1 }
 0xc91   : > { %v4677_v43 = vpop.f32.mrb[35].mxu1  ;;  %v2582_v44 = vadd.f32 %v2580_v38, %v2575_v40 }
 0xc93   : > { %v2583_v45 = vsel %vm1821_vm4, %v2582_v44, -inf }
 0xc94   : > { %2584 = vmax.xlane.f32.xlu1 %v2583_v45 }
 0xca5   : > { %2710 = vrot.lane.b32.xlu1 %v6809_v15, %s7117_s19  ;;  %s4481_s19 = sshll.u32 %s6665_s1, 4  ;;  %s7230_s1 = smov 72  }
 0xd00   : > { %v2691_v46 = vpop.f32.mrb[36].mxu1 }
 0xd01   : > { %v2697_v47 = vmul.f32 0.35355338, %v2691_v46  ;;  %v4688_v48 = vpop.f32.mrb[37].mxu1 }
 0xd02   : > { %v2694_v49 = vpop.f32.mrb[38].mxu1 }
 0xd03   : > { %v4689_v50 = vpop.f32.mrb[39].mxu1  ;;  %v2698_v51 = vadd.f32 %v2697_v47, %v2580_v38 }
 0xd05   : > { %v2699_v60 = vsel %vm1821_vm4, %v2698_v51, -inf }
 0xd06   : > { %2700 = vmax.xlane.f32.xlu0 %v2699_v60 }
 0xd0c   : > { %v2809_v63 = vpop.f32.mrb[40].mxu1 }
 0xd0d   : > { %v2815_v52 = vmul.f32 0.35355338, %v2809_v63  ;;  %v4700_v53 = vpop.f32.mrb[41].mxu1 }
 0xd0e   : > { %v2812_v54 = vpop.f32.mrb[42].mxu1 }
 0xd0f   : > { %v4701_v55 = vpop.f32.mrb[43].mxu1  ;;  %v2816_v56 = vadd.f32 %v2815_v52, %v2580_v38 }
 0xd11   : > { %v2817_v57 = vsel %vm1821_vm4, %v2816_v56, -inf }
 0xd12   : > { %2818 = vmax.xlane.f32.xlu0 %v2817_v57 }
 0xd14   : > { %v2927_v58 = vpop.f32.mrb[44].mxu1 }
 0xd15   : > { %v2933_v22 = vmul.f32 0.35355338, %v2927_v58  ;;  %v4712_v59 = vpop.f32.mrb[45].mxu1 }
 0xd16   : > { %v2930_v61 = vpop.f32.mrb[46].mxu1 }
 0xd17   : > { %v4713_v62 = vpop.f32.mrb[47].mxu1  ;;  %v2934_v1 = vadd.f32 %v2933_v22, %v2580_v38  ;;  %v5132_v22 = vld [vmem:[#allocation24 + $0x8] sm:$0xff]  }
 0xd19   : > { %v2935_v2 = vsel %vm1821_vm4, %v2934_v1, -inf }
 0xd1a   : > { %2936 = vmax.xlane.f32.xlu1 %v2935_v2 }
 0xd21   : > { %v2585_v3 = vpop.xlane.xlu1 %2584 }
 0xd22   : > { %v2586_v4 = vsub.f32 %v2582_v44, %v2585_v3 }
 0xd24   : > { %v2587_v8 = vmul.f32 1.442695, %v2586_v4 }
 0xd25   : > { %v2711_v16 = vpop.permute.xlu1 %2710 }
 0xd26   : > { %v2716_v23 = vsel %vm1891_vm5, %v2711_v16, 0 }
 0xd28   : > { %2595 = vrot.lane.b32.xlu0 %v6809_v15, %s6000_s16 }
 0xd2b   : > { %2828 = vrot.lane.b32.xlu1 %v6809_v15, %s6001_s5 }
 0xd2c   : > { %2946 = vrot.lane.b32.xlu0 %v6809_v15, %s7118_s7  ;;  %s1528_s7 = scalar_lea.vmem %s7228_s30, %s4481_s19  ;;  %s7234_s19 = smov 16  }
 0xd2d   : > { %s7239_s30 = sshll.u32 %s6601_s29, 3 }
 0xd93   : > { %v2701_v5 = vpop.xlane.xlu0 %2700 }
 0xd94   : > { %v2702_v6 = vsub.f32 %v2698_v51, %v2701_v5 }
 0xd96   : > { %v2703_v9 = vmul.f32 1.442695, %v2702_v6 }
 0xd98   : > { %5163 = vpow2.f32 %v2703_v9 }
 0xd99   : > { %5165 = vpow2.f32 %v2587_v8 }
 0xd9f   : > { %v2819_v10 = vpop.xlane.xlu0 %2818 }
 0xda0   : > { %v2820_v11 = vsub.f32 %v2816_v56, %v2819_v10  ;;  %v5131_v56 = vld [vmem:[#allocation24] sm:$0xff]  }
 0xda1   : > { %4721 = vmatpush3.bf16.msra.mxu1 %v5131_v56 }
 0xda2   : > { %v5164_v12 = vpop.eup %5163  ;;  %v2821_v13 = vmul.f32 1.442695, %v2820_v11  ;;  %4722 = vmatprep.subr.bf16.mxu1 %v5997_v0 }
 0xda3   : > { %v5166_v14 = vpop.eup %5165  ;;  %v2596_v17 = vpop.permute.xlu0 %2595  ;;  %v2705_v18 = vsel %vm1821_vm4, %v5164_v12, 0.0  ;;  %v2709_v29 = vpack.c.bf16 %v5164_v12, %v5164_v12 }
 0xda4   : > { %5167 = vpow2.f32 %v2821_v13  ;;  %v2601_v15 = vsel %vm1891_vm5, %v2596_v17, 0  ;;  %2706 = vadd.xlane.f32.xlu1 %v2705_v18  ;;  %v2593_v19 = vpack.c.bf16 %v5166_v14, %v5166_v14  ;;  %v2589_v21 = vsel %vm1821_vm4, %v5166_v14, 0.0  ;;  %v4437_v14 = vld [vmem:[#allocation26] ss:$0 sm:$0xff] }
 0xda5   : > { %4679 = vmatpush3.bf16.msra.mxu0 %v2601_v15  ;;  %4723 = vmatpush3.bf16.msra.mxu1 %v5132_v22 }
 0xda6   : > { %4690 = vmatprep.subr.bf16.mxu0 %v5997_v0  ;;  %4736 = vmatprep.subr.bf16.mxu1 %v5997_v0 }
 0xda7   : > { %v2937_v20 = vpop.xlane.xlu1 %2936  ;;  %v2947_v32 = vpop.permute.xlu0 %2946 }
 0xda8   : > { %v2938_v25 = vsub.f32 %v2934_v1, %v2937_v20  ;;  %4681 = vmatmul.mubr.msk.bf16.vlgmr.msra.gmra.mrb[28].mxu0 %vm1821_vm4, %v2593_v19  ;;  %2590 = vadd.xlane.f32.xlu1 %v2589_v21  ;;  %v2952_v36 = vsel %vm1891_vm5, %v2947_v32, 0 }
 0xda9   : > { %4691 = vmatpush3.bf16.msra.mxu0 %v2716_v23  ;;  %4692 = vmatprep.mubr.msk.bf16.mxu0 %vm5998_vm0, %v5997_v0  ;;  %v5133_v23 = vld [vmem:[#allocation29] sm:$0xff]  }
 0xdaa   : > { %v2939_v26 = vmul.f32 1.442695, %v2938_v25  ;;  %4702 = vmatprep.subr.bf16.mxu0 %v5997_v0 }
 0xdab   : > { %v2829_v27 = vpop.permute.xlu1 %2828 }
 0xdac   : > { %5169 = vpow2.f32 %v2939_v26  ;;  %v2834_v31 = vsel %vm1891_vm5, %v2829_v27, 0 }
 0xdae   : > { %v5168_v28 = vpop.eup %5167 }
 0xdaf   : > { %v2823_v30 = vsel %vm1821_vm4, %v5168_v28, 0.0  ;;  %v2827_v34 = vpack.c.bf16 %v5168_v28, %v5168_v28 }
 0xdb0   : > { %2824 = vadd.xlane.f32.xlu0 %v2823_v30  ;;  %4693 = vmatmul.mubr.msk.bf16.vlgmr.msra.gmra.mrb[32].mxu0 %vm1821_vm4, %v2709_v29  ;;  %v5134_v30 = vld [vmem:[#allocation29 + $0x8] sm:$0xff]  }
 0xdb1   : > { %4703 = vmatpush3.bf16.msra.mxu0 %v2834_v31  ;;  %4704 = vmatprep.mubr.msk.bf16.mxu0 %vm5998_vm0, %v5997_v0  ;;  %v3164_v31 = vld [vmem:[%s1528_s7 + $0x8] sm:$0xff] }
 0xdb2   : > { %4714 = vmatprep.subr.bf16.mxu0 %v5997_v0 }
 0xdb6   : > { %v5170_v33 = vpop.eup %5169 }
 0xdb7   : > { %v2941_v35 = vsel %vm1821_vm4, %v5170_v33, 0.0  ;;  %v2945_v37 = vpack.c.bf16 %v5170_v33, %v5170_v33 }
 0xdb8   : > { %2942 = vadd.xlane.f32.xlu0 %v2941_v35  ;;  %4705 = vmatmul.mubr.msk.bf16.vlgmr.msra.gmra.mrb[36].mxu0 %vm1821_vm4, %v2827_v34 }
 0xdb9   : > { %4715 = vmatpush3.bf16.msra.mxu0 %v2952_v36  ;;  %4716 = vmatprep.mubr.msk.bf16.mxu0 %vm5998_vm0, %v5997_v0 }
 0xdba   : > { %4728 = vmatprep.subr.bf16.mxu0 %v5997_v0 }
 0xdc0   : > { %4717 = vmatmul.mubr.msk.bf16.vlgmr.msra.gmra.mrb[40].mxu0 %vm1821_vm4, %v2945_v37 }
 0xdc1   : > { %4732 = vmatprep.mubr.msk.bf16.mxu0 %vm5998_vm0, %v5997_v0 }
 0xe31   : > { %v2707_v38 = vpop.xlane.xlu1 %2706 }
 0xe32   : > { %v2708_v41 = vmax.f32 %v2707_v38, 1e-20 }
 0xe35   : > { %v2591_v39 = vpop.xlane.xlu1 %2590 }
 0xe36   : > { %v2592_v40 = vmax.f32 %v2591_v39, 1e-20  ;;  %v4441_v39 = vld [vmem:[#allocation35] ss:$0 sm:$0xff] }
 0xe38   : > { %5171 = vrcp.f32 %v2592_v40 }
 0xe39   : > { %5173 = vrcp.f32 %v2708_v41  ;;  %v4442_v41 = vld [vmem:[#allocation35 + $0x1] ss:$0 sm:$0xff] }
 0xe3d   : > { %v2825_v42 = vpop.xlane.xlu0 %2824 }
 0xe3e   : > { %v2826_v47 = vmax.f32 %v2825_v42, 1e-20 }
 0xe40   : > { %5175 = vrcp.f32 %v2826_v47 }
 0xe42   : > { %v5172_v43 = vpop.eup %5171 }
 0xe43   : > { %v5174_v51 = vpop.eup %5173 }
 0xe45   : > { %v2943_v50 = vpop.xlane.xlu0 %2942 }
 0xe46   : > { %v2944_v53 = vmax.f32 %v2943_v50, 1e-20 }
 0xe48   : > { %5177 = vrcp.f32 %v2944_v53 }
 0xe4a   : > { %v5176_v57 = vpop.eup %5175 }
 0xe52   : > { %v5178_v2 = vpop.eup %5177 }
 0xe7b   : > { %v2637_v44 = vpop.f32.mrb[28].mxu0 }
 0xe7c   : > { %v2644_v45 = vmul.f32 %v5172_v43, %v2637_v44  ;;  %v4682_v46 = vpop.f32.mrb[29].mxu0 }
 0xe7d   : > { %v2640_v48 = vpop.f32.mrb[30].mxu0  ;;  %v4447_v46 = vld [vmem:[#allocation30] ss:$0 sm:$0xff] }
 0xe7e   : > { %2645 = vst.msk [vmem:[#allocation2] sm:$0xff] %vm1821_vm4, %v2644_v45  ;;  %v4683_v49 = vpop.f32.mrb[31].mxu0 }
 0xe83   : > { %v2752_v60 = vpop.f32.mrb[32].mxu0 }
 0xe84   : > { %v2759_v63 = vmul.f32 %v5174_v51, %v2752_v60  ;;  %v4694_v52 = vpop.f32.mrb[33].mxu0 }
 0xe85   : > { %v2755_v54 = vpop.f32.mrb[34].mxu0  ;;  %v4443_v52 = vld [vmem:[#allocation27] ss:$0 sm:$0xff] }
 0xe86   : > { %2761 = vrot.lane.b32.xlu0 %v2759_v63, %s7226_s22  ;;  %v4695_v55 = vpop.f32.mrb[35].mxu0 }
 0xe8b   : > { %v2870_v58 = vpop.f32.mrb[36].mxu0 }
 0xe8c   : > { %v2877_v59 = vmul.f32 %v5176_v57, %v2870_v58  ;;  %v4706_v61 = vpop.f32.mrb[37].mxu0 }
 0xe8d   : > { %v2873_v62 = vpop.f32.mrb[38].mxu0 }
 0xe8e   : > { %2879 = vrot.lane.b32.xlu1 %v2877_v59, %s7116_s17  ;;  %v4707_v1 = vpop.f32.mrb[39].mxu0  ;;  %s7229_s17 = sld [smem:[#allocation75_spill]] }
 0xe93   : > { %v2988_v3 = vpop.f32.mrb[40].mxu0 }
 0xe94   : > { %v2995_v4 = vmul.f32 %v5178_v2, %v2988_v3  ;;  %v4718_v5 = vpop.f32.mrb[41].mxu0  ;;  %v5135_v33 = vld [vmem:[%s7229_s17] sm:$0xff]   ;;  %v5136_v34 = vld [vmem:[%s7229_s17 + $0x8] sm:$0xff]  }
 0xe95   : > { %v2991_v6 = vpop.f32.mrb[42].mxu0  ;;  %4729 = vmatpush3.bf16.msra.mxu0 %v5135_v33 }
 0xe96   : > { %2997 = vrot.lane.b32.xlu1 %v2995_v4, %s7227_s28  ;;  %v4719_v8 = vpop.f32.mrb[43].mxu0  ;;  %4730 = vmatprep.subr.bf16.mxu0 %v5997_v0 }
 0xe99   : > { %4731 = vmatpush3.bf16.msra.mxu0 %v5136_v34 }
 0xe9a   : > { %4744 = vmatprep.subr.bf16.mxu0 %v5997_v0 }
 0xef8   : > { %v2762_v9 = vpop.permute.xlu0 %2761 }
 0xef9   : > { %2764 = vst.msk [vmem:[#allocation2] sm:$0xff] %vm2056_vm6, %v2762_v9 }
 0xf00   : > { %v2880_v10 = vpop.permute.xlu1 %2879 }
 0xf01   : > { %2882 = vst.msk [vmem:[#allocation2] sm:$0xff] %vm2175_vm7, %v2880_v10 }
 0xf08   : > { %v2998_v11 = vpop.permute.xlu1 %2997 }
 0xf09   : > { %3000 = vst.msk [vmem:[#allocation2] sm:$0xff] %vm2294_vm8, %v2998_v11 }
 0xf10   : > { %v3001_v12 = vld [vmem:[#allocation2] sm:$0xff] }
 0xf11   : > { %v3002_v13 = vpack.c.bf16 %v3001_v12, %v3001_v12 }
 0xf13   : > { %4725 = vmatmul.mubr.msk.bf16.vlgmr.msra.gmra.mrb[48].mxu1 %vm1634_vm3, %v3002_v13 }
 0xf14   : > { %4740 = vmatprep.mubr.msk.bf16.mxu1 %vm5998_vm0, %v5997_v0  ;;  %4737 = vmatpush3.bf16.msra.mxu1 %v5133_v23 }
 0xf15   : > { %4738 = vmatprep.subr.bf16.mxu1 %v5997_v0 }
 0xf18   : > { %4739 = vmatpush3.bf16.msra.mxu1 %v5134_v30 }
 0xf19   : > { %4750 = vmatprep.subr.bf16.mxu1 %v5997_v0 }
 0xfe6   : > { %v3063_v16 = vpop.f32.mrb[48].mxu1 }
 0xfe7   : > { %v3064_v17 = vadd.f32 %v4437_v14, %v3063_v16  ;;  %v4726_v18 = vpop.f32.mrb[49].mxu1 }
 0xfe8   : > { %v3066_v15 = vpop.f32.mrb[50].mxu1 }
 0xfe9   : > { %v4727_v19 = vpop.f32.mrb[51].mxu1  ;;  %v3069_v20 = vadd.f32 %v3064_v17, %v6802_v7  ;;  %v3163_v7 = vld [vmem:[%s1528_s7] sm:$0xff]  ;;  %s7235_s7 = sld [smem:[#allocation85_spill]] }
 0xfea   : > { %v3165_v32 = vpack.c.bf16 %v3164_v31, %v3163_v7 }
 0xfeb   : > { %v3072_v21 = vsel %vm1634_vm3, %v3069_v20, 0.0 }
 0xfec   : > { %3073 = vadd.xlane.f32.xlu0 %v3072_v21  ;;  %4741 = vmatmul.mubr.msk.bf16.vlgmr.msra.gmra.mrb[52].mxu1 %vm1634_vm3, %v3165_v32 }
 0xfed   : > { %4752 = vmatprep.mubr.msk.bf16.mxu1 %vm5998_vm0, %v5997_v0 }
0x1079   : > { %v3074_v25 = vpop.xlane.xlu0 %3073 }
0x107a   : > { %v3075_v26 = vmul.f32 0.03125, %v3074_v25 }
0x107c   : > { %v3076_v27 = vsub.f32 %v3069_v20, %v3075_v26 }
0x107e   : > { %v3077_v28 = vmul.f32 %v3076_v27, %v3076_v27 }
0x1080   : > { %v3078_v29 = vsel %vm1634_vm3, %v3077_v28, 0.0 }
0x1081   : > { %3079 = vadd.xlane.f32.xlu1 %v3078_v29 }
0x10bf   : > { %v3226_v47 = vpop.f32.mrb[52].mxu1 }
0x10c0   : > { %v3227_v48 = vadd.f32 %v4447_v46, %v3226_v47  ;;  %v4742_v49 = vpop.f32.mrb[53].mxu1 }
0x10c1   : > { %v3229_v50 = vpop.f32.mrb[54].mxu1 }
0x10c2   : > { %v3230_v51 = vadd.f32 %v4447_v46, %v3229_v50  ;;  %v4743_v60 = vpop.f32.mrb[55].mxu1 }
0x10c4   : > { %v6914_v63 = vpack.c.bf16 %v3230_v51, %v3227_v48 }
0x10c6   : > { %3347 = vrot.lane.b32.xlu0 %v6914_v63, %s5999_s11 }
0x10ca   : > { %3462 = vrot.lane.b32.xlu0 %v6914_v63, %s6004_s14 }
0x10ce   : > { %3577 = vrot.lane.b32.xlu0 %v6914_v63, %s6005_s21 }
0x110e   : > { %v3080_v35 = vpop.xlane.xlu1 %3079 }
0x110f   : > { %v3081_v36 = vmul.f32 0.03125, %v3080_v35 }
0x1111   : > { %v3082_v37 = vadd.f32 1e-05, %v3081_v36 }
0x1113   : > { %5179 = vrsqrt.f32 %v3082_v37 }
0x111d   : > { %v5180_v38 = vpop.eup %5179 }
0x111e   : > { %v3084_v40 = vmul.f32 %v5180_v38, %v3076_v27 }
0x1120   : > { %v3089_v42 = vmul.f32 %v4441_v39, %v3084_v40 }
0x1122   : > { %v6907_v43 = vadd.f32 %v4442_v41, %v3089_v42 }
0x1124   : > { %v3095_v44 = vadd.f32 %v6907_v43, %v6693_v24  ;;  %v3239_v24 = vsel %vm1821_vm4, %v6914_v63, 0 }
0x1126   : > { %v3096_v45 = vpack.c.bf16 %v3095_v44, %v3095_v44 }
0x1128   : > { %4733 = vmatmul.mubr.msk.bf16.vlgmr.msra.gmra.mrb[44].mxu0 %vm1634_vm3, %v3096_v45 }
0x1129   : > { %4746 = vmatprep.mubr.msk.bf16.mxu0 %vm5998_vm0, %v5997_v0  ;;  %4745 = vmatpush3.bf16.xpose.msra.mxu0 %v3239_v24 }
0x112a   : > { %4756 = vmatprep.subr.bf16.mxu0 %v5997_v0 }
0x1138   : > { %v3348_v57 = vpop.permute.xlu0 %3347 }
0x1139   : > { %v3353_v59 = vsel %vm1821_vm4, %v3348_v57, 0 }
0x113c   : > { %v3463_v61 = vpop.permute.xlu0 %3462 }
0x113d   : > { %v3468_v1 = vsel %vm1821_vm4, %v3463_v61, 0 }
0x1140   : > { %v3578_v3 = vpop.permute.xlu0 %3577 }
0x1141   : > { %v3583_v5 = vsel %vm1821_vm4, %v3578_v3, 0 }
0x11fb   : > { %v3157_v53 = vpop.f32.mrb[44].mxu0 }
0x11fc   : > { %v3158_v54 = vadd.f32 %v4443_v52, %v3157_v53  ;;  %v4734_v55 = vpop.f32.mrb[45].mxu0 }
0x11fd   : > { %v3160_v56 = vpop.f32.mrb[46].mxu0 }
0x11fe   : > { %v3233_v58 = vpack.c.bf16 %v3158_v54, %v3158_v54  ;;  %v4735_v22 = vpop.f32.mrb[47].mxu0 }
0x1200   : > { %3345 = vrot.lane.b32.xlu1 %v3233_v58, %s5999_s11  ;;  %4747 = vmatmul.mubr.msk.bf16.vlgmr.msra.gmra.mrb[48].mxu0 %vm1821_vm4, %v3233_v58  ;;  %s7231_s11 = smov 88  }
0x1201   : > { %4757 = vmatpush3.bf16.xpose.msra.mxu0 %v3353_v59  ;;  %4758 = vmatprep.mubr.msk.bf16.mxu0 %vm5998_vm0, %v5997_v0 }
0x1202   : > { %4768 = vmatprep.subr.bf16.mxu0 %v5997_v0 }
0x1204   : > { %3460 = vrot.lane.b32.xlu1 %v3233_v58, %s6004_s14  ;;  %s7236_s14 = sld [smem:[#allocation86_spill]] }
0x1208   : > { %3575 = vrot.lane.b32.xlu1 %v3233_v58, %s6005_s21  ;;  %s7237_s21 = sld [smem:[#allocation84_spill]] }
0x120c   : > { %3295 = vrot.lane.b32.xlu1 %v6914_v63, %s6000_s16  ;;  %s7232_s16 = sld [smem:[#allocation79_spill]] }
0x1272   : > { %v3346_v62 = vpop.permute.xlu1 %3345 }
0x1273   : > { %4759 = vmatmul.mubr.msk.bf16.vlgmr.msra.gmra.mrb[52].mxu0 %vm1821_vm4, %v3346_v62 }
0x1274   : > { %4769 = vmatpush3.bf16.xpose.msra.mxu0 %v3468_v1  ;;  %4770 = vmatprep.mubr.msk.bf16.mxu0 %vm5998_vm0, %v5997_v0 }
0x1275   : > { %4780 = vmatprep.subr.bf16.mxu0 %v5997_v0 }
0x1276   : > { %v3461_v2 = vpop.permute.xlu1 %3460 }
0x127a   : > { %v3576_v4 = vpop.permute.xlu1 %3575 }
0x127b   : > { %4771 = vmatmul.mubr.msk.bf16.vlgmr.msra.gmra.mrb[56].mxu0 %vm1821_vm4, %v3461_v2 }
0x127c   : > { %4781 = vmatpush3.bf16.xpose.msra.mxu0 %v3583_v5  ;;  %4782 = vmatprep.mubr.msk.bf16.mxu0 %vm5998_vm0, %v5997_v0 }
0x127d   : > { %4792 = vmatprep.subr.bf16.mxu0 %v5997_v0 }
0x127e   : > { %v3296_v6 = vpop.permute.xlu1 %3295 }
0x127f   : > { %4751 = vmatpush3.bf16.msra.mxu1 %v3296_v6 }
0x1280   : > { %4762 = vmatprep.subr.bf16.mxu1 %v5997_v0 }
0x1283   : > { %4783 = vmatmul.mubr.msk.bf16.vlgmr.msra.gmra.mrb[60].mxu0 %vm1821_vm4, %v3576_v4 }
0x1284   : > { %4796 = vmatprep.mubr.msk.bf16.mxu0 %vm5998_vm0, %v5997_v0 }
0x12d3   : > { %v3275_v8 = vpop.f32.mrb[48].mxu0 }
0x12d4   : > { %v3281_v9 = vmul.f32 0.35355338, %v3275_v8  ;;  %v4748_v10 = vpop.f32.mrb[49].mxu0 }
0x12d5   : > { %v3278_v11 = vpop.f32.mrb[50].mxu0 }
0x12d6   : > { %v4749_v12 = vpop.f32.mrb[51].mxu0  ;;  %v3283_v13 = vsel %vm3282_vm9, %v3281_v9, -inf }
0x12d7   : > { %3284 = vmax.xlane.f32.xlu0 %v3283_v13 }
0x1346   : > { %v3389_v14 = vpop.f32.mrb[52].mxu0 }
0x1347   : > { %v3395_v16 = vmul.f32 0.35355338, %v3389_v14  ;;  %v4760_v17 = vpop.f32.mrb[53].mxu0 }
0x1348   : > { %v3392_v18 = vpop.f32.mrb[54].mxu0 }
0x1349   : > { %v4761_v15 = vpop.f32.mrb[55].mxu0  ;;  %v3396_v19 = vsel %vm3282_vm9, %v3395_v16, -inf  ;;  %v5137_v18 = vld [vmem:[%s7232_s16] sm:$0xff]  }
0x134a   : > { %3397 = vmax.xlane.f32.xlu1 %v3396_v19  ;;  %4793 = vmatpush3.bf16.msra.mxu0 %v5137_v18 }
0x134b   : > { %4794 = vmatprep.subr.bf16.mxu0 %v5997_v0 }
0x134e   : > { %v3504_v20 = vpop.f32.mrb[56].mxu0 }
0x134f   : > { %v3510_v21 = vmul.f32 0.35355338, %v3504_v20  ;;  %v4772_v23 = vpop.f32.mrb[57].mxu0 }
0x1350   : > { %v3507_v25 = vpop.f32.mrb[58].mxu0 }
0x1351   : > { %v4773_v26 = vpop.f32.mrb[59].mxu0  ;;  %v3511_v27 = vsel %vm3282_vm9, %v3510_v21, -inf }
0x1352   : > { %3512 = vmax.xlane.f32.xlu0 %v3511_v27 }
0x1356   : > { %v3619_v28 = vpop.f32.mrb[60].mxu0 }
0x1357   : > { %v3625_v29 = vmul.f32 0.35355338, %v3619_v28  ;;  %v4784_v30 = vpop.f32.mrb[61].mxu0 }
0x1358   : > { %v3622_v7 = vpop.f32.mrb[62].mxu0 }
0x1359   : > { %v4785_v31 = vpop.f32.mrb[63].mxu0  ;;  %v3626_v32 = vsel %vm3282_vm9, %v3625_v29, -inf }
0x135a   : > { %3627 = vmax.xlane.f32.xlu0 %v3626_v32 }
0x135b   : > { %3522 = vrot.lane.b32.xlu1 %v6914_v63, %s6001_s5  ;;  %s7233_s5 = smov %s7232_s16 }
0x135c   : > { %v5138_v20 = vld [vmem:[%s7233_s5 + $0x8] sm:$0xff]  }
0x135d   : > { %4795 = vmatpush3.bf16.msra.mxu0 %v5138_v20 }
0x135e   : > { %4808 = vmatprep.subr.bf16.mxu0 %v5997_v0 }
0x135f   : > { %3637 = vrot.lane.b32.xlu1 %v6914_v63, %s7230_s1  ;;  %s1519_s1 = scalar_lea.vmem [#allocation38], %s7239_s30 }
0x1364   : > { %v3285_v33 = vpop.xlane.xlu0 %3284 }
0x1365   : > { %v3286_v34 = vsub.f32 %v3281_v9, %v3285_v33 }
0x1367   : > { %v3287_v35 = vmul.f32 1.442695, %v3286_v34 }
0x1369   : > { %5181 = vpow2.f32 %v3287_v35 }
0x1370   : > { %3407 = vrot.lane.b32.xlu0 %v6914_v63, %s7231_s11  ;;  %s3977_s11 = sshll.u32 %s1519_s1, 4  ;;  %s7018_s11 = int_to_ptr.vmem [resolvable:$true] %s3977_s11 }
0x1373   : > { %v5182_v36 = vpop.eup %5181 }
0x1374   : > { %v3293_v37 = vpack.c.bf16 %v5182_v36, %v5182_v36  ;;  %v3289_v56 = vsel %vm3282_vm9, %v5182_v36, 0.0 }
0x1376   : > { %4753 = vmatmul.mubr.msk.bf16.vlgmr.msra.gmra.mrb[56].mxu1 %vm3282_vm9, %v3293_v37  ;;  %v4459_v37 = vld [vmem:[#allocation32] ss:$0 sm:$0xff] }
0x1377   : > { %4764 = vmatprep.mubr.msk.bf16.mxu1 %vm5998_vm0, %v5997_v0 }
0x13d7   : > { %v3398_v38 = vpop.xlane.xlu1 %3397 }
0x13d8   : > { %v3399_v39 = vsub.f32 %v3395_v16, %v3398_v38 }
0x13da   : > { %v3400_v40 = vmul.f32 1.442695, %v3399_v39 }
0x13db   : > { %v3523_v63 = vpop.permute.xlu1 %3522 }
0x13dc   : > { %5183 = vpow2.f32 %v3400_v40 }
0x13df   : > { %v3513_v41 = vpop.xlane.xlu0 %3512  ;;  %v3638_v54 = vpop.permute.xlu1 %3637 }
0x13e0   : > { %v3514_v42 = vsub.f32 %v3510_v21, %v3513_v41 }
0x13e2   : > { %v3515_v44 = vmul.f32 1.442695, %v3514_v42 }
0x13e4   : > { %5185 = vpow2.f32 %v3515_v44 }
0x13e6   : > { %v5184_v45 = vpop.eup %5183 }
0x13e7   : > { %v3628_v46 = vpop.xlane.xlu0 %3627  ;;  %v3402_v47 = vsel %vm3282_vm9, %v5184_v45, 0.0  ;;  %v3406_v51 = vpack.c.bf16 %v5184_v45, %v5184_v45 }
0x13e8   : > { %v3629_v48 = vsub.f32 %v3625_v29, %v3628_v46  ;;  %3403 = vadd.xlane.f32.xlu0 %v3402_v47 }
0x13ea   : > { %v3630_v49 = vmul.f32 1.442695, %v3629_v48 }
0x13eb   : > { %v3408_v50 = vpop.permute.xlu0 %3407 }
0x13ec   : > { %5187 = vpow2.f32 %v3630_v49  ;;  %4763 = vmatpush3.bf16.msra.mxu1 %v3408_v50 }
0x13ed   : > { %4774 = vmatprep.subr.bf16.mxu1 %v5997_v0 }
0x13ee   : > { %v5186_v60 = vpop.eup %5185 }
0x13ef   : > { %4765 = vmatmul.mubr.msk.bf16.vlgmr.msra.gmra.mrb[60].mxu1 %vm3282_vm9, %v3406_v51  ;;  %v3517_v24 = vsel %vm3282_vm9, %v5186_v60, 0.0  ;;  %v3521_v52 = vpack.c.bf16 %v5186_v60, %v5186_v60  ;;  %v5139_v51 = vld [vmem:[%s7235_s7] sm:$0xff]   ;;  %v5140_v60 = vld [vmem:[%s7235_s7 + $0x8] sm:$0xff]  }
0x13f0   : > { %3518 = vadd.xlane.f32.xlu1 %v3517_v24  ;;  %4775 = vmatpush3.bf16.msra.mxu1 %v3523_v63  ;;  %v5141_v63 = vld [vmem:[%s6198_s27] sm:$0xff]  }
0x13f1   : > { %4776 = vmatprep.mubr.msk.bf16.mxu1 %vm5998_vm0, %v5997_v0  ;;  %4786 = vmatprep.subr.bf16.mxu1 %v5997_v0 }
0x13f6   : > { %v5188_v53 = vpop.eup %5187 }
0x13f7   : > { %4777 = vmatmul.mubr.msk.bf16.vlgmr.msra.gmra.mrb[64].mxu1 %vm3282_vm9, %v3521_v52  ;;  %v3632_v55 = vsel %vm3282_vm9, %v5188_v53, 0.0  ;;  %v3636_v57 = vpack.c.bf16 %v5188_v53, %v5188_v53 }
0x13f8   : > { %4787 = vmatpush3.bf16.msra.mxu1 %v3638_v54  ;;  %3633 = vadd.xlane.f32.xlu0 %v3632_v55  ;;  %v4463_v55 = vld [vmem:[#allocation36] ss:$0 sm:$0xff] }
0x13f9   : > { %4788 = vmatprep.mubr.msk.bf16.mxu1 %vm5998_vm0, %v5997_v0  ;;  %4800 = vmatprep.subr.bf16.mxu1 %v5997_v0 }
0x13fc   : > { %3290 = vadd.xlane.f32.xlu0 %v3289_v56 }
0x13ff   : > { %4789 = vmatmul.mubr.msk.bf16.vlgmr.msra.gmra.mrb[68].mxu1 %vm3282_vm9, %v3636_v57  ;;  %v4464_v57 = vld [vmem:[#allocation36 + $0x1] ss:$0 sm:$0xff] }
0x1400   : > { %4804 = vmatprep.mubr.msk.bf16.mxu1 %vm5998_vm0, %v5997_v0  ;;  %4801 = vmatpush3.bf16.msra.mxu1 %v5139_v51 }
0x1401   : > { %4802 = vmatprep.subr.bf16.mxu1 %v5997_v0 }
0x1404   : > { %4803 = vmatpush3.bf16.msra.mxu1 %v5140_v60 }
0x1449   : > { %v3335_v58 = vpop.f32.mrb[56].mxu1 }
0x144a   : > { %v4754_v22 = vpop.f32.mrb[57].mxu1 }
0x144b   : > { %v3338_v59 = vpop.f32.mrb[58].mxu1 }
0x144c   : > { %v4755_v61 = vpop.f32.mrb[59].mxu1 }
0x144d   : > { %v5143_v61 = vld [vmem:[%s6198_s27 + $0x10] sm:$0xff]  }
0x1475   : > { %v3404_v62 = vpop.xlane.xlu0 %3403 }
0x1476   : > { %v3405_v6 = vmax.f32 %v3404_v62, 1e-20  ;;  %v5144_v62 = vld [vmem:[%s6198_s27 + $0x18] sm:$0xff]  }
0x147d   : > { %v3519_v8 = vpop.xlane.xlu1 %3518 }
0x147e   : > { %v3520_v9 = vmax.f32 %v3519_v8, 1e-20 }
0x1485   : > { %v3634_v1 = vpop.xlane.xlu0 %3633 }
0x1486   : > { %v3635_v14 = vmax.f32 %v3634_v1, 1e-20  ;;  %v4465_v1 = vld [vmem:[%s6193_s4] ss:$0 sm:$0xff] }
0x1489   : > { %v3291_v2 = vpop.xlane.xlu0 %3290 }
0x148a   : > { %v3292_v3 = vmax.f32 %v3291_v2, 1e-20 }
0x148c   : > { %5189 = vrcp.f32 %v3292_v3 }
0x148d   : > { %5191 = vrcp.f32 %v3405_v6 }
0x148e   : > { %5193 = vrcp.f32 %v3520_v9 }
0x148f   : > { %5195 = vrcp.f32 %v3635_v14 }
0x1496   : > { %v5190_v4 = vpop.eup %5189 }
0x1497   : > { %v3342_v5 = vmul.f32 %v5190_v4, %v3335_v58  ;;  %v5192_v10 = vpop.eup %5191 }
0x1498   : > { %v5194_v15 = vpop.eup %5193 }
0x1499   : > { %3343 = vst.msk [vmem:[#allocation2] sm:$0xff] %vm1821_vm4, %v3342_v5  ;;  %v5196_v27 = vpop.eup %5195 }
0x14c2   : > { %v3447_v11 = vpop.f32.mrb[60].mxu1 }
0x14c3   : > { %v3454_v12 = vmul.f32 %v5192_v10, %v3447_v11  ;;  %v4766_v13 = vpop.f32.mrb[61].mxu1  ;;  %v4469_v10 = vld [vmem:[%s7236_s14] ss:$0 sm:$0xff]  ;;  %s5823_s14 = scalar_lea.vmem %s7018_s11, 128 }
0x14c4   : > { %v3450_v16 = vpop.f32.mrb[62].mxu1  ;;  %p5824_p13 = scmp.ne.s32.totalorder %s7018_s11, %s5823_s14 }
0x14c5   : > { %v4767_v17 = vpop.f32.mrb[63].mxu1  ;;  %3456 = vrot.lane.b32.xlu1 %v3454_v12, %s7226_s22  ;;  %s7238_s22 = sld [smem:[#allocation87_spill]] }
0x14c6   : > { %p5825_p12 = pnand %p5824_p13, %p7240_p5 }
0x14c8   : > { %p5826_p0 = pneg %p5825_p12 }
0x14ca   : > { %v3562_v19 = vpop.f32.mrb[64].mxu1 }
0x14cb   : > { %v3569_v21 = vmul.f32 %v5194_v15, %v3562_v19  ;;  %v4778_v23 = vpop.f32.mrb[65].mxu1 }
0x14cc   : > { %v3565_v25 = vpop.f32.mrb[66].mxu1 }
0x14cd   : > { %3571 = vrot.lane.b32.xlu0 %v3569_v21, %s7234_s19  ;;  %v4779_v26 = vpop.f32.mrb[67].mxu1  ;;  %s3964_s19 = scalar_lea.sflag [#allocation5], %s6601_s29 }
0x14d2   : > { %v3677_v28 = vpop.f32.mrb[68].mxu1 }
0x14d3   : > { %v3684_v29 = vmul.f32 %v5196_v27, %v3677_v28  ;;  %v4790_v30 = vpop.f32.mrb[69].mxu1  ;;  %v4475_v28 = vld [vmem:[%s7237_s21] ss:$0 sm:$0xff] }
0x14d4   : > { %v3680_v7 = vpop.f32.mrb[70].mxu1  ;;  %v4476_v30 = vld [vmem:[%s7237_s21 + $0x1] ss:$0 sm:$0xff] }
0x14d5   : > { %v4791_v31 = vpop.f32.mrb[71].mxu1  ;;  %3686 = vrot.lane.b32.xlu1 %v3684_v29, %s7227_s28  ;;  %s4478_s28 = sshll.u32 %s6231_s26, 7  ;;  %s6009_s26 = smov [#allocation38]  }
0x14d6   : > { %s7016_s16 = scalar_lea.hbm %s7238_s22, %s4478_s28  ;;  %s5827_s30 = sshll.u32 %s6009_s26, 4  ;;  %s5828_s30 = int_to_ptr.vmem [resolvable:$false] %s5827_s30 }
0x14d7   : > { %s5829_s3 = scalar_lea.vmem %s5828_s30, 256  ;;  %p5830_p2 = scmp.lt.s32.totalorder %s7018_s11, %s5828_s30 }
0x14d8   : > { %p5831_p9 = scmp.lt.s32.totalorder %s5829_s3, %s5823_s14 }
0x14da   : > { %p5832_p6 = por %p5831_p9, %p5830_p2 }
0x14dc   : > { %p5833_p8 = pnand %p5832_p6, %p5826_p0 }
0x1537   : > { %v3457_v32 = vpop.permute.xlu1 %3456 }
0x1538   : > { %3459 = vst.msk [vmem:[#allocation2] sm:$0xff] %vm2056_vm6, %v3457_v32 }
0x153f   : > { %v3572_v33 = vpop.permute.xlu0 %3571 }
0x1540   : > { %3574 = vst.msk [vmem:[#allocation2] sm:$0xff] %vm2175_vm7, %v3572_v33 }
0x1547   : > { %v3687_v34 = vpop.permute.xlu1 %3686 }
0x1548   : > { %3689 = vst.msk [vmem:[#allocation2] sm:$0xff] %vm2294_vm8, %v3687_v34 }
0x154f   : > { %v3690_v35 = vld [vmem:[#allocation2] sm:$0xff] }
0x1550   : > { %v3691_v36 = vpack.c.bf16 %v3690_v35, %v3690_v35 }
0x1552   : > { %4797 = vmatmul.mubr.msk.bf16.vlgmr.msra.gmra.mrb[64].mxu0 %vm1634_vm3, %v3691_v36 }
0x1553   : > { %4816 = vmatprep.mubr.msk.bf16.mxu0 %vm5998_vm0, %v5997_v0  ;;  %4809 = vmatpush3.bf16.msra.mxu0 %v5141_v63 }
0x1554   : > { %4810 = vmatprep.subr.bf16.mxu0 %v5997_v0 }
0x1625   : > { %v3752_v38 = vpop.f32.mrb[64].mxu0 }
0x1626   : > { %v3753_v39 = vadd.f32 %v4459_v37, %v3752_v38  ;;  %v4798_v40 = vpop.f32.mrb[65].mxu0 }
0x1627   : > { %v3755_v41 = vpop.f32.mrb[66].mxu0 }
0x1628   : > { %v4799_v42 = vpop.f32.mrb[67].mxu0  ;;  %v3758_v44 = vadd.f32 %v3753_v39, %v6907_v43  ;;  %v5142_v43 = vld [vmem:[%s6198_s27 + $0x8] sm:$0xff]  }
0x1629   : > { %4811 = vmatpush3.bf16.msra.mxu0 %v5142_v43 }
0x162a   : > { %v3761_v45 = vsel %vm1634_vm3, %v3758_v44, 0.0  ;;  %4812 = vmatprep.subr.bf16.mxu0 %v5997_v0 }
0x162b   : > { %3762 = vadd.xlane.f32.xlu1 %v3761_v45 }
0x162d   : > { %4813 = vmatpush3.bf16.msra.mxu0 %v5143_v61 }
0x162e   : > { %4814 = vmatprep.subr.bf16.mxu0 %v5997_v0 }
0x1631   : > { %4815 = vmatpush3.bf16.msra.mxu0 %v5144_v62 }
0x16b8   : > { %v3763_v46 = vpop.xlane.xlu1 %3762 }
0x16b9   : > { %v3764_v47 = vmul.f32 0.03125, %v3763_v46 }
0x16bb   : > { %v3765_v48 = vsub.f32 %v3758_v44, %v3764_v47 }
0x16bd   : > { %v3766_v49 = vmul.f32 %v3765_v48, %v3765_v48 }
0x16bf   : > { %v3767_v50 = vsel %vm1634_vm3, %v3766_v49, 0.0 }
0x16c0   : > { %3768 = vadd.xlane.f32.xlu0 %v3767_v50 }
0x174d   : > { %v3769_v24 = vpop.xlane.xlu0 %3768 }
0x174e   : > { %v3770_v52 = vmul.f32 0.03125, %v3769_v24 }
0x1750   : > { %v3771_v53 = vadd.f32 1e-05, %v3770_v52 }
0x1752   : > { %5197 = vrsqrt.f32 %v3771_v53 }
0x175c   : > { %v5198_v54 = vpop.eup %5197 }
0x175d   : > { %v3773_v56 = vmul.f32 %v5198_v54, %v3765_v48 }
0x175f   : > { %v3778_v58 = vmul.f32 %v4463_v55, %v3773_v56 }
0x1761   : > { %v3783_v22 = vadd.f32 %v4464_v57, %v3778_v58 }
0x1763   : > { %v3784_v59 = vpack.c.bf16 %v3783_v22, %v3783_v22 }
0x1765   : > { %4805 = vmatmul.mubr.msk.bf16.vlgmr.msra.gmra.mrb[72].mxu1 %vm1634_vm3, %v3784_v59 }
0x1838   : > { %v3845_v2 = vpop.f32.mrb[72].mxu1 }
0x1839   : > { %v3846_v3 = vadd.f32 %v4465_v1, %v3845_v2  ;;  %v4806_v4 = vpop.f32.mrb[73].mxu1 }
0x183a   : > { %v3848_v5 = vpop.f32.mrb[74].mxu1 }
0x183b   : > { %v3851_v6 = vmax.f32 %v3846_v3, 0.0  ;;  %v4807_v8 = vpop.f32.mrb[75].mxu1 }
0x183d   : > { %v3852_v9 = vpack.c.bf16 %v3851_v6, %v3851_v6 }
0x183f   : > { %4817 = vmatmul.mubr.msk.bf16.vlgmr.msra.gmra.mrb[68].mxu0 %vm3892_vm10, %v3852_v9 }
0x1912   : > { %v3930_v11 = vpop.f32.mrb[68].mxu0 }
0x1913   : > { %v3931_v12 = vadd.f32 %v4469_v10, %v3930_v11  ;;  %v4818_v13 = vpop.f32.mrb[69].mxu0 }
0x1914   : > { %v3933_v14 = vpop.f32.mrb[70].mxu0 }
0x1915   : > { %v4819_v16 = vpop.f32.mrb[71].mxu0  ;;  %v3936_v0 = vadd.f32 %v3931_v12, %v3783_v22 }
0x1917   : > { %v3939_v17 = vsel %vm1634_vm3, %v3936_v0, 0.0 }
0x1918   : > { %3940 = vadd.xlane.f32.xlu0 %v3939_v17 }
0x19a5   : > { %v3941_v18 = vpop.xlane.xlu0 %3940 }
0x19a6   : > { %v3942_v15 = vmul.f32 0.03125, %v3941_v18 }
0x19a8   : > { %v3943_v19 = vsub.f32 %v3936_v0, %v3942_v15 }
0x19aa   : > { %v3944_v20 = vmul.f32 %v3943_v19, %v3943_v19 }
0x19ac   : > { %v3945_v21 = vsel %vm1634_vm3, %v3944_v20, 0.0 }
0x19ad   : > { %3946 = vadd.xlane.f32.xlu1 %v3945_v21 }
0x1a3a   : > { %v3947_v23 = vpop.xlane.xlu1 %3946 }
0x1a3b   : > { %v3948_v25 = vmul.f32 0.03125, %v3947_v23 }
0x1a3d   : > { %v3949_v26 = vadd.f32 1e-05, %v3948_v25 }
0x1a3f   : > { %5199 = vrsqrt.f32 %v3949_v26 }
0x1a49   : > { %v5200_v27 = vpop.eup %5199 }
0x1a4a   : > { %v3951_v29 = vmul.f32 %v5200_v27, %v3943_v19 }
0x1a4c   : > { %v3956_v7 = vmul.f32 %v4475_v28, %v3951_v29 }
0x1a4e   : > { %v3961_v31 = vadd.f32 %v4476_v30, %v3956_v7 }
0x1a50   : > { %3962 = vst.msk [vmem:[%s1519_s1] sm:$0xff] %vm1634_vm3, %v3961_v31 }
0x1a51   : > { %5836 = shalt.err (!%p5833_p8)
}
0x1a52   : > { %s5837_s29 = scalar_lea.hbm %s7016_s16, 128  ;;  %s5841_s28 = scalar_lea.hbm %s7238_s22, 256 }
0x1a53   : > { %p5838_p7 = scmp.ne.s32.totalorder %s7016_s16, %s5837_s29  ;;  %p5842_p3 = scmp.lt.u32.totalorder %s7016_s16, %s7238_s22 }
0x1a54   : > { %p5843_p4 = scmp.lt.u32.totalorder %s5841_s28, %s5837_s29  ;;  %p5845_p13 = scmp.lt.u32.totalorder %s5837_s29, %s7016_s16 }
0x1a55   : > { %p5839_p11 = pnand %p5838_p7, %p7240_p5 }
0x1a56   : > { %p5844_p10 = por %p5843_p4, %p5842_p3 }
0x1a57   : > { %p5840_p1 = pneg %p5839_p11 }
0x1a58   : > { %p5846_p12 = por %p5845_p13, %p5844_p10 }
0x1a5a   : > { %p5847_p0 = pnand %p5846_p12, %p5840_p1 }
0x1a5c   : > { %5850 = shalt.err (!%p5847_p0)
}
0x1a5d   : > { %4902 = dma.vmem_to_hbm [thread:$0]  (%p7240_p5), %s7018_s11, 128, %s7016_s16, %s3964_s19  }
0x1a5e PF: > { %s3989_s3 = sand.u32 1, %s5921_s15   ;;  %p7241_p2 = scmp.ne.s32.totalorder %s7177_s9, 0 }
0x1a5f   : > { %p7242_p9 = scmp.ge.s32.totalorder %s5933_s18, 2  ;;  %s3990_s1 = scalar_lea.sflag [#allocation5], %s3989_s3 }
0x1a61   : > { %p4973_p6 = pnand %p7242_p9, %p7241_p2 }
0x1a63   : > { %5916 = dma.done.wait (!%p4973_p6), %s3990_s1, 128  }
0x1a64   : > { %5918 = vsyncadd (!%p4973_p6), %s3990_s1, 4294967168  ;;  %s7243_s14 = sld [smem:[#allocation88_spill]]  ;;  %s7244_s16 = sld [smem:[#allocation89_spill]] }
0x1a65   : > { %p103_p8 = scmp.ge.s32.totalorder %s6376_s2, 4   ;;  %s7245_s15 = smov %s5925_s0 }
0x1a66   : > { %s7247_s18 = smov %s6376_s2 }
0x1a67   :  { %105 = sbr.rel (!%p103_p8) target bundleno = 97 (0x61), region = 364 }
0x1a6a   : > { %s7246_s0 = smov %s7243_s14 }
0x1a6e   :  { %3995 = vsyncpa [#allocation4], 1 }
0x1a6f   :  { %3997 = vsyncpa [#allocation4 + $0x1], 1 }
0x1a70   :  { %3998 = vsyncpa [#allocation7], 1 }
0x1a71   :  { %4000 = vsyncpa [#allocation7 + $0x1], 1 }
0x1a72   :  { %4001 = vsyncpa [#allocation10], 1 }
0x1a73   :  { %4002 = vsyncpa [#allocation13], 1 }
0x1a74   :  { %4003 = vsyncpa [#allocation16], 1 }
0x1a75   :  { %4004 = vsyncpa [#allocation19], 1 }
0x1a76   :  { %4005 = vsyncpa [#allocation22], 1 }
0x1a77   :  { %4006 = vsyncpa [#allocation25], 1 }
0x1a78   :  { %4007 = vsyncpa [#allocation28], 1 }
0x1a79   :  { %4008 = vsyncpa [#allocation31], 1 }
0x1a7a   :  { %4009 = vsyncpa [#allocation34], 1 }
0x1a7b   :  { %4010 = vsyncpa [#allocation37], 1 }
0x1a7c   :  { %4011 = vsyncpa [#allocation5], 1 }
0x1a7d   :  { %4013 = vsyncpa [#allocation5 + $0x1], 1 }

</bundles_post_ra>
